<compile_context>
chip_gen: v7x
topology: tpu7x:2x2x1
jax: 0.10.0
libtpu: 0.0.40
codegen_flags: <defaults>
</compile_context>

<pallas_src>
import math
import functools

import numpy as np
import jax
import jax.numpy as jnp
from jax import lax
from jax.experimental import pallas as pl
from jax.experimental.pallas import tpu as pltpu

# ---------------- configuration (consistent with the module) ----------------
N_FEATS = 8
IDX_EMBED_DIM = 8
MIX_COMPS = 4
MLP_LAYERS = (32, 32)
NHEAD = 4
DIM_FF = 64
NUM_LAYERS = 2
D_MODEL = MLP_LAYERS[-1]
HEAD_DIM = D_MODEL // NHEAD
BATCH = 2

_VMEM = pl.BlockSpec(memory_space=pltpu.MemorySpace.VMEM)

# ---------------- packed-vector block row indices (static) ----------------
VEC_B0 = 0          # [idx_b0 | val_b0]                (64 lanes)
VEC_VROW = 1        # [zeros  | val_w0 value-row]      (64 lanes)
VEC_B1I = 2         # idx_b1 * sqrt(d)
VEC_B1V = 3         # val_b1 * sqrt(d)
VEC_MIXB = 4        # mix bias (padded to 128)
VEC_LAYER0 = 8
VEC_PER_LAYER = 12
VL_BO = 4           # rows +0..+3 are per-head wrow_h, +4 is bo_eff
VL_LN1W = 5
VL_LN1B = 6
VL_FF1B = 7
VL_FF2B = 8
VL_LN2W = 9
VL_LN2B = 10
VEC_ROWS = VEC_LAYER0 + VEC_PER_LAYER * NUM_LAYERS      # 32


def _build_layout():
    """Static row offsets of every weight block inside the (rows, 128) slab."""
    offs = {}
    cur = 0

    def take(name, rows):
        nonlocal cur
        offs[name] = cur
        cur += rows + ((-rows) % 8)          # keep every block 8-row aligned

    take('VEC', VEC_ROWS)
    take('EW0', N_FEATS)                     # (n_feats, 2d)  embed @ [idx_w0 | val_w0_top]
    take('W1A', 2 * D_MODEL)                 # (2d, d)  [idx_w1*sqrt(d); 0]
    take('W1B', 2 * D_MODEL)                 # (2d, d)  [0; val_w1*sqrt(d)]
    take('MIXW', D_MODEL)                    # (d, 128) lane-dense mix head
    for l in range(NUM_LAYERS):
        for h in range(NHEAD):
            take(f'A{l}_{h}', D_MODEL)       # Wq_h Wk_h^T / sqrt(hd)
        for h in range(NHEAD):
            take(f'B{l}_{h}', D_MODEL)       # Wv_h Wo_h
        take(f'FF1{l}', D_MODEL)             # (d, dff)
        take(f'FF2{l}', DIM_FF)              # (dff, d)
    offs['_rows'] = cur
    return offs


LAYOUT = _build_layout()


# ---------------------------------- fused kernel ------------------------------------
def _layernorm(y, w, b):
    mu = jnp.mean(y, axis=-1, keepdims=True)
    var = jnp.mean(jnp.square(y - mu), axis=-1, keepdims=True)
    return (y - mu) * lax.rsqrt(var + 1e-5) * w + b


def fused_forward_kernel(inp_ref, slab_ref, out_ref, *, batch, nf, d, nhead, dff,
                         mix, num_layers, off):
    f32 = jnp.float32
    m = batch * nf           # number of idx (= val) tokens
    bs = 2 * m               # total tokens across the whole batch

    # ---- inputs: one (m, 2) array; col 0 = feature index (as f32), col 1 = value ----
    iv = inp_ref[...]
    idx_i = iv[:, 0:1].astype(jnp.int32)                         # (m, 1)
    val_c = iv[:, 1:2]                                           # (m, 1)

    # ---- all packed vectors loaded once ----
    vo = off['VEC']
    vec = slab_ref[vo:vo + VEC_ROWS, :]                          # (32, 128)

    # ---- embedding gather + fused first MLP layer (idx | val side-by-side) ----
    cols = lax.broadcasted_iota(jnp.int32, (m, nf), 1)
    onehot = (idx_i == cols).astype(f32)                         # (m, n_feats)
    ew0 = slab_ref[off['EW0']:off['EW0'] + nf, 0:2 * d]          # (n_feats, 2d)
    h0 = jnp.dot(onehot, ew0, preferred_element_type=f32)
    h0 = h0 + val_c * vec[VEC_VROW:VEC_VROW + 1, 0:2 * d] + vec[VEC_B0:VEC_B0 + 1, 0:2 * d]
    h0 = jnp.maximum(h0, 0.0)                                    # (m, 2d)

    # ---- second MLP layer (sqrt(d_model) already folded into weights/biases) ----
    w1a = slab_ref[off['W1A']:off['W1A'] + 2 * d, 0:d]           # (2d, d)
    w1b = slab_ref[off['W1B']:off['W1B'] + 2 * d, 0:d]
    idx_feats = jnp.dot(h0, w1a, preferred_element_type=f32) + vec[VEC_B1I:VEC_B1I + 1, 0:d]
    val_feats = jnp.dot(h0, w1b, preferred_element_type=f32) + vec[VEC_B1V:VEC_B1V + 1, 0:d]

    # tokens: rows [0:m] = idx tokens, rows [m:2m] = val tokens (batch-major inside).
    # Tile-aligned sublane concat -> no lane shuffles.
    x = jnp.concatenate([idx_feats, val_feats], axis=0)          # (bs, d)

    # ---- mask: batch block-diagonal + causal in the ORIGINAL interleaved order ----
    r = lax.broadcasted_iota(jnp.int32, (bs, bs), 0)
    c = lax.broadcasted_iota(jnp.int32, (bs, bs), 1)
    rv = (r >= m).astype(jnp.int32)
    cv = (c >= m).astype(jnp.int32)
    rr = r - rv * m
    cc = c - cv * m
    if nf & (nf - 1) == 0:
        sh = nf.bit_length() - 1
        rb, cb = rr >> sh, cc >> sh
        rf, cf = rr & (nf - 1), cc & (nf - 1)
    else:
        rb, cb = rr // nf, cc // nf
        rf, cf = rr % nf, cc % nf
    ro = 2 * rf + rv                                             # original seq position
    co = 2 * cf + cv
    mask = jnp.where((rb == cb) & (co <= ro), 0.0, -1e30).astype(f32)   # (bs, bs)

    # ---- transformer encoder layers (post-LN, ReLU FFN, dropout = identity) ----
    for l in range(num_layers):
        vb = VEC_LAYER0 + VEC_PER_LAYER * l
        attn = jnp.zeros((bs, d), f32) + vec[vb + VL_BO:vb + VL_BO + 1, 0:d]   # bo_eff
        for h in range(nhead):
            ao = off[f'A{l}_{h}']
            bo_ = off[f'B{l}_{h}']
            a_w = slab_ref[ao:ao + d, 0:d]                       # Wq_h Wk_h^T / sqrt(hd)
            b_w = slab_ref[bo_:bo_ + d, 0:d]                     # Wv_h Wo_h
            # effective query (K-bias column term folded in as a packed row)
            qe = jnp.dot(x, a_w, preferred_element_type=f32) + vec[vb + h:vb + h + 1, 0:d]
            s = lax.dot_general(qe, x, (((1,), (1,)), ((), ())),
                                preferred_element_type=f32) + mask            # (bs, bs)
            s = s - jnp.max(s, axis=-1, keepdims=True)
            e = jnp.exp(s)
            p = e * pl.reciprocal(jnp.sum(e, axis=-1, keepdims=True), approx=True)
            ctx = jnp.dot(x, b_w, preferred_element_type=f32)                  # (bs, d)
            attn = attn + jnp.dot(p, ctx, preferred_element_type=f32)
        y = _layernorm(x + attn, vec[vb + VL_LN1W:vb + VL_LN1W + 1, 0:d],
                       vec[vb + VL_LN1B:vb + VL_LN1B + 1, 0:d])
        ff1 = slab_ref[off[f'FF1{l}']:off[f'FF1{l}'] + d, 0:dff]
        ff2 = slab_ref[off[f'FF2{l}']:off[f'FF2{l}'] + dff, 0:d]
        f = jnp.maximum(jnp.dot(y, ff1, preferred_element_type=f32)
                        + vec[vb + VL_FF1B:vb + VL_FF1B + 1, 0:dff], 0.0)
        f = jnp.dot(f, ff2, preferred_element_type=f32) + vec[vb + VL_FF2B:vb + VL_FF2B + 1, 0:d]
        x = _layernorm(y + f, vec[vb + VL_LN2W:vb + VL_LN2W + 1, 0:d],
                       vec[vb + VL_LN2B:vb + VL_LN2B + 1, 0:d])

    # ---- mix head: lane-dense (m, 128) unmasked store ----
    idx_out = x[0:m, :]                                          # idx-token rows (aligned)
    mixw = slab_ref[off['MIXW']:off['MIXW'] + d, :]              # (d, 128)
    preds = jnp.dot(idx_out, mixw, preferred_element_type=f32) + vec[VEC_MIXB:VEC_MIXB + 1, :]
    lane = lax.broadcasted_iota(jnp.int32, (m, 128), 1)
    is_pi = lane < mix
    is_mu = (lane >= mix) & (lane < 2 * mix)
    is_sd = (lane >= 2 * mix) & (lane < 3 * mix)
    pim = jnp.where(is_pi, preds, -1e30)
    e = jnp.exp(pim - jnp.max(pim, axis=-1, keepdims=True))
    pis = e * pl.reciprocal(jnp.sum(e, axis=-1, keepdims=True), approx=True)
    sds = jnp.exp(jnp.where(is_sd, preds, 0.0))
    out_ref[...] = pis + jnp.where(is_mu, preds, 0.0) + jnp.where(is_sd, sds, 0.0)


# ------------------------------- parameters & packing --------------------------------
def init_params(key):
    keys = iter(jax.random.split(key, 64))

    def u(shape, s=0.1):
        return jax.random.uniform(next(keys), shape, jnp.float32, -s, s)

    p = {'embed': u((N_FEATS, IDX_EMBED_DIM), 1.0)}
    idx_in, val_in = IDX_EMBED_DIM, IDX_EMBED_DIM + 1
    p['idx_mlp'], p['val_mlp'] = [], []
    for out in MLP_LAYERS:
        p['idx_mlp'].append({'w_t': u((idx_in, out)), 'b': u((out,))})
        p['val_mlp'].append({'w_t': u((val_in, out)), 'b': u((out,))})
        idx_in = out
        val_in = out

    p['layers'] = []
    for _ in range(NUM_LAYERS):
        p['layers'].append({
            'wq_t': u((D_MODEL, D_MODEL)), 'wk_t': u((D_MODEL, D_MODEL)),
            'wv_t': u((D_MODEL, D_MODEL)),
            'bq': u((D_MODEL,)), 'bk': u((D_MODEL,)), 'bv': u((D_MODEL,)),
            'wo_t': u((D_MODEL, D_MODEL)), 'bo': u((D_MODEL,)),
            'ln1_w': jnp.ones((D_MODEL,), jnp.float32),
            'ln1_b': jnp.zeros((D_MODEL,), jnp.float32),
            'ff1_wt': u((D_MODEL, DIM_FF)), 'ff1_b': u((DIM_FF,)),
            'ff2_wt': u((DIM_FF, D_MODEL)), 'ff2_b': u((D_MODEL,)),
            'ln2_w': jnp.ones((D_MODEL,), jnp.float32),
            'ln2_b': jnp.zeros((D_MODEL,), jnp.float32),
        })
    p['mix_wt'] = u((D_MODEL, 3 * MIX_COMPS))
    p['mix_b'] = jnp.zeros((3 * MIX_COMPS,), jnp.float32)
    return p


def pack_params(p):
    """Host-side packing of all weights into one lane-dense (rows, 128) f32 slab."""
    d, dff, e, hd = D_MODEL, DIM_FF, IDX_EMBED_DIM, HEAD_DIM
    scale = math.sqrt(d)
    inv = 1.0 / math.sqrt(hd)
    arr = lambda v: np.asarray(v, np.float32)

    slab = np.zeros((LAYOUT['_rows'], 128), np.float32)

    def put(name, mat):
        mat = np.asarray(mat, np.float32)
        r, c = mat.shape
        o = LAYOUT[name]
        slab[o:o + r, :c] = mat

    embed = arr(p['embed'])
    iw0, ib0 = arr(p['idx_mlp'][0]['w_t']), arr(p['idx_mlp'][0]['b'])
    iw1, ib1 = arr(p['idx_mlp'][1]['w_t']), arr(p['idx_mlp'][1]['b'])
    vw0, vb0 = arr(p['val_mlp'][0]['w_t']), arr(p['val_mlp'][0]['b'])
    vw1, vb1 = arr(p['val_mlp'][1]['w_t']), arr(p['val_mlp'][1]['b'])

    # ---- packed vectors ----
    vec = np.zeros((VEC_ROWS, 128), np.float32)

    def vrow(i, v):
        v = np.asarray(v, np.float32).reshape(-1)
        vec[i, :v.shape[0]] = v

    vrow(VEC_B0, np.concatenate([ib0, vb0]))
    vrow(VEC_VROW, np.concatenate([np.zeros(d, np.float32), vw0[e, :]]))
    vrow(VEC_B1I, ib1 * scale)
    vrow(VEC_B1V, vb1 * scale)
    vrow(VEC_MIXB, arr(p['mix_b']))

    # ---- MLP / embedding / mix-head matrices ----
    put('EW0', np.concatenate([embed @ iw0, embed @ vw0[:e, :]], axis=1))   # (nf, 2d)
    put('W1A', np.concatenate([iw1 * scale, np.zeros((d, d), np.float32)], axis=0))
    put('W1B', np.concatenate([np.zeros((d, d), np.float32), vw1 * scale], axis=0))
    put('MIXW', arr(p['mix_wt']))                                           # lanes 0:3*mix

    # ---- encoder layers: composite attention weights + FFN ----
    for l, L in enumerate(p['layers']):
        wq, wk, wv, wo = arr(L['wq_t']), arr(L['wk_t']), arr(L['wv_t']), arr(L['wo_t'])
        bq, bv, bo = arr(L['bq']), arr(L['bv']), arr(L['bo'])
        # bk only contributes softmax-invariant row constants -> dropped exactly.
        base = VEC_LAYER0 + VEC_PER_LAYER * l
        for h in range(NHEAD):
            hs = slice(h * hd, (h + 1) * hd)
            put(f'A{l}_{h}', (wq[:, hs] @ wk[:, hs].T) * inv)
            put(f'B{l}_{h}', wv[:, hs] @ wo[hs, :])
            vrow(base + h, (wk[:, hs] @ bq[hs]) * inv)           # column-bias row
        vrow(base + VL_BO, bo + bv @ wo)                         # bv folded through Wo
        vrow(base + VL_LN1W, arr(L['ln1_w']))
        vrow(base + VL_LN1B, arr(L['ln1_b']))
        vrow(base + VL_FF1B, arr(L['ff1_b']))
        vrow(base + VL_FF2B, arr(L['ff2_b']))
        vrow(base + VL_LN2W, arr(L['ln2_w']))
        vrow(base + VL_LN2B, arr(L['ln2_b']))
        put(f'FF1{l}', arr(L['ff1_wt']))
        put(f'FF2{l}', arr(L['ff2_wt']))

    put('VEC', vec)
    return jnp.asarray(slab)


# ------------------------------------ forward ----------------------------------------
def deformer_forward(slab, idxs, vals):
    b, nf = idxs.shape
    m = b * nf
    # single merged input DMA: col 0 = feature index (exact small ints in f32), col 1 = value
    inp = jnp.concatenate(
        [idxs.reshape(m, 1).astype(jnp.float32),
         vals.reshape(m, 1).astype(jnp.float32)], axis=1)        # (m, 2)

    kern = functools.partial(
        fused_forward_kernel, batch=b, nf=nf, d=D_MODEL, nhead=NHEAD,
        dff=DIM_FF, mix=MIX_COMPS, num_layers=NUM_LAYERS, off=LAYOUT)

    out = pl.pallas_call(
        kern,
        out_shape=jax.ShapeDtypeStruct((m, 128), jnp.float32),
        in_specs=[_VMEM, _VMEM],
        out_specs=_VMEM,
        cost_estimate=pl.CostEstimate(flops=3_000_000, transcendentals=20_000,
                                      bytes_accessed=520_000),
    )(inp, slab)

    pis = out[:, :MIX_COMPS].reshape(b, nf, MIX_COMPS)
    mus = out[:, MIX_COMPS:2 * MIX_COMPS].reshape(b, nf, MIX_COMPS)
    sds = out[:, 2 * MIX_COMPS:3 * MIX_COMPS].reshape(b, nf, MIX_COMPS)
    return pis, mus, sds


if __name__ == "__main__":
    key = jax.random.PRNGKey(0)
    kp, ki, kv = jax.random.split(key, 3)
    params = init_params(kp)
    slab = pack_params(params)

    idxs = jnp.stack([
        jax.random.permutation(jax.random.fold_in(ki, i), N_FEATS)
        for i in range(BATCH)
    ]).astype(jnp.int32)                                         # (B, n_feats)
    vals = jax.random.normal(kv, (BATCH, N_FEATS), jnp.float32)  # (B, n_feats)

    pis, mus, sds = jax.jit(deformer_forward)(slab, idxs, vals)
    jax.block_until_ready((pis, mus, sds))

    assert pis.shape == (BATCH, N_FEATS, MIX_COMPS)
    assert mus.shape == (BATCH, N_FEATS, MIX_COMPS)
    assert sds.shape == (BATCH, N_FEATS, MIX_COMPS)
    assert bool(jnp.all(jnp.isfinite(pis)) & jnp.all(jnp.isfinite(mus))
                & jnp.all(jnp.isfinite(sds)))
    assert bool(jnp.all(jnp.abs(jnp.sum(pis, axis=-1) - 1.0) < 5e-2))
    assert bool(jnp.all(sds > 0.0))
    print("KERNEL_OK")
</pallas_src>

<mosaic_0001>
module attributes {stable_mosaic.version = 11 : i64} {
  func.func @fused_forward_kernel(%arg0: memref<16x2xf32, #tpu.memory_space<vmem>>, %arg1: memref<904x128xf32, #tpu.memory_space<vmem>>, %arg2: memref<16x128xf32, #tpu.memory_space<vmem>>) attributes {dimension_semantics = [], scalar_prefetch = 0 : i64, scratch_operands = 0 : i64, tpu.core_type = #tpu.core_type<tc>} {
    %c0 = arith.constant 0 : index
    %c0_0 = arith.constant 0 : index
    %0 = vector.load %arg0[%c0, %c0_0] : memref<16x2xf32, #tpu.memory_space<vmem>>, vector<16x2xf32>
    %1 = vector.extract_strided_slice %0 {offsets = [0, 0], sizes = [16, 1], strides = [1, 1]} : vector<16x2xf32> to vector<16x1xf32>
    %2 = arith.fptosi %1 : vector<16x1xf32> to vector<16x1xi32>
    %3 = vector.extract_strided_slice %0 {offsets = [0, 1], sizes = [16, 1], strides = [1, 1]} : vector<16x2xf32> to vector<16x1xf32>
    %c0_1 = arith.constant 0 : index
    %c0_2 = arith.constant 0 : index
    %4 = vector.load %arg1[%c0_1, %c0_2] : memref<904x128xf32, #tpu.memory_space<vmem>>, vector<32x128xf32>
    %5 = tpu.iota {dimensions = array<i32: 1>} : vector<16x8xi32>
    %6 = vector.broadcast %2 : vector<16x1xi32> to vector<16x8xi32>
    %7 = arith.cmpi eq, %6, %5 : vector<16x8xi32>
    %8 = arith.extui %7 : vector<16x8xi1> to vector<16x8xi32>
    %9 = arith.sitofp %8 : vector<16x8xi32> to vector<16x8xf32>
    %c32 = arith.constant 32 : index
    %c0_3 = arith.constant 0 : index
    %10 = vector.load %arg1[%c32, %c0_3] : memref<904x128xf32, #tpu.memory_space<vmem>>, vector<8x64xf32>
    %cst = arith.constant dense<0.000000e+00> : vector<16x64xf32>
    %11 = tpu.matmul %9, %10, %cst {dimension_numbers = #tpu.dot_dimension_numbers<[1], [0], [0], [1], [0, 0, 1, 1], [], []>} : vector<16x8xf32>, vector<8x64xf32>, vector<16x64xf32> -> vector<16x64xf32>
    %12 = vector.extract_strided_slice %4 {offsets = [1, 0], sizes = [1, 64], strides = [1, 1]} : vector<32x128xf32> to vector<1x64xf32>
    %13 = vector.broadcast %3 : vector<16x1xf32> to vector<16x64xf32>
    %14 = vector.broadcast %12 : vector<1x64xf32> to vector<16x64xf32>
    %15 = arith.mulf %13, %14 : vector<16x64xf32>
    %16 = arith.addf %11, %15 : vector<16x64xf32>
    %17 = vector.extract_strided_slice %4 {offsets = [0, 0], sizes = [1, 64], strides = [1, 1]} : vector<32x128xf32> to vector<1x64xf32>
    %18 = vector.broadcast %17 : vector<1x64xf32> to vector<16x64xf32>
    %19 = arith.addf %16, %18 : vector<16x64xf32>
    %cst_4 = arith.constant 0.000000e+00 : f32
    %20 = vector.broadcast %cst_4 : f32 to vector<16x64xf32>
    %21 = arith.maximumf %19, %20 : vector<16x64xf32>
    %c40 = arith.constant 40 : index
    %c0_5 = arith.constant 0 : index
    %22 = vector.load %arg1[%c40, %c0_5] : memref<904x128xf32, #tpu.memory_space<vmem>>, vector<64x32xf32>
    %c104 = arith.constant 104 : index
    %c0_6 = arith.constant 0 : index
    %23 = vector.load %arg1[%c104, %c0_6] : memref<904x128xf32, #tpu.memory_space<vmem>>, vector<64x32xf32>
    %cst_7 = arith.constant dense<0.000000e+00> : vector<16x32xf32>
    %24 = tpu.matmul %21, %22, %cst_7 {dimension_numbers = #tpu.dot_dimension_numbers<[1], [0], [0], [1], [0, 0, 1, 1], [], []>} : vector<16x64xf32>, vector<64x32xf32>, vector<16x32xf32> -> vector<16x32xf32>
    %25 = vector.extract_strided_slice %4 {offsets = [2, 0], sizes = [1, 32], strides = [1, 1]} : vector<32x128xf32> to vector<1x32xf32>
    %26 = vector.broadcast %25 : vector<1x32xf32> to vector<16x32xf32>
    %27 = arith.addf %24, %26 : vector<16x32xf32>
    %cst_8 = arith.constant dense<0.000000e+00> : vector<16x32xf32>
    %28 = tpu.matmul %21, %23, %cst_8 {dimension_numbers = #tpu.dot_dimension_numbers<[1], [0], [0], [1], [0, 0, 1, 1], [], []>} : vector<16x64xf32>, vector<64x32xf32>, vector<16x32xf32> -> vector<16x32xf32>
    %29 = vector.extract_strided_slice %4 {offsets = [3, 0], sizes = [1, 32], strides = [1, 1]} : vector<32x128xf32> to vector<1x32xf32>
    %30 = vector.broadcast %29 : vector<1x32xf32> to vector<16x32xf32>
    %31 = arith.addf %28, %30 : vector<16x32xf32>
    %32 = tpu.concatenate %27, %31 in 0 : vector<16x32xf32>, vector<16x32xf32> -> vector<32x32xf32>
    %33 = tpu.iota {dimensions = array<i32: 0>} : vector<32x32xi32>
    %34 = tpu.iota {dimensions = array<i32: 1>} : vector<32x32xi32>
    %c16_i32 = arith.constant 16 : i32
    %35 = vector.broadcast %c16_i32 : i32 to vector<32x32xi32>
    %36 = arith.cmpi sge, %33, %35 : vector<32x32xi32>
    %37 = arith.extui %36 : vector<32x32xi1> to vector<32x32xi32>
    %c16_i32_9 = arith.constant 16 : i32
    %38 = vector.broadcast %c16_i32_9 : i32 to vector<32x32xi32>
    %39 = arith.cmpi sge, %34, %38 : vector<32x32xi32>
    %40 = arith.extui %39 : vector<32x32xi1> to vector<32x32xi32>
    %c16_i32_10 = arith.constant 16 : i32
    %41 = vector.broadcast %c16_i32_10 : i32 to vector<32x32xi32>
    %42 = arith.muli %37, %41 : vector<32x32xi32>
    %43 = arith.subi %33, %42 : vector<32x32xi32>
    %c16_i32_11 = arith.constant 16 : i32
    %44 = vector.broadcast %c16_i32_11 : i32 to vector<32x32xi32>
    %45 = arith.muli %40, %44 : vector<32x32xi32>
    %46 = arith.subi %34, %45 : vector<32x32xi32>
    %c3_i32 = arith.constant 3 : i32
    %47 = vector.broadcast %c3_i32 : i32 to vector<32x32xi32>
    %48 = arith.shrsi %43, %47 : vector<32x32xi32>
    %c3_i32_12 = arith.constant 3 : i32
    %49 = vector.broadcast %c3_i32_12 : i32 to vector<32x32xi32>
    %50 = arith.shrsi %46, %49 : vector<32x32xi32>
    %c7_i32 = arith.constant 7 : i32
    %51 = vector.broadcast %c7_i32 : i32 to vector<32x32xi32>
    %52 = arith.andi %43, %51 : vector<32x32xi32>
    %c7_i32_13 = arith.constant 7 : i32
    %53 = vector.broadcast %c7_i32_13 : i32 to vector<32x32xi32>
    %54 = arith.andi %46, %53 : vector<32x32xi32>
    %c2_i32 = arith.constant 2 : i32
    %55 = vector.broadcast %c2_i32 : i32 to vector<32x32xi32>
    %56 = arith.muli %55, %52 : vector<32x32xi32>
    %57 = arith.addi %56, %37 : vector<32x32xi32>
    %c2_i32_14 = arith.constant 2 : i32
    %58 = vector.broadcast %c2_i32_14 : i32 to vector<32x32xi32>
    %59 = arith.muli %58, %54 : vector<32x32xi32>
    %60 = arith.addi %59, %40 : vector<32x32xi32>
    %61 = arith.cmpi eq, %48, %50 : vector<32x32xi32>
    %62 = arith.cmpi sle, %60, %57 : vector<32x32xi32>
    %63 = arith.andi %61, %62 : vector<32x32xi1>
    %cst_15 = arith.constant 0.000000e+00 : f32
    %cst_16 = arith.constant -1.000000e+30 : f32
    %64 = vector.broadcast %cst_15 : f32 to vector<32x32xf32>
    %65 = vector.broadcast %cst_16 : f32 to vector<32x32xf32>
    %66 = arith.select %63, %64, %65 : vector<32x32xi1>, vector<32x32xf32>
    %cst_17 = arith.constant 0.000000e+00 : f32
    %67 = vector.broadcast %cst_17 : f32 to vector<32x32xf32>
    %68 = vector.extract_strided_slice %4 {offsets = [12, 0], sizes = [1, 32], strides = [1, 1]} : vector<32x128xf32> to vector<1x32xf32>
    %69 = vector.broadcast %68 : vector<1x32xf32> to vector<32x32xf32>
    %70 = arith.addf %67, %69 : vector<32x32xf32>
    %c200 = arith.constant 200 : index
    %c0_18 = arith.constant 0 : index
    %71 = vector.load %arg1[%c200, %c0_18] : memref<904x128xf32, #tpu.memory_space<vmem>>, vector<32x32xf32>
    %c328 = arith.constant 328 : index
    %c0_19 = arith.constant 0 : index
    %72 = vector.load %arg1[%c328, %c0_19] : memref<904x128xf32, #tpu.memory_space<vmem>>, vector<32x32xf32>
    %cst_20 = arith.constant dense<0.000000e+00> : vector<32x32xf32>
    %73 = tpu.matmul %32, %71, %cst_20 {dimension_numbers = #tpu.dot_dimension_numbers<[1], [0], [0], [1], [0, 0, 1, 1], [], []>} : vector<32x32xf32>, vector<32x32xf32>, vector<32x32xf32> -> vector<32x32xf32>
    %74 = vector.extract_strided_slice %4 {offsets = [8, 0], sizes = [1, 32], strides = [1, 1]} : vector<32x128xf32> to vector<1x32xf32>
    %75 = vector.broadcast %74 : vector<1x32xf32> to vector<32x32xf32>
    %76 = arith.addf %73, %75 : vector<32x32xf32>
    %cst_21 = arith.constant dense<0.000000e+00> : vector<32x32xf32>
    %77 = tpu.matmul %76, %32, %cst_21 {dimension_numbers = #tpu.dot_dimension_numbers<[1], [1], [0], [0], [0, 0, 1, 0], [], []>} : vector<32x32xf32>, vector<32x32xf32>, vector<32x32xf32> -> vector<32x32xf32>
    %78 = arith.addf %77, %66 : vector<32x32xf32>
    %cst_22 = arith.constant dense<0xFF800000> : vector<32xf32>
    %79 = vector.multi_reduction <maximumf>, %78, %cst_22 [1] : vector<32x32xf32> to vector<32xf32>
    %80 = vector.shape_cast %79 : vector<32xf32> to vector<32x1xf32>
    %81 = vector.broadcast %80 : vector<32x1xf32> to vector<32x32xf32>
    %82 = arith.subf %78, %81 : vector<32x32xf32>
    %83 = math.exp %82 : vector<32x32xf32>
    %cst_23 = arith.constant dense<0.000000e+00> : vector<32xf32>
    %84 = vector.multi_reduction <add>, %83, %cst_23 [1] : vector<32x32xf32> to vector<32xf32>
    %85 = vector.shape_cast %84 : vector<32xf32> to vector<32x1xf32>
    %86 = tpu.reciprocal %85 {approx = true} : vector<32x1xf32> -> vector<32x1xf32>
    %87 = vector.broadcast %86 : vector<32x1xf32> to vector<32x32xf32>
    %88 = arith.mulf %83, %87 : vector<32x32xf32>
    %cst_24 = arith.constant dense<0.000000e+00> : vector<32x32xf32>
    %89 = tpu.matmul %32, %72, %cst_24 {dimension_numbers = #tpu.dot_dimension_numbers<[1], [0], [0], [1], [0, 0, 1, 1], [], []>} : vector<32x32xf32>, vector<32x32xf32>, vector<32x32xf32> -> vector<32x32xf32>
    %cst_25 = arith.constant dense<0.000000e+00> : vector<32x32xf32>
    %90 = tpu.matmul %88, %89, %cst_25 {dimension_numbers = #tpu.dot_dimension_numbers<[1], [0], [0], [1], [0, 0, 1, 1], [], []>} : vector<32x32xf32>, vector<32x32xf32>, vector<32x32xf32> -> vector<32x32xf32>
    %91 = arith.addf %70, %90 : vector<32x32xf32>
    %c232 = arith.constant 232 : index
    %c0_26 = arith.constant 0 : index
    %92 = vector.load %arg1[%c232, %c0_26] : memref<904x128xf32, #tpu.memory_space<vmem>>, vector<32x32xf32>
    %c360 = arith.constant 360 : index
    %c0_27 = arith.constant 0 : index
    %93 = vector.load %arg1[%c360, %c0_27] : memref<904x128xf32, #tpu.memory_space<vmem>>, vector<32x32xf32>
    %cst_28 = arith.constant dense<0.000000e+00> : vector<32x32xf32>
    %94 = tpu.matmul %32, %92, %cst_28 {dimension_numbers = #tpu.dot_dimension_numbers<[1], [0], [0], [1], [0, 0, 1, 1], [], []>} : vector<32x32xf32>, vector<32x32xf32>, vector<32x32xf32> -> vector<32x32xf32>
    %95 = vector.extract_strided_slice %4 {offsets = [9, 0], sizes = [1, 32], strides = [1, 1]} : vector<32x128xf32> to vector<1x32xf32>
    %96 = vector.broadcast %95 : vector<1x32xf32> to vector<32x32xf32>
    %97 = arith.addf %94, %96 : vector<32x32xf32>
    %cst_29 = arith.constant dense<0.000000e+00> : vector<32x32xf32>
    %98 = tpu.matmul %97, %32, %cst_29 {dimension_numbers = #tpu.dot_dimension_numbers<[1], [1], [0], [0], [0, 0, 1, 0], [], []>} : vector<32x32xf32>, vector<32x32xf32>, vector<32x32xf32> -> vector<32x32xf32>
    %99 = arith.addf %98, %66 : vector<32x32xf32>
    %cst_30 = arith.constant dense<0xFF800000> : vector<32xf32>
    %100 = vector.multi_reduction <maximumf>, %99, %cst_30 [1] : vector<32x32xf32> to vector<32xf32>
    %101 = vector.shape_cast %100 : vector<32xf32> to vector<32x1xf32>
    %102 = vector.broadcast %101 : vector<32x1xf32> to vector<32x32xf32>
    %103 = arith.subf %99, %102 : vector<32x32xf32>
    %104 = math.exp %103 : vector<32x32xf32>
    %cst_31 = arith.constant dense<0.000000e+00> : vector<32xf32>
    %105 = vector.multi_reduction <add>, %104, %cst_31 [1] : vector<32x32xf32> to vector<32xf32>
    %106 = vector.shape_cast %105 : vector<32xf32> to vector<32x1xf32>
    %107 = tpu.reciprocal %106 {approx = true} : vector<32x1xf32> -> vector<32x1xf32>
    %108 = vector.broadcast %107 : vector<32x1xf32> to vector<32x32xf32>
    %109 = arith.mulf %104, %108 : vector<32x32xf32>
    %cst_32 = arith.constant dense<0.000000e+00> : vector<32x32xf32>
    %110 = tpu.matmul %32, %93, %cst_32 {dimension_numbers = #tpu.dot_dimension_numbers<[1], [0], [0], [1], [0, 0, 1, 1], [], []>} : vector<32x32xf32>, vector<32x32xf32>, vector<32x32xf32> -> vector<32x32xf32>
    %cst_33 = arith.constant dense<0.000000e+00> : vector<32x32xf32>
    %111 = tpu.matmul %109, %110, %cst_33 {dimension_numbers = #tpu.dot_dimension_numbers<[1], [0], [0], [1], [0, 0, 1, 1], [], []>} : vector<32x32xf32>, vector<32x32xf32>, vector<32x32xf32> -> vector<32x32xf32>
    %112 = arith.addf %91, %111 : vector<32x32xf32>
    %c264 = arith.constant 264 : index
    %c0_34 = arith.constant 0 : index
    %113 = vector.load %arg1[%c264, %c0_34] : memref<904x128xf32, #tpu.memory_space<vmem>>, vector<32x32xf32>
    %c392 = arith.constant 392 : index
    %c0_35 = arith.constant 0 : index
    %114 = vector.load %arg1[%c392, %c0_35] : memref<904x128xf32, #tpu.memory_space<vmem>>, vector<32x32xf32>
    %cst_36 = arith.constant dense<0.000000e+00> : vector<32x32xf32>
    %115 = tpu.matmul %32, %113, %cst_36 {dimension_numbers = #tpu.dot_dimension_numbers<[1], [0], [0], [1], [0, 0, 1, 1], [], []>} : vector<32x32xf32>, vector<32x32xf32>, vector<32x32xf32> -> vector<32x32xf32>
    %116 = vector.extract_strided_slice %4 {offsets = [10, 0], sizes = [1, 32], strides = [1, 1]} : vector<32x128xf32> to vector<1x32xf32>
    %117 = vector.broadcast %116 : vector<1x32xf32> to vector<32x32xf32>
    %118 = arith.addf %115, %117 : vector<32x32xf32>
    %cst_37 = arith.constant dense<0.000000e+00> : vector<32x32xf32>
    %119 = tpu.matmul %118, %32, %cst_37 {dimension_numbers = #tpu.dot_dimension_numbers<[1], [1], [0], [0], [0, 0, 1, 0], [], []>} : vector<32x32xf32>, vector<32x32xf32>, vector<32x32xf32> -> vector<32x32xf32>
    %120 = arith.addf %119, %66 : vector<32x32xf32>
    %cst_38 = arith.constant dense<0xFF800000> : vector<32xf32>
    %121 = vector.multi_reduction <maximumf>, %120, %cst_38 [1] : vector<32x32xf32> to vector<32xf32>
    %122 = vector.shape_cast %121 : vector<32xf32> to vector<32x1xf32>
    %123 = vector.broadcast %122 : vector<32x1xf32> to vector<32x32xf32>
    %124 = arith.subf %120, %123 : vector<32x32xf32>
    %125 = math.exp %124 : vector<32x32xf32>
    %cst_39 = arith.constant dense<0.000000e+00> : vector<32xf32>
    %126 = vector.multi_reduction <add>, %125, %cst_39 [1] : vector<32x32xf32> to vector<32xf32>
    %127 = vector.shape_cast %126 : vector<32xf32> to vector<32x1xf32>
    %128 = tpu.reciprocal %127 {approx = true} : vector<32x1xf32> -> vector<32x1xf32>
    %129 = vector.broadcast %128 : vector<32x1xf32> to vector<32x32xf32>
    %130 = arith.mulf %125, %129 : vector<32x32xf32>
    %cst_40 = arith.constant dense<0.000000e+00> : vector<32x32xf32>
    %131 = tpu.matmul %32, %114, %cst_40 {dimension_numbers = #tpu.dot_dimension_numbers<[1], [0], [0], [1], [0, 0, 1, 1], [], []>} : vector<32x32xf32>, vector<32x32xf32>, vector<32x32xf32> -> vector<32x32xf32>
    %cst_41 = arith.constant dense<0.000000e+00> : vector<32x32xf32>
    %132 = tpu.matmul %130, %131, %cst_41 {dimension_numbers = #tpu.dot_dimension_numbers<[1], [0], [0], [1], [0, 0, 1, 1], [], []>} : vector<32x32xf32>, vector<32x32xf32>, vector<32x32xf32> -> vector<32x32xf32>
    %133 = arith.addf %112, %132 : vector<32x32xf32>
    %c296 = arith.constant 296 : index
    %c0_42 = arith.constant 0 : index
    %134 = vector.load %arg1[%c296, %c0_42] : memref<904x128xf32, #tpu.memory_space<vmem>>, vector<32x32xf32>
    %c424 = arith.constant 424 : index
    %c0_43 = arith.constant 0 : index
    %135 = vector.load %arg1[%c424, %c0_43] : memref<904x128xf32, #tpu.memory_space<vmem>>, vector<32x32xf32>
    %cst_44 = arith.constant dense<0.000000e+00> : vector<32x32xf32>
    %136 = tpu.matmul %32, %134, %cst_44 {dimension_numbers = #tpu.dot_dimension_numbers<[1], [0], [0], [1], [0, 0, 1, 1], [], []>} : vector<32x32xf32>, vector<32x32xf32>, vector<32x32xf32> -> vector<32x32xf32>
    %137 = vector.extract_strided_slice %4 {offsets = [11, 0], sizes = [1, 32], strides = [1, 1]} : vector<32x128xf32> to vector<1x32xf32>
    %138 = vector.broadcast %137 : vector<1x32xf32> to vector<32x32xf32>
    %139 = arith.addf %136, %138 : vector<32x32xf32>
    %cst_45 = arith.constant dense<0.000000e+00> : vector<32x32xf32>
    %140 = tpu.matmul %139, %32, %cst_45 {dimension_numbers = #tpu.dot_dimension_numbers<[1], [1], [0], [0], [0, 0, 1, 0], [], []>} : vector<32x32xf32>, vector<32x32xf32>, vector<32x32xf32> -> vector<32x32xf32>
    %141 = arith.addf %140, %66 : vector<32x32xf32>
    %cst_46 = arith.constant dense<0xFF800000> : vector<32xf32>
    %142 = vector.multi_reduction <maximumf>, %141, %cst_46 [1] : vector<32x32xf32> to vector<32xf32>
    %143 = vector.shape_cast %142 : vector<32xf32> to vector<32x1xf32>
    %144 = vector.broadcast %143 : vector<32x1xf32> to vector<32x32xf32>
    %145 = arith.subf %141, %144 : vector<32x32xf32>
    %146 = math.exp %145 : vector<32x32xf32>
    %cst_47 = arith.constant dense<0.000000e+00> : vector<32xf32>
    %147 = vector.multi_reduction <add>, %146, %cst_47 [1] : vector<32x32xf32> to vector<32xf32>
    %148 = vector.shape_cast %147 : vector<32xf32> to vector<32x1xf32>
    %149 = tpu.reciprocal %148 {approx = true} : vector<32x1xf32> -> vector<32x1xf32>
    %150 = vector.broadcast %149 : vector<32x1xf32> to vector<32x32xf32>
    %151 = arith.mulf %146, %150 : vector<32x32xf32>
    %cst_48 = arith.constant dense<0.000000e+00> : vector<32x32xf32>
    %152 = tpu.matmul %32, %135, %cst_48 {dimension_numbers = #tpu.dot_dimension_numbers<[1], [0], [0], [1], [0, 0, 1, 1], [], []>} : vector<32x32xf32>, vector<32x32xf32>, vector<32x32xf32> -> vector<32x32xf32>
    %cst_49 = arith.constant dense<0.000000e+00> : vector<32x32xf32>
    %153 = tpu.matmul %151, %152, %cst_49 {dimension_numbers = #tpu.dot_dimension_numbers<[1], [0], [0], [1], [0, 0, 1, 1], [], []>} : vector<32x32xf32>, vector<32x32xf32>, vector<32x32xf32> -> vector<32x32xf32>
    %154 = arith.addf %133, %153 : vector<32x32xf32>
    %155 = arith.addf %32, %154 : vector<32x32xf32>
    %156 = vector.extract_strided_slice %4 {offsets = [13, 0], sizes = [1, 32], strides = [1, 1]} : vector<32x128xf32> to vector<1x32xf32>
    %157 = vector.extract_strided_slice %4 {offsets = [14, 0], sizes = [1, 32], strides = [1, 1]} : vector<32x128xf32> to vector<1x32xf32>
    %cst_50 = arith.constant dense<0.000000e+00> : vector<32xf32>
    %158 = vector.multi_reduction <add>, %155, %cst_50 [1] : vector<32x32xf32> to vector<32xf32>
    %159 = vector.shape_cast %158 : vector<32xf32> to vector<32x1xf32>
    %cst_51 = arith.constant 3.200000e+01 : f32
    %160 = vector.broadcast %cst_51 : f32 to vector<32x1xf32>
    %161 = arith.divf %159, %160 : vector<32x1xf32>
    %162 = vector.broadcast %161 : vector<32x1xf32> to vector<32x32xf32>
    %163 = arith.subf %155, %162 : vector<32x32xf32>
    %164 = arith.mulf %163, %163 : vector<32x32xf32>
    %cst_52 = arith.constant dense<0.000000e+00> : vector<32xf32>
    %165 = vector.multi_reduction <add>, %164, %cst_52 [1] : vector<32x32xf32> to vector<32xf32>
    %166 = vector.shape_cast %165 : vector<32xf32> to vector<32x1xf32>
    %cst_53 = arith.constant 3.200000e+01 : f32
    %167 = vector.broadcast %cst_53 : f32 to vector<32x1xf32>
    %168 = arith.divf %166, %167 : vector<32x1xf32>
    %169 = vector.broadcast %161 : vector<32x1xf32> to vector<32x32xf32>
    %170 = arith.subf %155, %169 : vector<32x32xf32>
    %cst_54 = arith.constant 9.99999974E-6 : f32
    %171 = vector.broadcast %cst_54 : f32 to vector<32x1xf32>
    %172 = arith.addf %168, %171 : vector<32x1xf32>
    %173 = math.rsqrt %172 : vector<32x1xf32>
    %174 = vector.broadcast %173 : vector<32x1xf32> to vector<32x32xf32>
    %175 = arith.mulf %170, %174 : vector<32x32xf32>
    %176 = vector.broadcast %156 : vector<1x32xf32> to vector<32x32xf32>
    %177 = arith.mulf %175, %176 : vector<32x32xf32>
    %178 = vector.broadcast %157 : vector<1x32xf32> to vector<32x32xf32>
    %179 = arith.addf %177, %178 : vector<32x32xf32>
    %c456 = arith.constant 456 : index
    %c0_55 = arith.constant 0 : index
    %180 = vector.load %arg1[%c456, %c0_55] : memref<904x128xf32, #tpu.memory_space<vmem>>, vector<32x64xf32>
    %c488 = arith.constant 488 : index
    %c0_56 = arith.constant 0 : index
    %181 = vector.load %arg1[%c488, %c0_56] : memref<904x128xf32, #tpu.memory_space<vmem>>, vector<64x32xf32>
    %cst_57 = arith.constant dense<0.000000e+00> : vector<32x64xf32>
    %182 = tpu.matmul %179, %180, %cst_57 {dimension_numbers = #tpu.dot_dimension_numbers<[1], [0], [0], [1], [0, 0, 1, 1], [], []>} : vector<32x32xf32>, vector<32x64xf32>, vector<32x64xf32> -> vector<32x64xf32>
    %183 = vector.extract_strided_slice %4 {offsets = [15, 0], sizes = [1, 64], strides = [1, 1]} : vector<32x128xf32> to vector<1x64xf32>
    %184 = vector.broadcast %183 : vector<1x64xf32> to vector<32x64xf32>
    %185 = arith.addf %182, %184 : vector<32x64xf32>
    %cst_58 = arith.constant 0.000000e+00 : f32
    %186 = vector.broadcast %cst_58 : f32 to vector<32x64xf32>
    %187 = arith.maximumf %185, %186 : vector<32x64xf32>
    %cst_59 = arith.constant dense<0.000000e+00> : vector<32x32xf32>
    %188 = tpu.matmul %187, %181, %cst_59 {dimension_numbers = #tpu.dot_dimension_numbers<[1], [0], [0], [1], [0, 0, 1, 1], [], []>} : vector<32x64xf32>, vector<64x32xf32>, vector<32x32xf32> -> vector<32x32xf32>
    %189 = vector.extract_strided_slice %4 {offsets = [16, 0], sizes = [1, 32], strides = [1, 1]} : vector<32x128xf32> to vector<1x32xf32>
    %190 = vector.broadcast %189 : vector<1x32xf32> to vector<32x32xf32>
    %191 = arith.addf %188, %190 : vector<32x32xf32>
    %192 = arith.addf %179, %191 : vector<32x32xf32>
    %193 = vector.extract_strided_slice %4 {offsets = [17, 0], sizes = [1, 32], strides = [1, 1]} : vector<32x128xf32> to vector<1x32xf32>
    %194 = vector.extract_strided_slice %4 {offsets = [18, 0], sizes = [1, 32], strides = [1, 1]} : vector<32x128xf32> to vector<1x32xf32>
    %cst_60 = arith.constant dense<0.000000e+00> : vector<32xf32>
    %195 = vector.multi_reduction <add>, %192, %cst_60 [1] : vector<32x32xf32> to vector<32xf32>
    %196 = vector.shape_cast %195 : vector<32xf32> to vector<32x1xf32>
    %cst_61 = arith.constant 3.200000e+01 : f32
    %197 = vector.broadcast %cst_61 : f32 to vector<32x1xf32>
    %198 = arith.divf %196, %197 : vector<32x1xf32>
    %199 = vector.broadcast %198 : vector<32x1xf32> to vector<32x32xf32>
    %200 = arith.subf %192, %199 : vector<32x32xf32>
    %201 = arith.mulf %200, %200 : vector<32x32xf32>
    %cst_62 = arith.constant dense<0.000000e+00> : vector<32xf32>
    %202 = vector.multi_reduction <add>, %201, %cst_62 [1] : vector<32x32xf32> to vector<32xf32>
    %203 = vector.shape_cast %202 : vector<32xf32> to vector<32x1xf32>
    %cst_63 = arith.constant 3.200000e+01 : f32
    %204 = vector.broadcast %cst_63 : f32 to vector<32x1xf32>
    %205 = arith.divf %203, %204 : vector<32x1xf32>
    %206 = vector.broadcast %198 : vector<32x1xf32> to vector<32x32xf32>
    %207 = arith.subf %192, %206 : vector<32x32xf32>
    %cst_64 = arith.constant 9.99999974E-6 : f32
    %208 = vector.broadcast %cst_64 : f32 to vector<32x1xf32>
    %209 = arith.addf %205, %208 : vector<32x1xf32>
    %210 = math.rsqrt %209 : vector<32x1xf32>
    %211 = vector.broadcast %210 : vector<32x1xf32> to vector<32x32xf32>
    %212 = arith.mulf %207, %211 : vector<32x32xf32>
    %213 = vector.broadcast %193 : vector<1x32xf32> to vector<32x32xf32>
    %214 = arith.mulf %212, %213 : vector<32x32xf32>
    %215 = vector.broadcast %194 : vector<1x32xf32> to vector<32x32xf32>
    %216 = arith.addf %214, %215 : vector<32x32xf32>
    %cst_65 = arith.constant 0.000000e+00 : f32
    %217 = vector.broadcast %cst_65 : f32 to vector<32x32xf32>
    %218 = vector.extract_strided_slice %4 {offsets = [24, 0], sizes = [1, 32], strides = [1, 1]} : vector<32x128xf32> to vector<1x32xf32>
    %219 = vector.broadcast %218 : vector<1x32xf32> to vector<32x32xf32>
    %220 = arith.addf %217, %219 : vector<32x32xf32>
    %c552 = arith.constant 552 : index
    %c0_66 = arith.constant 0 : index
    %221 = vector.load %arg1[%c552, %c0_66] : memref<904x128xf32, #tpu.memory_space<vmem>>, vector<32x32xf32>
    %c680 = arith.constant 680 : index
    %c0_67 = arith.constant 0 : index
    %222 = vector.load %arg1[%c680, %c0_67] : memref<904x128xf32, #tpu.memory_space<vmem>>, vector<32x32xf32>
    %cst_68 = arith.constant dense<0.000000e+00> : vector<32x32xf32>
    %223 = tpu.matmul %216, %221, %cst_68 {dimension_numbers = #tpu.dot_dimension_numbers<[1], [0], [0], [1], [0, 0, 1, 1], [], []>} : vector<32x32xf32>, vector<32x32xf32>, vector<32x32xf32> -> vector<32x32xf32>
    %224 = vector.extract_strided_slice %4 {offsets = [20, 0], sizes = [1, 32], strides = [1, 1]} : vector<32x128xf32> to vector<1x32xf32>
    %225 = vector.broadcast %224 : vector<1x32xf32> to vector<32x32xf32>
    %226 = arith.addf %223, %225 : vector<32x32xf32>
    %cst_69 = arith.constant dense<0.000000e+00> : vector<32x32xf32>
    %227 = tpu.matmul %226, %216, %cst_69 {dimension_numbers = #tpu.dot_dimension_numbers<[1], [1], [0], [0], [0, 0, 1, 0], [], []>} : vector<32x32xf32>, vector<32x32xf32>, vector<32x32xf32> -> vector<32x32xf32>
    %228 = arith.addf %227, %66 : vector<32x32xf32>
    %cst_70 = arith.constant dense<0xFF800000> : vector<32xf32>
    %229 = vector.multi_reduction <maximumf>, %228, %cst_70 [1] : vector<32x32xf32> to vector<32xf32>
    %230 = vector.shape_cast %229 : vector<32xf32> to vector<32x1xf32>
    %231 = vector.broadcast %230 : vector<32x1xf32> to vector<32x32xf32>
    %232 = arith.subf %228, %231 : vector<32x32xf32>
    %233 = math.exp %232 : vector<32x32xf32>
    %cst_71 = arith.constant dense<0.000000e+00> : vector<32xf32>
    %234 = vector.multi_reduction <add>, %233, %cst_71 [1] : vector<32x32xf32> to vector<32xf32>
    %235 = vector.shape_cast %234 : vector<32xf32> to vector<32x1xf32>
    %236 = tpu.reciprocal %235 {approx = true} : vector<32x1xf32> -> vector<32x1xf32>
    %237 = vector.broadcast %236 : vector<32x1xf32> to vector<32x32xf32>
    %238 = arith.mulf %233, %237 : vector<32x32xf32>
    %cst_72 = arith.constant dense<0.000000e+00> : vector<32x32xf32>
    %239 = tpu.matmul %216, %222, %cst_72 {dimension_numbers = #tpu.dot_dimension_numbers<[1], [0], [0], [1], [0, 0, 1, 1], [], []>} : vector<32x32xf32>, vector<32x32xf32>, vector<32x32xf32> -> vector<32x32xf32>
    %cst_73 = arith.constant dense<0.000000e+00> : vector<32x32xf32>
    %240 = tpu.matmul %238, %239, %cst_73 {dimension_numbers = #tpu.dot_dimension_numbers<[1], [0], [0], [1], [0, 0, 1, 1], [], []>} : vector<32x32xf32>, vector<32x32xf32>, vector<32x32xf32> -> vector<32x32xf32>
    %241 = arith.addf %220, %240 : vector<32x32xf32>
    %c584 = arith.constant 584 : index
    %c0_74 = arith.constant 0 : index
    %242 = vector.load %arg1[%c584, %c0_74] : memref<904x128xf32, #tpu.memory_space<vmem>>, vector<32x32xf32>
    %c712 = arith.constant 712 : index
    %c0_75 = arith.constant 0 : index
    %243 = vector.load %arg1[%c712, %c0_75] : memref<904x128xf32, #tpu.memory_space<vmem>>, vector<32x32xf32>
    %cst_76 = arith.constant dense<0.000000e+00> : vector<32x32xf32>
    %244 = tpu.matmul %216, %242, %cst_76 {dimension_numbers = #tpu.dot_dimension_numbers<[1], [0], [0], [1], [0, 0, 1, 1], [], []>} : vector<32x32xf32>, vector<32x32xf32>, vector<32x32xf32> -> vector<32x32xf32>
    %245 = vector.extract_strided_slice %4 {offsets = [21, 0], sizes = [1, 32], strides = [1, 1]} : vector<32x128xf32> to vector<1x32xf32>
    %246 = vector.broadcast %245 : vector<1x32xf32> to vector<32x32xf32>
    %247 = arith.addf %244, %246 : vector<32x32xf32>
    %cst_77 = arith.constant dense<0.000000e+00> : vector<32x32xf32>
    %248 = tpu.matmul %247, %216, %cst_77 {dimension_numbers = #tpu.dot_dimension_numbers<[1], [1], [0], [0], [0, 0, 1, 0], [], []>} : vector<32x32xf32>, vector<32x32xf32>, vector<32x32xf32> -> vector<32x32xf32>
    %249 = arith.addf %248, %66 : vector<32x32xf32>
    %cst_78 = arith.constant dense<0xFF800000> : vector<32xf32>
    %250 = vector.multi_reduction <maximumf>, %249, %cst_78 [1] : vector<32x32xf32> to vector<32xf32>
    %251 = vector.shape_cast %250 : vector<32xf32> to vector<32x1xf32>
    %252 = vector.broadcast %251 : vector<32x1xf32> to vector<32x32xf32>
    %253 = arith.subf %249, %252 : vector<32x32xf32>
    %254 = math.exp %253 : vector<32x32xf32>
    %cst_79 = arith.constant dense<0.000000e+00> : vector<32xf32>
    %255 = vector.multi_reduction <add>, %254, %cst_79 [1] : vector<32x32xf32> to vector<32xf32>
    %256 = vector.shape_cast %255 : vector<32xf32> to vector<32x1xf32>
    %257 = tpu.reciprocal %256 {approx = true} : vector<32x1xf32> -> vector<32x1xf32>
    %258 = vector.broadcast %257 : vector<32x1xf32> to vector<32x32xf32>
    %259 = arith.mulf %254, %258 : vector<32x32xf32>
    %cst_80 = arith.constant dense<0.000000e+00> : vector<32x32xf32>
    %260 = tpu.matmul %216, %243, %cst_80 {dimension_numbers = #tpu.dot_dimension_numbers<[1], [0], [0], [1], [0, 0, 1, 1], [], []>} : vector<32x32xf32>, vector<32x32xf32>, vector<32x32xf32> -> vector<32x32xf32>
    %cst_81 = arith.constant dense<0.000000e+00> : vector<32x32xf32>
    %261 = tpu.matmul %259, %260, %cst_81 {dimension_numbers = #tpu.dot_dimension_numbers<[1], [0], [0], [1], [0, 0, 1, 1], [], []>} : vector<32x32xf32>, vector<32x32xf32>, vector<32x32xf32> -> vector<32x32xf32>
    %262 = arith.addf %241, %261 : vector<32x32xf32>
    %c616 = arith.constant 616 : index
    %c0_82 = arith.constant 0 : index
    %263 = vector.load %arg1[%c616, %c0_82] : memref<904x128xf32, #tpu.memory_space<vmem>>, vector<32x32xf32>
    %c744 = arith.constant 744 : index
    %c0_83 = arith.constant 0 : index
    %264 = vector.load %arg1[%c744, %c0_83] : memref<904x128xf32, #tpu.memory_space<vmem>>, vector<32x32xf32>
    %cst_84 = arith.constant dense<0.000000e+00> : vector<32x32xf32>
    %265 = tpu.matmul %216, %263, %cst_84 {dimension_numbers = #tpu.dot_dimension_numbers<[1], [0], [0], [1], [0, 0, 1, 1], [], []>} : vector<32x32xf32>, vector<32x32xf32>, vector<32x32xf32> -> vector<32x32xf32>
    %266 = vector.extract_strided_slice %4 {offsets = [22, 0], sizes = [1, 32], strides = [1, 1]} : vector<32x128xf32> to vector<1x32xf32>
    %267 = vector.broadcast %266 : vector<1x32xf32> to vector<32x32xf32>
    %268 = arith.addf %265, %267 : vector<32x32xf32>
    %cst_85 = arith.constant dense<0.000000e+00> : vector<32x32xf32>
    %269 = tpu.matmul %268, %216, %cst_85 {dimension_numbers = #tpu.dot_dimension_numbers<[1], [1], [0], [0], [0, 0, 1, 0], [], []>} : vector<32x32xf32>, vector<32x32xf32>, vector<32x32xf32> -> vector<32x32xf32>
    %270 = arith.addf %269, %66 : vector<32x32xf32>
    %cst_86 = arith.constant dense<0xFF800000> : vector<32xf32>
    %271 = vector.multi_reduction <maximumf>, %270, %cst_86 [1] : vector<32x32xf32> to vector<32xf32>
    %272 = vector.shape_cast %271 : vector<32xf32> to vector<32x1xf32>
    %273 = vector.broadcast %272 : vector<32x1xf32> to vector<32x32xf32>
    %274 = arith.subf %270, %273 : vector<32x32xf32>
    %275 = math.exp %274 : vector<32x32xf32>
    %cst_87 = arith.constant dense<0.000000e+00> : vector<32xf32>
    %276 = vector.multi_reduction <add>, %275, %cst_87 [1] : vector<32x32xf32> to vector<32xf32>
    %277 = vector.shape_cast %276 : vector<32xf32> to vector<32x1xf32>
    %278 = tpu.reciprocal %277 {approx = true} : vector<32x1xf32> -> vector<32x1xf32>
    %279 = vector.broadcast %278 : vector<32x1xf32> to vector<32x32xf32>
    %280 = arith.mulf %275, %279 : vector<32x32xf32>
    %cst_88 = arith.constant dense<0.000000e+00> : vector<32x32xf32>
    %281 = tpu.matmul %216, %264, %cst_88 {dimension_numbers = #tpu.dot_dimension_numbers<[1], [0], [0], [1], [0, 0, 1, 1], [], []>} : vector<32x32xf32>, vector<32x32xf32>, vector<32x32xf32> -> vector<32x32xf32>
    %cst_89 = arith.constant dense<0.000000e+00> : vector<32x32xf32>
    %282 = tpu.matmul %280, %281, %cst_89 {dimension_numbers = #tpu.dot_dimension_numbers<[1], [0], [0], [1], [0, 0, 1, 1], [], []>} : vector<32x32xf32>, vector<32x32xf32>, vector<32x32xf32> -> vector<32x32xf32>
    %283 = arith.addf %262, %282 : vector<32x32xf32>
    %c648 = arith.constant 648 : index
    %c0_90 = arith.constant 0 : index
    %284 = vector.load %arg1[%c648, %c0_90] : memref<904x128xf32, #tpu.memory_space<vmem>>, vector<32x32xf32>
    %c776 = arith.constant 776 : index
    %c0_91 = arith.constant 0 : index
    %285 = vector.load %arg1[%c776, %c0_91] : memref<904x128xf32, #tpu.memory_space<vmem>>, vector<32x32xf32>
    %cst_92 = arith.constant dense<0.000000e+00> : vector<32x32xf32>
    %286 = tpu.matmul %216, %284, %cst_92 {dimension_numbers = #tpu.dot_dimension_numbers<[1], [0], [0], [1], [0, 0, 1, 1], [], []>} : vector<32x32xf32>, vector<32x32xf32>, vector<32x32xf32> -> vector<32x32xf32>
    %287 = vector.extract_strided_slice %4 {offsets = [23, 0], sizes = [1, 32], strides = [1, 1]} : vector<32x128xf32> to vector<1x32xf32>
    %288 = vector.broadcast %287 : vector<1x32xf32> to vector<32x32xf32>
    %289 = arith.addf %286, %288 : vector<32x32xf32>
    %cst_93 = arith.constant dense<0.000000e+00> : vector<32x32xf32>
    %290 = tpu.matmul %289, %216, %cst_93 {dimension_numbers = #tpu.dot_dimension_numbers<[1], [1], [0], [0], [0, 0, 1, 0], [], []>} : vector<32x32xf32>, vector<32x32xf32>, vector<32x32xf32> -> vector<32x32xf32>
    %291 = arith.addf %290, %66 : vector<32x32xf32>
    %cst_94 = arith.constant dense<0xFF800000> : vector<32xf32>
    %292 = vector.multi_reduction <maximumf>, %291, %cst_94 [1] : vector<32x32xf32> to vector<32xf32>
    %293 = vector.shape_cast %292 : vector<32xf32> to vector<32x1xf32>
    %294 = vector.broadcast %293 : vector<32x1xf32> to vector<32x32xf32>
    %295 = arith.subf %291, %294 : vector<32x32xf32>
    %296 = math.exp %295 : vector<32x32xf32>
    %cst_95 = arith.constant dense<0.000000e+00> : vector<32xf32>
    %297 = vector.multi_reduction <add>, %296, %cst_95 [1] : vector<32x32xf32> to vector<32xf32>
    %298 = vector.shape_cast %297 : vector<32xf32> to vector<32x1xf32>
    %299 = tpu.reciprocal %298 {approx = true} : vector<32x1xf32> -> vector<32x1xf32>
    %300 = vector.broadcast %299 : vector<32x1xf32> to vector<32x32xf32>
    %301 = arith.mulf %296, %300 : vector<32x32xf32>
    %cst_96 = arith.constant dense<0.000000e+00> : vector<32x32xf32>
    %302 = tpu.matmul %216, %285, %cst_96 {dimension_numbers = #tpu.dot_dimension_numbers<[1], [0], [0], [1], [0, 0, 1, 1], [], []>} : vector<32x32xf32>, vector<32x32xf32>, vector<32x32xf32> -> vector<32x32xf32>
    %cst_97 = arith.constant dense<0.000000e+00> : vector<32x32xf32>
    %303 = tpu.matmul %301, %302, %cst_97 {dimension_numbers = #tpu.dot_dimension_numbers<[1], [0], [0], [1], [0, 0, 1, 1], [], []>} : vector<32x32xf32>, vector<32x32xf32>, vector<32x32xf32> -> vector<32x32xf32>
    %304 = arith.addf %283, %303 : vector<32x32xf32>
    %305 = arith.addf %216, %304 : vector<32x32xf32>
    %306 = vector.extract_strided_slice %4 {offsets = [25, 0], sizes = [1, 32], strides = [1, 1]} : vector<32x128xf32> to vector<1x32xf32>
    %307 = vector.extract_strided_slice %4 {offsets = [26, 0], sizes = [1, 32], strides = [1, 1]} : vector<32x128xf32> to vector<1x32xf32>
    %cst_98 = arith.constant dense<0.000000e+00> : vector<32xf32>
    %308 = vector.multi_reduction <add>, %305, %cst_98 [1] : vector<32x32xf32> to vector<32xf32>
    %309 = vector.shape_cast %308 : vector<32xf32> to vector<32x1xf32>
    %cst_99 = arith.constant 3.200000e+01 : f32
    %310 = vector.broadcast %cst_99 : f32 to vector<32x1xf32>
    %311 = arith.divf %309, %310 : vector<32x1xf32>
    %312 = vector.broadcast %311 : vector<32x1xf32> to vector<32x32xf32>
    %313 = arith.subf %305, %312 : vector<32x32xf32>
    %314 = arith.mulf %313, %313 : vector<32x32xf32>
    %cst_100 = arith.constant dense<0.000000e+00> : vector<32xf32>
    %315 = vector.multi_reduction <add>, %314, %cst_100 [1] : vector<32x32xf32> to vector<32xf32>
    %316 = vector.shape_cast %315 : vector<32xf32> to vector<32x1xf32>
    %cst_101 = arith.constant 3.200000e+01 : f32
    %317 = vector.broadcast %cst_101 : f32 to vector<32x1xf32>
    %318 = arith.divf %316, %317 : vector<32x1xf32>
    %319 = vector.broadcast %311 : vector<32x1xf32> to vector<32x32xf32>
    %320 = arith.subf %305, %319 : vector<32x32xf32>
    %cst_102 = arith.constant 9.99999974E-6 : f32
    %321 = vector.broadcast %cst_102 : f32 to vector<32x1xf32>
    %322 = arith.addf %318, %321 : vector<32x1xf32>
    %323 = math.rsqrt %322 : vector<32x1xf32>
    %324 = vector.broadcast %323 : vector<32x1xf32> to vector<32x32xf32>
    %325 = arith.mulf %320, %324 : vector<32x32xf32>
    %326 = vector.broadcast %306 : vector<1x32xf32> to vector<32x32xf32>
    %327 = arith.mulf %325, %326 : vector<32x32xf32>
    %328 = vector.broadcast %307 : vector<1x32xf32> to vector<32x32xf32>
    %329 = arith.addf %327, %328 : vector<32x32xf32>
    %c808 = arith.constant 808 : index
    %c0_103 = arith.constant 0 : index
    %330 = vector.load %arg1[%c808, %c0_103] : memref<904x128xf32, #tpu.memory_space<vmem>>, vector<32x64xf32>
    %c840 = arith.constant 840 : index
    %c0_104 = arith.constant 0 : index
    %331 = vector.load %arg1[%c840, %c0_104] : memref<904x128xf32, #tpu.memory_space<vmem>>, vector<64x32xf32>
    %cst_105 = arith.constant dense<0.000000e+00> : vector<32x64xf32>
    %332 = tpu.matmul %329, %330, %cst_105 {dimension_numbers = #tpu.dot_dimension_numbers<[1], [0], [0], [1], [0, 0, 1, 1], [], []>} : vector<32x32xf32>, vector<32x64xf32>, vector<32x64xf32> -> vector<32x64xf32>
    %333 = vector.extract_strided_slice %4 {offsets = [27, 0], sizes = [1, 64], strides = [1, 1]} : vector<32x128xf32> to vector<1x64xf32>
    %334 = vector.broadcast %333 : vector<1x64xf32> to vector<32x64xf32>
    %335 = arith.addf %332, %334 : vector<32x64xf32>
    %cst_106 = arith.constant 0.000000e+00 : f32
    %336 = vector.broadcast %cst_106 : f32 to vector<32x64xf32>
    %337 = arith.maximumf %335, %336 : vector<32x64xf32>
    %cst_107 = arith.constant dense<0.000000e+00> : vector<32x32xf32>
    %338 = tpu.matmul %337, %331, %cst_107 {dimension_numbers = #tpu.dot_dimension_numbers<[1], [0], [0], [1], [0, 0, 1, 1], [], []>} : vector<32x64xf32>, vector<64x32xf32>, vector<32x32xf32> -> vector<32x32xf32>
    %339 = vector.extract_strided_slice %4 {offsets = [28, 0], sizes = [1, 32], strides = [1, 1]} : vector<32x128xf32> to vector<1x32xf32>
    %340 = vector.broadcast %339 : vector<1x32xf32> to vector<32x32xf32>
    %341 = arith.addf %338, %340 : vector<32x32xf32>
    %342 = arith.addf %329, %341 : vector<32x32xf32>
    %343 = vector.extract_strided_slice %4 {offsets = [29, 0], sizes = [1, 32], strides = [1, 1]} : vector<32x128xf32> to vector<1x32xf32>
    %344 = vector.extract_strided_slice %4 {offsets = [30, 0], sizes = [1, 32], strides = [1, 1]} : vector<32x128xf32> to vector<1x32xf32>
    %cst_108 = arith.constant dense<0.000000e+00> : vector<32xf32>
    %345 = vector.multi_reduction <add>, %342, %cst_108 [1] : vector<32x32xf32> to vector<32xf32>
    %346 = vector.shape_cast %345 : vector<32xf32> to vector<32x1xf32>
    %cst_109 = arith.constant 3.200000e+01 : f32
    %347 = vector.broadcast %cst_109 : f32 to vector<32x1xf32>
    %348 = arith.divf %346, %347 : vector<32x1xf32>
    %349 = vector.broadcast %348 : vector<32x1xf32> to vector<32x32xf32>
    %350 = arith.subf %342, %349 : vector<32x32xf32>
    %351 = arith.mulf %350, %350 : vector<32x32xf32>
    %cst_110 = arith.constant dense<0.000000e+00> : vector<32xf32>
    %352 = vector.multi_reduction <add>, %351, %cst_110 [1] : vector<32x32xf32> to vector<32xf32>
    %353 = vector.shape_cast %352 : vector<32xf32> to vector<32x1xf32>
    %cst_111 = arith.constant 3.200000e+01 : f32
    %354 = vector.broadcast %cst_111 : f32 to vector<32x1xf32>
    %355 = arith.divf %353, %354 : vector<32x1xf32>
    %356 = vector.broadcast %348 : vector<32x1xf32> to vector<32x32xf32>
    %357 = arith.subf %342, %356 : vector<32x32xf32>
    %cst_112 = arith.constant 9.99999974E-6 : f32
    %358 = vector.broadcast %cst_112 : f32 to vector<32x1xf32>
    %359 = arith.addf %355, %358 : vector<32x1xf32>
    %360 = math.rsqrt %359 : vector<32x1xf32>
    %361 = vector.broadcast %360 : vector<32x1xf32> to vector<32x32xf32>
    %362 = arith.mulf %357, %361 : vector<32x32xf32>
    %363 = vector.broadcast %343 : vector<1x32xf32> to vector<32x32xf32>
    %364 = arith.mulf %362, %363 : vector<32x32xf32>
    %365 = vector.broadcast %344 : vector<1x32xf32> to vector<32x32xf32>
    %366 = arith.addf %364, %365 : vector<32x32xf32>
    %367 = vector.extract_strided_slice %366 {offsets = [0, 0], sizes = [16, 32], strides = [1, 1]} : vector<32x32xf32> to vector<16x32xf32>
    %c168 = arith.constant 168 : index
    %c0_113 = arith.constant 0 : index
    %368 = vector.load %arg1[%c168, %c0_113] : memref<904x128xf32, #tpu.memory_space<vmem>>, vector<32x128xf32>
    %cst_114 = arith.constant dense<0.000000e+00> : vector<16x128xf32>
    %369 = tpu.matmul %367, %368, %cst_114 {dimension_numbers = #tpu.dot_dimension_numbers<[1], [0], [0], [1], [0, 0, 1, 1], [], []>} : vector<16x32xf32>, vector<32x128xf32>, vector<16x128xf32> -> vector<16x128xf32>
    %370 = vector.extract_strided_slice %4 {offsets = [4, 0], sizes = [1, 128], strides = [1, 1]} : vector<32x128xf32> to vector<1x128xf32>
    %371 = vector.broadcast %370 : vector<1x128xf32> to vector<16x128xf32>
    %372 = arith.addf %369, %371 : vector<16x128xf32>
    %373 = tpu.iota {dimensions = array<i32: 1>} : vector<16x128xi32>
    %c4_i32 = arith.constant 4 : i32
    %374 = vector.broadcast %c4_i32 : i32 to vector<16x128xi32>
    %375 = arith.cmpi slt, %373, %374 : vector<16x128xi32>
    %c4_i32_115 = arith.constant 4 : i32
    %376 = vector.broadcast %c4_i32_115 : i32 to vector<16x128xi32>
    %377 = arith.cmpi sge, %373, %376 : vector<16x128xi32>
    %c8_i32 = arith.constant 8 : i32
    %378 = vector.broadcast %c8_i32 : i32 to vector<16x128xi32>
    %379 = arith.cmpi slt, %373, %378 : vector<16x128xi32>
    %380 = arith.andi %377, %379 : vector<16x128xi1>
    %c8_i32_116 = arith.constant 8 : i32
    %381 = vector.broadcast %c8_i32_116 : i32 to vector<16x128xi32>
    %382 = arith.cmpi sge, %373, %381 : vector<16x128xi32>
    %c12_i32 = arith.constant 12 : i32
    %383 = vector.broadcast %c12_i32 : i32 to vector<16x128xi32>
    %384 = arith.cmpi slt, %373, %383 : vector<16x128xi32>
    %385 = arith.andi %382, %384 : vector<16x128xi1>
    %cst_117 = arith.constant -1.000000e+30 : f32
    %386 = vector.broadcast %cst_117 : f32 to vector<16x128xf32>
    %387 = arith.select %375, %372, %386 : vector<16x128xi1>, vector<16x128xf32>
    %cst_118 = arith.constant dense<0xFF800000> : vector<16xf32>
    %388 = vector.multi_reduction <maximumf>, %387, %cst_118 [1] : vector<16x128xf32> to vector<16xf32>
    %389 = vector.shape_cast %388 : vector<16xf32> to vector<16x1xf32>
    %390 = vector.broadcast %389 : vector<16x1xf32> to vector<16x128xf32>
    %391 = arith.subf %387, %390 : vector<16x128xf32>
    %392 = math.exp %391 : vector<16x128xf32>
    %cst_119 = arith.constant dense<0.000000e+00> : vector<16xf32>
    %393 = vector.multi_reduction <add>, %392, %cst_119 [1] : vector<16x128xf32> to vector<16xf32>
    %394 = vector.shape_cast %393 : vector<16xf32> to vector<16x1xf32>
    %395 = tpu.reciprocal %394 {approx = true} : vector<16x1xf32> -> vector<16x1xf32>
    %396 = vector.broadcast %395 : vector<16x1xf32> to vector<16x128xf32>
    %397 = arith.mulf %392, %396 : vector<16x128xf32>
    %cst_120 = arith.constant 0.000000e+00 : f32
    %398 = vector.broadcast %cst_120 : f32 to vector<16x128xf32>
    %399 = arith.select %385, %372, %398 : vector<16x128xi1>, vector<16x128xf32>
    %400 = math.exp %399 : vector<16x128xf32>
    %cst_121 = arith.constant 0.000000e+00 : f32
    %401 = vector.broadcast %cst_121 : f32 to vector<16x128xf32>
    %402 = arith.select %380, %372, %401 : vector<16x128xi1>, vector<16x128xf32>
    %403 = arith.addf %397, %402 : vector<16x128xf32>
    %cst_122 = arith.constant 0.000000e+00 : f32
    %404 = vector.broadcast %cst_122 : f32 to vector<16x128xf32>
    %405 = arith.select %385, %400, %404 : vector<16x128xi1>, vector<16x128xf32>
    %406 = arith.addf %403, %405 : vector<16x128xf32>
    %c0_123 = arith.constant 0 : index
    %c0_124 = arith.constant 0 : index
    %407 = vector.load %arg2[%c0_123, %c0_124] : memref<16x128xf32, #tpu.memory_space<vmem>>, vector<16x128xf32>
    tpu.vector_store %arg2[%c0_123, %c0_124], %406 {strides = array<i32>} : memref<16x128xf32, #tpu.memory_space<vmem>>, vector<16x128xf32>,
    return
  }
}

</mosaic_0001>

<bundles_post_ra>
// kernel: deformer_forward.1
= control target key start
LH: loop header
LB: loop body
LE: loop exit
PB: predicated region body
PF: predicated region fallthrough
CT: control target
= control target key end

     0   :  { %7 = vsyncpa [#allocation3], 0  ;;  %s6354_s9 = smov [#allocation2]   ;;  %s7144_s0 = inlined_call_operand.vmem [shape: f32[16,2], index: 0, kind: input, shape index: {}]   ;;  %s7145_s1 = inlined_call_operand.hbm [shape: f32[904,128], index: 1, kind: input, shape index: {}]   ;;  %s7146_s2 = inlined_call_operand.vmem [shape: f32[16,128], index: 2, kind: output, shape index: {}]  }
   0x1   :  { %s15_s10 = sshll.u32 %s6354_s9, 4  ;;  %s6330_s13 = scalar_lea.hbm %s7145_s1, 14464  ;;  %s16_s10 = int_to_ptr.vmem [resolvable:$true] %s15_s10 }
   0x2   :  { %p6331_p0 = scmp.ne.s32.totalorder %s7145_s1, %s6330_s13  ;;  %p6334_p1 = scmp.lt.u32.totalorder %s6330_s13, %s7145_s1 }
   0x4   :  { %p6336_p2 = pnand %p6334_p1, %p6331_p0 }
   0x6   :  { %6339 = shalt.err (!%p6336_p2)
}
   0x7   :  { %s6340_s18 = scalar_lea.vmem %s16_s10, 14464  ;;  %p6345_p4 = scmp.lt.s32.totalorder %s16_s10, %s16_s10 }
   0x8   :  { %p6341_p3 = scmp.ne.s32.totalorder %s16_s10, %s6340_s18  ;;  %p6346_p5 = scmp.lt.s32.totalorder %s6340_s18, %s6340_s18 }
   0xa   :  { %p6347_p6 = por %p6346_p5, %p6345_p4 }
   0xc   :  { %p6348_p7 = pnand %p6347_p6, %p6341_p3 }
   0xe   :  { %6351 = shalt.err (!%p6348_p7)
}
   0xf   :  { %s6355_s19 = smov 128   ;;  %s6356_s20 = smov 8  }
  0x10   :  { %21 = dma.hbm_to_vmem [thread:$0]  %s7145_s1, 14464, %s16_s10, [#allocation3], %s6355_s19, %s6355_s19, %s6356_s20  }
  0x11   :  { %6352 = dma.done.wait [#allocation3], 14464  }
  0x12   :  { %6353 = vsyncadd [#allocation3], 4294952832  ;;  %v6357_v0 = vmov 0   ;;  %v25_v1 = vld [vmem:[%s7144_s0] sm:$0xff]  ;;  %v26_v2 = vld [vmem:[%s7144_s0 + $0x8] sm:$0xff]  ;;  %v6358_v8 = vmov 1   ;;  %v33_v18 = vlaneseq }
  0x13   :  { %6157 = vset.pattern.permute.xlu0 %v6357_v0  ;;  %v6146_v3 = vtrunc.f32 %v25_v1  ;;  %v6148_v4 = vtrunc.f32 %v26_v2  ;;  %v47_v7 = vld [vmem:[#allocation2 + $0x20] sm:$0xff]  ;;  %6158 = vset.pattern.permute.xlu1 %v6358_v8  ;;  %v154_v9 = vld [vmem:[#allocation2 + $0x28] sm:$0xff]  ;;  %v155_v10 = vld [vmem:[#allocation2 + $0x30] sm:$0xff]  ;;  %vm64_vm0 = vcmask 64512   ;;  %v6359_v21 = vmov 0.0  }
  0x14   :  { %5164 = vmatprep.subr.mxu1 %v47_v7  ;;  %50 = vperm.xlu1 %6158, %v25_v1   ;;  %v162_v11 = vld [vmem:[#allocation2 + $0x68] sm:$0xff]  ;;  %v5738_v12 = vpack.c.bf16 %v155_v10, %v154_v9  ;;  %v163_v13 = vld [vmem:[#allocation2 + $0x70] sm:$0xff]  ;;  %v164_v15 = vld [vmem:[#allocation2 + $0x78] sm:$0xff]  ;;  %v6395_v19 = vand.u32 127, %v33_v18  ;;  %v6399_v46 = vshrl.u32 %v33_v18, 7  ;;  %vm174_vm3 = vcmask 523264  }
  0x15   :  { %v6147_v5 = vcvt.f32.s32 %v6146_v3  ;;  %v6149_v6 = vcvt.f32.s32 %v6148_v4  ;;  %5165 = vmatpush3.msra.mxu1 %v47_v7  ;;  %v5754_v14 = vpack.c.bf16 %v163_v13, %v162_v11  ;;  %v165_v16 = vld [vmem:[#allocation2 + $0x80] sm:$0xff]  ;;  %v156_v23 = vld [vmem:[#allocation2 + $0x38] sm:$0xff]  ;;  %v158_v28 = vld [vmem:[#allocation2 + $0x48] sm:$0xff]  ;;  %vm413_vm4 = vcmask 261120  }
  0x16   :  { %5739 = vmatprep.subr.bf16.mxu1 %v5738_v12  ;;  %v5758_v17 = vpack.c.bf16 %v165_v16, %v164_v15  ;;  %v157_v24 = vld [vmem:[#allocation2 + $0x40] sm:$0xff]  ;;  %v159_v29 = vld [vmem:[#allocation2 + $0x50] sm:$0xff]  ;;  %v166_v30 = vld [vmem:[#allocation2 + $0x88] sm:$0xff]  ;;  %v6402_v48 = vsub.s32 1, %v6399_v46  ;;  %v6406_v51 = vsub.s32 0, %v6399_v46  ;;  %v6414_v7 = vsub.s32 2, %v6399_v46 }
  0x17   :  { %36 = vperm.xlu0 %6157, %v6147_v5   ;;  %5755 = vmatprep.subr.bf16.mxu0 %v5754_v14  ;;  %v5742_v26 = vpack.c.bf16 %v157_v24, %v156_v23  ;;  %v5746_v31 = vpack.c.bf16 %v159_v29, %v158_v28  ;;  %v167_v32 = vld [vmem:[#allocation2 + $0x90] sm:$0xff]  ;;  %v160_v34 = vld [vmem:[#allocation2 + $0x58] sm:$0xff]  ;;  %v161_v35 = vld [vmem:[#allocation2 + $0x60] sm:$0xff]  ;;  %vm348_vm6 = vcmp.ge.s32.totalorder %v6395_v19, 16 }
  0x18   :  { %55 = vperm.xlu1 %6158, %v26_v2   ;;  %5757 = vmatpush3.bf16.msra.mxu0 %v5754_v14  ;;  %v5762_v33 = vpack.c.bf16 %v167_v32, %v166_v30  ;;  %v168_v36 = vld [vmem:[#allocation2 + $0x98] sm:$0xff]  ;;  %v5750_v37 = vpack.c.bf16 %v161_v35, %v160_v34  ;;  %v169_v38 = vld [vmem:[#allocation2 + $0xa0] sm:$0xff]  ;;  %v401_v40 = vld [vmem:[#allocation2 + $0xc8] sm:$0xff] }
  0x19   :  { %5759 = vmatprep.subr.bf16.mxu0 %v5758_v17  ;;  %v5766_v39 = vpack.c.bf16 %v169_v38, %v168_v36  ;;  %v402_v41 = vld [vmem:[#allocation2 + $0xd0] sm:$0xff]  ;;  %v405_v43 = vld [vmem:[#allocation2 + $0x148] sm:$0xff]  ;;  %v29_v49 = vld [vmem:[#allocation2] sm:$0xff] }
  0x1a   :  { %v5770_v42 = vpack.c.bf16 %v402_v41, %v401_v40  ;;  %v406_v44 = vld [vmem:[#allocation2 + $0x150] sm:$0xff]  ;;  %v61_v50 = vrot.slane %v29_v49, %v6402_v48  ;;  %v149_v54 = vrot.slane %v29_v49, %v6406_v51  ;;  %v403_v62 = vld [vmem:[#allocation2 + $0xd8] sm:$0xff]  ;;  %v404_v63 = vld [vmem:[#allocation2 + $0xe0] sm:$0xff]  ;;  %v173_v9 = vrot.slane %v29_v49, %v6414_v7 }
  0x1b   :  { %39 = vperm.xlu0 %6157, %v6149_v6   ;;  %v5790_v45 = vpack.c.bf16 %v406_v44, %v405_v43  ;;  %v5774_v3 = vpack.c.bf16 %v404_v63, %v403_v62  ;;  %v407_v4 = vld [vmem:[#allocation2 + $0x158] sm:$0xff]  ;;  %v408_v5 = vld [vmem:[#allocation2 + $0x160] sm:$0xff]  ;;  %vm6431_vm5 = vmpackc.low %vm413_vm4, %vm413_vm4  ;;  %v349_v63 = vsel %vm348_vm6, 1, %v6357_v0 }
  0x1c   :  { %5761 = vmatpush3.bf16.msra.mxu0 %v5758_v17  ;;  %v5794_v6 = vpack.c.bf16 %v408_v5, %v407_v4  ;;  %v838_v23 = vld [vmem:[#allocation2 + $0xe8] sm:$0xff]  ;;  %v839_v24 = vld [vmem:[#allocation2 + $0xf0] sm:$0xff]  ;;  %v840_v30 = vld [vmem:[#allocation2 + $0xf8] sm:$0xff]  ;;  %v339_v4 = vadd.s32 24, %v6399_v46  ;;  %v337_v5 = vadd.s32 8, %v6399_v46 }
  0x1d   :  { %5763 = vmatprep.subr.bf16.mxu0 %v5762_v33  ;;  %v842_v40 = vld [vmem:[#allocation2 + $0x168] sm:$0xff]  ;;  %v843_v41 = vld [vmem:[#allocation2 + $0x170] sm:$0xff] }
  0x1f   :  { %6159 = vset.pattern.permute.xlu0 %v6358_v8  ;;  %v6417_v8 = vsub.s32 3, %v6399_v46 }
  0x20   :  { %5765 = vmatpush3.bf16.msra.mxu0 %v5762_v33 }
  0x21   :  { %5767 = vmatprep.subr.bf16.mxu0 %v5766_v39  ;;  %v259_v10 = vrot.slane %v29_v49, %v6417_v8  ;;  %v5826_v49 = vpack.c.bf16 %v843_v41, %v842_v40 }
  0x24   :  { %5769 = vmatpush3.bf16.msra.mxu0 %v5766_v39 }
  0x25   :  { %5771 = vmatprep.subr.bf16.mxu0 %v5770_v42 }
  0x93   :  { %v51_v47 = vpop.permute.xlu1 %50 }
  0x94   :  { %v62_v55 = vmul.f32 %v61_v50, %v51_v47 }
  0x96   :  { %v37_v20 = vpop.permute.xlu0 %36 }
  0x97   :  { %vm41_vm1 = vcmp.eq.s32.totalorder %v37_v20, %v6395_v19  ;;  %v56_v52 = vpop.permute.xlu1 %55 }
  0x98   :  { %v4651_v22 = vsel %vm41_vm1, 1.0, %v6359_v21  ;;  %v63_v53 = vmul.f32 %v61_v50, %v56_v52  ;;  %v844_v50 = vld [vmem:[#allocation2 + $0x178] sm:$0xff]  ;;  %v845_v52 = vld [vmem:[#allocation2 + $0x180] sm:$0xff] }
  0x99   :  { %5166 = vmatprep.mubr.msk.f32.mxu1 %vm64_vm0, %v4651_v22 }
  0x9a   :  { %v40_v25 = vpop.permute.xlu0 %39 }
  0x9b   :  { %vm42_vm2 = vcmp.eq.s32.totalorder %v40_v25, %v6395_v19  ;;  %v5806_v25 = vpack.c.bf16 %v839_v24, %v838_v23  ;;  %v361_v24 = vshra.s32 %v337_v5, 3 }
  0x9c   :  { %v4652_v27 = vsel %vm42_vm2, 1.0, %v6359_v21 }
  0x9d   :  { %5167 = vmatmul.mubr.msk.f32.vlgmr.msra.gmra.mrb[0].mxu1 %vm64_vm0, %v4652_v27 }
  0x9e   :  { %5741 = vmatpush3.bf16.msra.mxu1 %v5738_v12 }
  0x9f   :  { %5743 = vmatprep.subr.bf16.mxu1 %v5742_v26 }
  0xa2   :  { %5745 = vmatpush3.bf16.msra.mxu1 %v5742_v26  ;;  %v6471_v26 = vld [vmem:[#allocation2 + $0x8] sm:$0xff] }
  0xa3   :  { %5747 = vmatprep.subr.bf16.mxu1 %v5746_v31  ;;  %v412_v27 = vrot.slane %v6471_v26, %v6406_v51 }
  0xa6   :  { %5749 = vmatpush3.bf16.msra.mxu1 %v5746_v31  ;;  %v841_v31 = vld [vmem:[#allocation2 + $0x100] sm:$0xff] }
  0xa7   :  { %5751 = vmatprep.subr.bf16.mxu1 %v5750_v37 }
  0xaa   :  { %5753 = vmatpush3.bf16.msra.mxu1 %v5750_v37  ;;  %v5810_v37 = vpack.c.bf16 %v841_v31, %v840_v30 }
  0xab   :  { %5791 = vmatprep.subr.bf16.mxu1 %v5790_v45 }
 0x170   :  { %v5168_v56 = vpop.f32.mrb[0].mxu1 }
 0x171   :  { %v143_v57 = vadd.f32 %v5168_v56, %v63_v53  ;;  %v137_v58 = vpop.f32.mrb[1].mxu1  ;;  %v5830_v53 = vpack.c.bf16 %v845_v52, %v844_v50 }
 0x172   :  { %v138_v59 = vadd.f32 %v137_v58, %v62_v55  ;;  %v1263_v55 = vld [vmem:[#allocation2 + $0x110] sm:$0xff]  ;;  %v1265_v58 = vld [vmem:[#allocation2 + $0x120] sm:$0xff] }
 0x173   :  { %v151_v60 = vadd.f32 %v149_v54, %v143_v57  ;;  %v1264_v57 = vld [vmem:[#allocation2 + $0x118] sm:$0xff] }
 0x174   :  { %v150_v61 = vadd.f32 %v149_v54, %v138_v59  ;;  %v1262_v54 = vld [vmem:[#allocation2 + $0x108] sm:$0xff]  ;;  %v5846_v59 = vpack.c.bf16 %v1265_v58, %v1264_v57 }
 0x175   :  { %v153_v2 = vmax.f32 %v151_v60, 0.0  ;;  %v5842_v56 = vpack.c.bf16 %v1263_v55, %v1262_v54  ;;  %v1686_v60 = vld [vmem:[#allocation2 + $0x128] sm:$0xff] }
 0x176   :  { %v152_v1 = vmax.f32 %v150_v61, 0.0  ;;  %v1687_v61 = vld [vmem:[#allocation2 + $0x130] sm:$0xff] }
 0x177   :  { %v6518_v62 = vpack.c.bf16 %v1687_v61, %v1686_v60 }
 0x178   :  { %5185 = vmatprep.mubr.msk.f32.mxu1 %vm174_vm3, %v152_v1  ;;  %5204 = vmatprep.mubr.msk.f32.mxu0 %vm174_vm3, %v152_v1  ;;  %v358_v1 = vmul.u32 16, %v349_v63 }
 0x179   :  { %5186 = vmatmul.mubr.msk.f32.vlgmr.msra.gmra.mrb[2].mxu1 %vm174_vm3, %v153_v2  ;;  %5205 = vmatmul.mubr.msk.f32.vlgmr.msra.gmra.mrb[0].mxu0 %vm174_vm3, %v153_v2 }
 0x17a   :  { %5773 = vmatpush3.bf16.msra.mxu0 %v5770_v42  ;;  %5793 = vmatpush3.bf16.msra.mxu1 %v5790_v45  ;;  %v359_v2 = vsub.s32 %v6395_v19, %v358_v1 }
 0x17b   :  { %5775 = vmatprep.subr.bf16.mxu0 %v5774_v3  ;;  %5795 = vmatprep.subr.bf16.mxu1 %v5794_v6 }
 0x17c   :  { %v364_v0 = vshra.s32 %v359_v2, 3 }
 0x17e   :  { %5777 = vmatpush3.bf16.msra.mxu0 %v5774_v3  ;;  %5797 = vmatpush3.bf16.msra.mxu1 %v5794_v6  ;;  %v338_v3 = vadd.s32 16, %v6399_v46  ;;  %v369_v6 = vand.u32 7, %v359_v2  ;;  %vm381_vm7 = vcmp.eq.s32.totalorder %v361_v24, %v364_v0  ;;  %v1691_v24 = vld [vmem:[#allocation2 + $0x1b0] sm:$0xff] }
 0x24c   :  { %v5187_v11 = vpop.f32.mrb[2].mxu1  ;;  %v5206_v12 = vpop.f32.mrb[0].mxu0 }
 0x24d   :  { %v6421_v13 = vadd.f32 %v5187_v11, %v173_v9  ;;  %v247_v14 = vpop.f32.mrb[3].mxu1  ;;  %v326_v15 = vpop.f32.mrb[1].mxu0  ;;  %v6423_v16 = vadd.f32 %v5206_v12, %v259_v10  ;;  %v366_v11 = vand.u32 7, %v337_v5  ;;  %v378_v12 = vmul.u32 2, %v369_v6  ;;  %v1688_v6 = vld [vmem:[#allocation2 + $0x138] sm:$0xff] }
 0x24e   :  { %v6425_v17 = vadd.f32 %v247_v14, %v173_v9  ;;  %v6427_v18 = vadd.f32 %v326_v15, %v259_v10  ;;  %v4659_v9 = vadd.s32 4294967280, %v338_v3  ;;  %v4660_v10 = vadd.s32 4294967280, %v339_v4 }
 0x24f   :  { %v365_v14 = vand.u32 7, %v6399_v46  ;;  %v1273_v4 = vrot.slane %v6471_v26, %v6414_v7 }
 0x250   :  { %5215 = vmatprep.mubr.msk.f32.mxu0 %vm413_vm4, %v6425_v17  ;;  %5243 = vmatprep.mubr.msk.f32.mxu1 %vm413_vm4, %v6425_v17  ;;  %v6441_v21 = vpack.c.bf16 %v6421_v13, %v6425_v17  ;;  %v6454_v22 = vpack.c.bf16 %v6423_v16, %v6427_v18  ;;  %v367_v15 = vand.u32 7, %v4659_v9  ;;  %v368_v23 = vand.u32 7, %v4660_v10 }
 0x251   :  { %5216 = vmatmul.mubr.msk.f32.vlgmr.msra.gmra.mrb[2].mxu0 %vm413_vm4, %v6421_v13  ;;  %5244 = vmatmul.mubr.msk.f32.vlgmr.msra.gmra.mrb[4].mxu1 %vm413_vm4, %v6421_v13 }
 0x252   :  { %5218 = vmatprep.mubr.msk.f32.mxu0 %vm413_vm4, %v6427_v18  ;;  %5780 = vmatprep.subr.msk.bf16.mxu0 %vm6431_vm5, %v6441_v21  ;;  %v372_v30 = vmul.u32 2, %v367_v15  ;;  %v373_v31 = vmul.u32 2, %v368_v23  ;;  %v1690_v23 = vld [vmem:[#allocation2 + $0x1a8] sm:$0xff] }
 0x253   :  { %5246 = vmatprep.mubr.msk.f32.mxu1 %vm413_vm4, %v6427_v18  ;;  %5783 = vmatpush3.bf16.xpose.msk.msra.mxu0 %vm6431_vm5, %v6441_v21 }
 0x254   :  { %5786 = vmatprep.subr.msk.bf16.mxu0 %vm6431_vm5, %v6454_v22 }
 0x255   :  { %5219 = vmatmul.mubr.msk.f32.gmra.mrb[4].mxu0 %vm413_vm4, %v6423_v16  ;;  %5247 = vmatmul.mubr.msk.f32.gmra.mrb[6].mxu1 %vm413_vm4, %v6423_v16 }
 0x25b   :  { %5789 = vmatpush3.bf16.xpose.msk.msra.mxu0 %vm6431_vm5, %v6454_v22 }
 0x25c   :  { %5807 = vmatprep.subr.bf16.mxu0 %v5806_v25 }
 0x324   :  { %v5217_v28 = vpop.f32.mrb[2].mxu0  ;;  %v5245_v29 = vpop.f32.mrb[4].mxu1 }
 0x325   :  { %v492_v32 = vpop.f32.mrb[3].mxu0  ;;  %v718_v33 = vpop.f32.mrb[5].mxu1  ;;  %v498_v36 = vadd.f32 %v5217_v28, %v412_v27  ;;  %v360_v28 = vshra.s32 %v6399_v46, 3 }
 0x326   :  { %v493_v34 = vadd.f32 %v492_v32, %v412_v27  ;;  %v5798_v35 = vpack.c.bf16 %v5245_v29, %v718_v33  ;;  %v370_v29 = vmul.u32 2, %v365_v14  ;;  %v362_v32 = vshra.s32 %v4659_v9, 3  ;;  %v1689_v9 = vld [vmem:[#allocation2 + $0x140] sm:$0xff] }
 0x327   :  { %v376_v33 = vadd.s32 1, %v372_v30  ;;  %vm380_vm9 = vcmp.eq.s32.totalorder %v360_v28, %v364_v0  ;;  %v5882_v14 = vpack.c.bf16 %v1689_v9, %v1688_v6  ;;  %v5898_v28 = vpack.c.bf16 %v1691_v24, %v1690_v23  ;;  %v1693_v30 = vld [vmem:[#allocation2 + $0x1c0] sm:$0xff] }
 0x328   :  { %v5220_v38 = vpop.f32.mrb[4].mxu0  ;;  %5229 = vmatprep.mubr.msk.f32.mxu0 %vm413_vm4, %v493_v34  ;;  %v5248_v39 = vpop.f32.mrb[6].mxu1  ;;  %5799 = vmatprep.subr.bf16.mxu1 %v5798_v35  ;;  %v363_v34 = vshra.s32 %v4660_v10, 3  ;;  %vm382_vm13 = vcmp.eq.s32.totalorder %v362_v32, %v364_v0 }
 0x329   :  { %v502_v42 = vpop.f32.mrb[5].mxu0  ;;  %5230 = vmatmul.mubr.msk.f32.vlgmr.msra.gmra.mrb[6].mxu0 %vm413_vm4, %v498_v36  ;;  %v728_v43 = vpop.f32.mrb[7].mxu1  ;;  %5801 = vmatpush3.bf16.msra.mxu1 %v5798_v35  ;;  %v508_v47 = vadd.f32 %v5220_v38, %v412_v27  ;;  %v377_v35 = vadd.s32 1, %v373_v31  ;;  %v6360_v36 = vmov -1e+30  }
 0x32a   :  { %v503_v44 = vadd.f32 %v502_v42, %v412_v27  ;;  %v5802_v45 = vpack.c.bf16 %v5248_v39, %v728_v43  ;;  %5809 = vmatpush3.bf16.msra.mxu0 %v5806_v25  ;;  %v371_v25 = vmul.u32 2, %v366_v11  ;;  %v379_v27 = vadd.s32 %v378_v12, %v349_v63 }
 0x32b   :  { %5811 = vmatprep.subr.bf16.mxu0 %v5810_v37  ;;  %vm383_vm15 = vcmp.eq.s32.totalorder %v363_v34, %v364_v0 }
 0x32c   :  { %5232 = vmatprep.mubr.msk.f32.mxu0 %vm413_vm4, %v503_v44  ;;  %5803 = vmatprep.subr.bf16.mxu1 %v5802_v45  ;;  %vm385_vm8 = vcmp.le.s32.totalorder %v379_v27, %v371_v25  ;;  %vm384_vm10 = vcmp.le.s32.totalorder %v379_v27, %v370_v29  ;;  %vm386_vm14 = vcmp.le.s32.totalorder %v379_v27, %v376_v33  ;;  %v1692_v29 = vld [vmem:[#allocation2 + $0x1b8] sm:$0xff] }
 0x32d   :  { %5233 = vmatmul.mubr.msk.f32.gmra.mrb[8].mxu0 %vm413_vm4, %v508_v47  ;;  %5805 = vmatpush3.bf16.msra.mxu1 %v5802_v45  ;;  %vm389_vm11 = vmand %vm381_vm7, %vm385_vm8  ;;  %vm387_vm0 = vcmp.le.s32.totalorder %v379_v27, %v377_v35  ;;  %v5902_v31 = vpack.c.bf16 %v1693_v30, %v1692_v29  ;;  %vm4604_vm7 = vcmp.ge.s32.totalorder %v6395_v19, 4  ;;  %vm4605_vm8 = vcmp.lt.s32.totalorder %v6395_v19, 8 }
 0x32e   :  { %5813 = vmatpush3.bf16.msra.mxu0 %v5810_v37  ;;  %5271 = vmatprep.mubr.msk.f32.mxu0 %vm413_vm4, %v6425_v17  ;;  %vm388_vm12 = vmand %vm380_vm9, %vm384_vm10  ;;  %v6529_v37 = vsel %vm389_vm11, 0.0, %v6360_v36 }
 0x32f   :  { %5816 = vmatprep.subr.msk.bf16.mxu1 %vm6431_vm5, %v6441_v21  ;;  %5827 = vmatprep.subr.bf16.mxu0 %v5826_v49  ;;  %v6531_v38 = vsel %vm388_vm12, 0.0, %v6360_v36  ;;  %vm390_vm1 = vmand %vm382_vm13, %vm386_vm14 }
 0x330   :  { %vm391_vm2 = vmand %vm383_vm15, %vm387_vm0  ;;  %v6539_v43 = vsel %vm390_vm1, 0.0, %v6360_v36 }
 0x331   :  { %5272 = vmatmul.mubr.msk.f32.vlgmr.msra.gmra.mrb[10].mxu0 %vm413_vm4, %v6421_v13  ;;  %vm4606_vm9 = vmand %vm4604_vm7, %vm4605_vm8 }
 0x332   :  { %5829 = vmatpush3.bf16.msra.mxu0 %v5826_v49  ;;  %5274 = vmatprep.mubr.msk.f32.mxu0 %vm413_vm4, %v6427_v18  ;;  %v6545_v49 = vsel %vm391_vm2, 0.0, %v6360_v36 }
 0x333   :  { %5831 = vmatprep.subr.bf16.mxu0 %v5830_v53 }
 0x335   :  { %5275 = vmatmul.mubr.msk.f32.gmra.mrb[12].mxu0 %vm413_vm4, %v6423_v16 }
 0x336   :  { %5833 = vmatpush3.bf16.msra.mxu0 %v5830_v53  ;;  %5299 = vmatprep.mubr.msk.f32.mxu0 %vm413_vm4, %v6425_v17 }
 0x337   :  { %5843 = vmatprep.subr.bf16.mxu0 %v5842_v56 }
 0x339   :  { %5300 = vmatmul.mubr.msk.f32.vlgmr.msra.gmra.mrb[14].mxu0 %vm413_vm4, %v6421_v13 }
 0x33a   :  { %5845 = vmatpush3.bf16.msra.mxu0 %v5842_v56  ;;  %5302 = vmatprep.mubr.msk.f32.mxu0 %vm413_vm4, %v6427_v18 }
 0x33b   :  { %5847 = vmatprep.subr.bf16.mxu0 %v5846_v59 }
 0x33d   :  { %5303 = vmatmul.mubr.msk.f32.gmra.mrb[16].mxu0 %vm413_vm4, %v6423_v16 }
 0x33e   :  { %5849 = vmatpush3.bf16.msra.mxu0 %v5846_v59  ;;  %5327 = vmatprep.mubr.msk.f32.mxu0 %vm413_vm4, %v6425_v17 }
 0x33f   :  { %5852 = vmatprep.subr.msk.bf16.mxu0 %vm6431_vm5, %v6441_v21 }
 0x341   :  { %5328 = vmatmul.mubr.msk.f32.vlgmr.msra.gmra.mrb[18].mxu0 %vm413_vm4, %v6421_v13 }
 0x342   :  { %5330 = vmatprep.mubr.msk.f32.mxu0 %vm413_vm4, %v6427_v18 }
 0x345   :  { %5331 = vmatmul.mubr.msk.f32.gmra.mrb[20].mxu0 %vm413_vm4, %v6423_v16 }
 0x347   :  { %5855 = vmatpush3.bf16.xpose.msk.msra.mxu0 %vm6431_vm5, %v6441_v21 }
 0x348   :  { %5858 = vmatprep.subr.msk.bf16.mxu0 %vm6431_vm5, %v6454_v22 }
 0x34f   :  { %5861 = vmatpush3.bf16.xpose.msk.msra.mxu0 %vm6431_vm5, %v6454_v22 }
 0x350   :  { %5879 = vmatprep.subr.bf16.mxu0 %v6518_v62 }
 0x3fc   :  { %v5231_v39 = vpop.f32.mrb[6].mxu0 }
 0x3fd   :  { %v6534_v40 = vadd.f32 %v5231_v39, %v6529_v37  ;;  %v589_v41 = vpop.f32.mrb[7].mxu0 }
 0x3fe   :  { %v6537_v42 = vadd.f32 %v589_v41, %v6531_v38 }
 0x3ff   :  { %v611_v44 = vsel %vm413_vm4, %v6534_v40, -inf }
 0x400   :  { %612 = vmax.xlane.f32.xlu1 %v611_v44  ;;  %v5234_v45 = vpop.f32.mrb[8].mxu0  ;;  %v608_v47 = vsel %vm413_vm4, %v6537_v42, -inf }
 0x401   :  { %v599_v50 = vpop.f32.mrb[9].mxu0  ;;  %609 = vmax.xlane.f32.xlu0 %v608_v47  ;;  %v6551_v53 = vadd.f32 %v5234_v45, %v6545_v49 }
 0x402   :  { %v6548_v52 = vadd.f32 %v599_v50, %v6539_v43 }
 0x403   :  { %v617_v58 = vsel %vm413_vm4, %v6551_v53, -inf }
 0x404   :  { %v6553_v54 = vpop.f32.mrb[10].mxu0  ;;  %v614_v55 = vsel %vm413_vm4, %v6548_v52, -inf }
 0x405   :  { %v6557_v56 = vpop.f32.mrb[11].mxu0  ;;  %615 = vmax.xlane.f32.xlu0 %v614_v55 }
 0x408   :  { %v6559_v57 = vpop.f32.mrb[12].mxu0 }
 0x409   :  { %v6563_v59 = vpop.f32.mrb[13].mxu0  ;;  %618 = vmax.xlane.f32.xlu0 %v617_v58 }
 0x40c   :  { %v5301_v60 = vpop.f32.mrb[14].mxu0 }
 0x40d   :  { %v1142_v61 = vpop.f32.mrb[15].mxu0 }
 0x40e   :  { %v6565_v63 = vpack.c.bf16 %v5301_v60, %v1142_v61 }
 0x410   :  { %v5304_v1 = vpop.f32.mrb[16].mxu0 }
 0x411   :  { %v1152_v2 = vpop.f32.mrb[17].mxu0 }
 0x412   :  { %v6567_v3 = vpack.c.bf16 %v5304_v1, %v1152_v2 }
 0x414   :  { %v5329_v5 = vpop.f32.mrb[18].mxu0 }
 0x415   :  { %v1340_v10 = vpop.f32.mrb[19].mxu0  ;;  %v1346_v12 = vadd.f32 %v5329_v5, %v1273_v4 }
 0x416   :  { %v1341_v11 = vadd.f32 %v1340_v10, %v1273_v4 }
 0x418   :  { %v5332_v15 = vpop.f32.mrb[20].mxu0  ;;  %5341 = vmatprep.mubr.msk.f32.mxu0 %vm413_vm4, %v1341_v11 }
 0x419   :  { %v1350_v0 = vpop.f32.mrb[21].mxu0  ;;  %5342 = vmatmul.mubr.msk.f32.vlgmr.msra.gmra.mrb[22].mxu0 %vm413_vm4, %v1346_v12  ;;  %v1356_v27 = vadd.f32 %v5332_v15, %v1273_v4 }
 0x41a   :  { %v1351_v25 = vadd.f32 %v1350_v0, %v1273_v4  ;;  %5881 = vmatpush3.bf16.msra.mxu0 %v6518_v62 }
 0x41b   :  { %5883 = vmatprep.subr.bf16.mxu0 %v5882_v14 }
 0x41c   :  { %5344 = vmatprep.mubr.msk.f32.mxu0 %vm413_vm4, %v1351_v25 }
 0x41d   :  { %5345 = vmatmul.mubr.msk.f32.gmra.mrb[24].mxu0 %vm413_vm4, %v1356_v27 }
 0x41e   :  { %5885 = vmatpush3.bf16.msra.mxu0 %v5882_v14  ;;  %5383 = vmatprep.mubr.msk.f32.mxu0 %vm413_vm4, %v6425_v17 }
 0x41f   :  { %5899 = vmatprep.subr.bf16.mxu0 %v5898_v28 }
 0x421   :  { %5384 = vmatmul.mubr.msk.f32.vlgmr.msra.gmra.mrb[26].mxu0 %vm413_vm4, %v6421_v13 }
 0x422   :  { %5386 = vmatprep.mubr.msk.f32.mxu0 %vm413_vm4, %v6427_v18  ;;  %5901 = vmatpush3.bf16.msra.mxu0 %v5898_v28 }
 0x423   :  { %5903 = vmatprep.subr.bf16.mxu0 %v5902_v31 }
 0x425   :  { %5387 = vmatmul.mubr.msk.f32.gmra.mrb[28].mxu0 %vm413_vm4, %v6423_v16 }
 0x426   :  { %5905 = vmatpush3.bf16.msra.mxu0 %v5902_v31  ;;  %5411 = vmatprep.mubr.msk.f32.mxu0 %vm413_vm4, %v6425_v17 }
 0x429   :  { %5412 = vmatmul.mubr.msk.f32.vlgmr.msra.gmra.mrb[30].mxu0 %vm413_vm4, %v6421_v13 }
 0x42a   :  { %5414 = vmatprep.mubr.msk.f32.mxu0 %vm413_vm4, %v6427_v18 }
 0x42d   :  { %5415 = vmatmul.mubr.msk.f32.gmra.mrb[32].mxu0 %vm413_vm4, %v6423_v16 }
 0x48d   :  { %v613_v62 = vpop.xlane.xlu1 %612 }
 0x48e   :  { %v621_v32 = vsub.f32 %v6534_v40, %v613_v62  ;;  %v610_v33 = vpop.xlane.xlu0 %609 }
 0x48f   :  { %v620_v34 = vsub.f32 %v6537_v42, %v610_v33 }
 0x490   :  { %v626_v35 = vmul.f32 1.442695, %v621_v32 }
 0x491   :  { %v624_v36 = vmul.f32 1.442695, %v620_v34 }
 0x492   :  { %6160 = vpow2.f32 %v626_v35  ;;  %v616_v39 = vpop.xlane.xlu0 %615  ;;  %v849_v35 = vrot.slane %v6471_v26, %v6402_v48 }
 0x493   :  { %6162 = vpow2.f32 %v624_v36  ;;  %v622_v41 = vsub.f32 %v6548_v52, %v616_v39 }
 0x495   :  { %v628_v44 = vmul.f32 1.442695, %v622_v41  ;;  %v917_v41 = vadd.f32 %v6557_v56, %v849_v35  ;;  %v932_v56 = vadd.f32 %v6559_v57, %v849_v35 }
 0x496   :  { %v619_v45 = vpop.xlane.xlu0 %618 }
 0x497   :  { %6164 = vpow2.f32 %v628_v44  ;;  %v623_v47 = vsub.f32 %v6551_v53, %v619_v45  ;;  %v922_v44 = vadd.f32 %v6553_v54, %v849_v35  ;;  %v927_v45 = vadd.f32 %v6563_v59, %v849_v35 }
 0x499   :  { %v630_v50 = vmul.f32 1.442695, %v623_v47 }
 0x49b   :  { %6166 = vpow2.f32 %v630_v50 }
 0x49c   :  { %v6161_v55 = vpop.eup %6160 }
 0x49d   :  { %v6163_v58 = vpop.eup %6162  ;;  %v635_v40 = vsel %vm413_vm4, %v6161_v55, 0.0 }
 0x49e   :  { %636 = vadd.xlane.f32.xlu0 %v635_v40  ;;  %v632_v42 = vsel %vm413_vm4, %v6163_v58, 0.0 }
 0x49f   :  { %633 = vadd.xlane.f32.xlu1 %v632_v42 }
 0x4a1   :  { %v6165_v60 = vpop.eup %6164 }
 0x4a2   :  { %v638_v61 = vsel %vm413_vm4, %v6165_v60, 0.0 }
 0x4a3   :  { %639 = vadd.xlane.f32.xlu1 %v638_v61 }
 0x4a5   :  { %v6167_v52 = vpop.eup %6166 }
 0x4a6   :  { %v641_v1 = vsel %vm413_vm4, %v6167_v52, 0.0 }
 0x4a7   :  { %642 = vadd.xlane.f32.xlu0 %v641_v1 }
 0x4ec   :  { %v6600_v2 = vpop.f32.mrb[22].mxu0 }
 0x4ed   :  { %v6602_v53 = vpop.f32.mrb[23].mxu0 }
 0x4f0   :  { %v6604_v4 = vpop.f32.mrb[24].mxu0 }
 0x4f1   :  { %v6606_v5 = vpop.f32.mrb[25].mxu0 }
 0x4f4   :  { %v6608_v6 = vpop.f32.mrb[26].mxu0 }
 0x4f5   :  { %v6610_v9 = vpop.f32.mrb[27].mxu0 }
 0x4f8   :  { %v6612_v10 = vpop.f32.mrb[28].mxu0 }
 0x4f9   :  { %v6614_v11 = vpop.f32.mrb[29].mxu0 }
 0x4fc   :  { %v5413_v12 = vpop.f32.mrb[30].mxu0 }
 0x4fd   :  { %v1990_v14 = vpop.f32.mrb[31].mxu0 }
 0x4fe   :  { %v6616_v15 = vpack.c.bf16 %v5413_v12, %v1990_v14 }
 0x500   :  { %v5416_v23 = vpop.f32.mrb[32].mxu0 }
 0x501   :  { %v2000_v24 = vpop.f32.mrb[33].mxu0 }
 0x502   :  { %v6618_v0 = vpack.c.bf16 %v5416_v23, %v2000_v24 }
 0x52b   :  { %v637_v25 = vpop.xlane.xlu0 %636 }
 0x52c   :  { %6168 = vrcp.f32 %v637_v25  ;;  %v634_v27 = vpop.xlane.xlu1 %633 }
 0x52d   :  { %6170 = vrcp.f32 %v634_v27 }
 0x530   :  { %v640_v28 = vpop.xlane.xlu1 %639 }
 0x531   :  { %6172 = vrcp.f32 %v640_v28 }
 0x534   :  { %v643_v29 = vpop.xlane.xlu0 %642 }
 0x535   :  { %6174 = vrcp.f32 %v643_v29 }
 0x536   :  { %v6169_v30 = vpop.eup %6168 }
 0x537   :  { %v6171_v31 = vpop.eup %6170  ;;  %v649_v32 = vmul.f32 %v6169_v30, %v6161_v55 }
 0x538   :  { %v648_v62 = vmul.f32 %v6171_v31, %v6163_v58 }
 0x53a   :  { %5257 = vmatprep.mubr.msk.f32.mxu1 %vm413_vm4, %v648_v62 }
 0x53b   :  { %v6173_v33 = vpop.eup %6172  ;;  %5258 = vmatmul.mubr.msk.f32.vlgmr.msra.gmra.mrb[8].mxu1 %vm413_vm4, %v649_v32 }
 0x53c   :  { %5819 = vmatpush3.bf16.xpose.msk.msra.mxu1 %vm6431_vm5, %v6441_v21  ;;  %v650_v34 = vmul.f32 %v6173_v33, %v6165_v60 }
 0x53d   :  { %5822 = vmatprep.subr.msk.bf16.mxu1 %vm6431_vm5, %v6454_v22 }
 0x53e   :  { %5260 = vmatprep.mubr.msk.f32.mxu1 %vm413_vm4, %v650_v34 }
 0x53f   :  { %v6175_v36 = vpop.eup %6174 }
 0x540   :  { %v651_v39 = vmul.f32 %v6175_v36, %v6167_v52  ;;  %v1443_v36 = vadd.f32 %v6600_v2, %v6529_v37 }
 0x542   :  { %5261 = vmatmul.mubr.msk.f32.gmra.mrb[10].mxu1 %vm413_vm4, %v651_v39 }
 0x543   :  { %5285 = vmatprep.mubr.msk.f32.mxu1 %vm413_vm4, %v917_v41  ;;  %v1438_v41 = vadd.f32 %v6602_v53, %v6531_v38 }
 0x544   :  { %5825 = vmatpush3.bf16.xpose.msk.msra.mxu1 %vm6431_vm5, %v6454_v22 }
 0x545   :  { %5835 = vmatprep.subr.bf16.mxu1 %v6565_v63  ;;  %v1456_v2 = vsel %vm413_vm4, %v1438_v41, -inf }
 0x54b   :  { %5286 = vmatmul.mubr.msk.f32.vlgmr.msra.gmra.mrb[12].mxu1 %vm413_vm4, %v922_v44 }
 0x54c   :  { %5288 = vmatprep.mubr.msk.f32.mxu1 %vm413_vm4, %v927_v45  ;;  %5837 = vmatpush3.bf16.msra.mxu1 %v6565_v63  ;;  %v1453_v45 = vadd.f32 %v6604_v4, %v6545_v49 }
 0x54d   :  { %5839 = vmatprep.subr.bf16.mxu1 %v6567_v3 }
 0x54f   :  { %5289 = vmatmul.mubr.msk.f32.gmra.mrb[14].mxu1 %vm413_vm4, %v932_v56  ;;  %v1459_v56 = vsel %vm413_vm4, %v1443_v36, -inf }
 0x550   :  { %5841 = vmatpush3.bf16.msra.mxu1 %v6567_v3 }
 0x61e   :  { %v5287_v47 = vpop.f32.mrb[12].mxu1 }
 0x61f   :  { %v1019_v50 = vadd.f32 %v5287_v47, %v6529_v37  ;;  %v1013_v54 = vpop.f32.mrb[13].mxu1  ;;  %v1448_v47 = vadd.f32 %v6606_v5, %v6539_v43 }
 0x620   :  { %v1014_v59 = vadd.f32 %v1013_v54, %v6531_v38  ;;  %v1266_v54 = vld [vmem:[#allocation2 + $0x188] sm:$0xff] }
 0x621   :  { %v1035_v55 = vsel %vm413_vm4, %v1019_v50, -inf  ;;  %v1462_v53 = vsel %vm413_vm4, %v1448_v47, -inf }
 0x622   :  { %1036 = vmax.xlane.f32.xlu0 %v1035_v55  ;;  %v5290_v58 = vpop.f32.mrb[14].mxu1  ;;  %v1032_v63 = vsel %vm413_vm4, %v1014_v59, -inf }
 0x623   :  { %v1029_v57 = vadd.f32 %v5290_v58, %v6545_v49  ;;  %v1023_v40 = vpop.f32.mrb[15].mxu1  ;;  %1033 = vmax.xlane.f32.xlu1 %v1032_v63 }
 0x624   :  { %v1024_v42 = vadd.f32 %v1023_v40, %v6539_v43 }
 0x625   :  { %v1041_v3 = vsel %vm413_vm4, %v1029_v57, -inf }
 0x626   :  { %1042 = vmax.xlane.f32.xlu0 %v1041_v3  ;;  %v1038_v60 = vsel %vm413_vm4, %v1024_v42, -inf }
 0x627   :  { %1039 = vmax.xlane.f32.xlu1 %v1038_v60 }
 0x6af   :  { %v1037_v61 = vpop.xlane.xlu0 %1036 }
 0x6b0   :  { %v1045_v52 = vsub.f32 %v1019_v50, %v1037_v61  ;;  %v1034_v1 = vpop.xlane.xlu1 %1033  ;;  %v1465_v50 = vsel %vm413_vm4, %v1453_v45, -inf }
 0x6b1   :  { %v1044_v12 = vsub.f32 %v1014_v59, %v1034_v1  ;;  %v1267_v59 = vld [vmem:[#allocation2 + $0x190] sm:$0xff]  ;;  %v1269_v1 = vld [vmem:[#allocation2 + $0x1a0] sm:$0xff] }
 0x6b2   :  { %v1050_v14 = vmul.f32 1.442695, %v1045_v52  ;;  %v5862_v55 = vpack.c.bf16 %v1267_v59, %v1266_v54  ;;  %v1268_v52 = vld [vmem:[#allocation2 + $0x198] sm:$0xff] }
 0x6b3   :  { %v1048_v23 = vmul.f32 1.442695, %v1044_v12  ;;  %v1043_v24 = vpop.xlane.xlu0 %1042 }
 0x6b4   :  { %6176 = vpow2.f32 %v1050_v14  ;;  %v1047_v25 = vsub.f32 %v1029_v57, %v1043_v24  ;;  %v1040_v27 = vpop.xlane.xlu1 %1039  ;;  %5863 = vmatprep.subr.bf16.mxu1 %v5862_v55 }
 0x6b5   :  { %6178 = vpow2.f32 %v1048_v23  ;;  %v1046_v28 = vsub.f32 %v1024_v42, %v1040_v27 }
 0x6b6   :  { %v1054_v29 = vmul.f32 1.442695, %v1047_v25 }
 0x6b7   :  { %v1052_v30 = vmul.f32 1.442695, %v1046_v28 }
 0x6b8   :  { %6180 = vpow2.f32 %v1054_v29 }
 0x6b9   :  { %6182 = vpow2.f32 %v1052_v30  ;;  %v5866_v30 = vpack.c.bf16 %v1269_v1, %v1268_v52  ;;  %v1697_v1 = vrot.slane %v6471_v26, %v6417_v8 }
 0x6be   :  { %v6177_v31 = vpop.eup %6176 }
 0x6bf   :  { %v6179_v62 = vpop.eup %6178  ;;  %v1059_v32 = vsel %vm413_vm4, %v6177_v31, 0.0 }
 0x6c0   :  { %1060 = vadd.xlane.f32.xlu0 %v1059_v32  ;;  %v1056_v33 = vsel %vm413_vm4, %v6179_v62, 0.0 }
 0x6c1   :  { %1057 = vadd.xlane.f32.xlu1 %v1056_v33 }
 0x6c2   :  { %v6181_v34 = vpop.eup %6180 }
 0x6c3   :  { %v6183_v35 = vpop.eup %6182  ;;  %v1065_v39 = vsel %vm413_vm4, %v6181_v34, 0.0 }
 0x6c4   :  { %1066 = vadd.xlane.f32.xlu0 %v1065_v39  ;;  %v1062_v44 = vsel %vm413_vm4, %v6183_v35, 0.0 }
 0x6c5   :  { %1063 = vadd.xlane.f32.xlu1 %v1062_v44 }
 0x6c8   :  { %1460 = vmax.xlane.f32.xlu0 %v1459_v56 }
 0x6c9   :  { %1457 = vmax.xlane.f32.xlu1 %v1456_v2 }
 0x6cc   :  { %1466 = vmax.xlane.f32.xlu0 %v1465_v50 }
 0x6cd   :  { %1463 = vmax.xlane.f32.xlu1 %v1462_v53 }
 0x74d   :  { %v1061_v4 = vpop.xlane.xlu0 %1060 }
 0x74e   :  { %6184 = vrcp.f32 %v1061_v4  ;;  %v1058_v58 = vpop.xlane.xlu1 %1057 }
 0x74f   :  { %6186 = vrcp.f32 %v1058_v58 }
 0x751   :  { %v1067_v63 = vpop.xlane.xlu0 %1066 }
 0x752   :  { %6188 = vrcp.f32 %v1067_v63  ;;  %v1064_v5 = vpop.xlane.xlu1 %1063 }
 0x753   :  { %6190 = vrcp.f32 %v1064_v5 }
 0x755   :  { %v1461_v57 = vpop.xlane.xlu0 %1460 }
 0x756   :  { %v1469_v40 = vsub.f32 %v1443_v36, %v1461_v57  ;;  %v1458_v42 = vpop.xlane.xlu1 %1457 }
 0x757   :  { %v1468_v3 = vsub.f32 %v1438_v41, %v1458_v42 }
 0x758   :  { %v6185_v60 = vpop.eup %6184  ;;  %v1474_v61 = vmul.f32 1.442695, %v1469_v40 }
 0x759   :  { %v6187_v12 = vpop.eup %6186  ;;  %v1472_v14 = vmul.f32 1.442695, %v1468_v3  ;;  %v1467_v23 = vpop.xlane.xlu0 %1466  ;;  %v1073_v28 = vmul.f32 %v6185_v60, %v6177_v31 }
 0x75a   :  { %6192 = vpow2.f32 %v1474_v61  ;;  %v1471_v24 = vsub.f32 %v1453_v45, %v1467_v23  ;;  %v1464_v25 = vpop.xlane.xlu1 %1463  ;;  %v1072_v27 = vmul.f32 %v6187_v12, %v6179_v62  ;;  %v1765_v23 = vadd.f32 %v6610_v9, %v1697_v1 }
 0x75b   :  { %6194 = vpow2.f32 %v1472_v14  ;;  %v1470_v29 = vsub.f32 %v1448_v47, %v1464_v25  ;;  %v1770_v9 = vadd.f32 %v6608_v6, %v1697_v1 }
 0x75c   :  { %v6189_v32 = vpop.eup %6188  ;;  %v1478_v33 = vmul.f32 1.442695, %v1471_v24  ;;  %5313 = vmatprep.mubr.msk.f32.mxu1 %vm413_vm4, %v1072_v27  ;;  %v1775_v24 = vadd.f32 %v6614_v11, %v1697_v1 }
 0x75d   :  { %v6191_v36 = vpop.eup %6190  ;;  %v1476_v39 = vmul.f32 1.442695, %v1470_v29  ;;  %5314 = vmatmul.mubr.msk.f32.vlgmr.msra.gmra.mrb[8].mxu1 %vm413_vm4, %v1073_v28  ;;  %v1075_v44 = vmul.f32 %v6189_v32, %v6181_v34 }
 0x75e   :  { %6196 = vpow2.f32 %v1478_v33  ;;  %5865 = vmatpush3.bf16.msra.mxu1 %v5862_v55  ;;  %v1074_v41 = vmul.f32 %v6191_v36, %v6183_v35 }
 0x75f   :  { %6198 = vpow2.f32 %v1476_v39  ;;  %5867 = vmatprep.subr.bf16.mxu1 %v5866_v30 }
 0x760   :  { %5316 = vmatprep.mubr.msk.f32.mxu1 %vm413_vm4, %v1074_v41 }
 0x761   :  { %5317 = vmatmul.mubr.msk.f32.gmra.mrb[10].mxu1 %vm413_vm4, %v1075_v44 }
 0x762   :  { %5869 = vmatpush3.bf16.msra.mxu1 %v5866_v30  ;;  %5355 = vmatprep.mubr.msk.f32.mxu1 %vm413_vm4, %v6425_v17 }
 0x764   :  { %v6193_v31 = vpop.eup %6192 }
 0x765   :  { %v6195_v62 = vpop.eup %6194  ;;  %5356 = vmatmul.mubr.msk.f32.vlgmr.msra.gmra.mrb[16].mxu1 %vm413_vm4, %v6421_v13  ;;  %v1483_v45 = vsel %vm413_vm4, %v6193_v31, 0.0 }
 0x766   :  { %1484 = vadd.xlane.f32.xlu0 %v1483_v45  ;;  %5358 = vmatprep.mubr.msk.f32.mxu1 %vm413_vm4, %v6427_v18  ;;  %v1480_v34 = vsel %vm413_vm4, %v6195_v62, 0.0 }
 0x767   :  { %1481 = vadd.xlane.f32.xlu1 %v1480_v34 }
 0x768   :  { %v6197_v35 = vpop.eup %6196 }
 0x769   :  { %v6199_v56 = vpop.eup %6198  ;;  %5359 = vmatmul.mubr.msk.f32.gmra.mrb[18].mxu1 %vm413_vm4, %v6423_v16  ;;  %v1489_v47 = vsel %vm413_vm4, %v6197_v35, 0.0 }
 0x76a   :  { %1490 = vadd.xlane.f32.xlu0 %v1489_v47  ;;  %v1486_v2 = vsel %vm413_vm4, %v6199_v56, 0.0 }
 0x76b   :  { %1487 = vadd.xlane.f32.xlu1 %v1486_v2 }
 0x7f3   :  { %v1485_v59 = vpop.xlane.xlu0 %1484 }
 0x7f4   :  { %v1482_v50 = vpop.xlane.xlu1 %1481 }
 0x7f5   :  { %6200 = vrcp.f32 %v1482_v50 }
 0x7f6   :  { %6202 = vrcp.f32 %v1485_v59 }
 0x7f7   :  { %v1491_v4 = vpop.xlane.xlu0 %1490 }
 0x7f8   :  { %v1488_v55 = vpop.xlane.xlu1 %1487 }
 0x7f9   :  { %6204 = vrcp.f32 %v1488_v55 }
 0x7fa   :  { %6206 = vrcp.f32 %v1491_v4 }
 0x7ff   :  { %v6201_v53 = vpop.eup %6200 }
 0x800   :  { %v1496_v54 = vmul.f32 %v6201_v53, %v6195_v62  ;;  %v6203_v3 = vpop.eup %6202 }
 0x801   :  { %v1497_v61 = vmul.f32 %v6203_v3, %v6193_v31 }
 0x802   :  { %5369 = vmatprep.mubr.msk.f32.mxu1 %vm413_vm4, %v1496_v54 }
 0x803   :  { %v6205_v60 = vpop.eup %6204 }
 0x804   :  { %v6207_v52 = vpop.eup %6206  ;;  %v1498_v12 = vmul.f32 %v6205_v60, %v6199_v56 }
 0x805   :  { %v1499_v14 = vmul.f32 %v6207_v52, %v6197_v35 }
 0x838   :  { %v5357_v58 = vpop.f32.mrb[16].mxu1 }
 0x839   :  { %v1566_v63 = vpop.f32.mrb[17].mxu1 }
 0x83a   :  { %v5870_v5 = vpack.c.bf16 %v5357_v58, %v1566_v63 }
 0x83c   :  { %v5360_v57 = vpop.f32.mrb[18].mxu1  ;;  %5871 = vmatprep.subr.bf16.mxu1 %v5870_v5 }
 0x83d   :  { %v1576_v40 = vpop.f32.mrb[19].mxu1  ;;  %5873 = vmatpush3.bf16.msra.mxu1 %v5870_v5 }
 0x83e   :  { %v5874_v42 = vpack.c.bf16 %v5360_v57, %v1576_v40 }
 0x840   :  { %5875 = vmatprep.subr.bf16.mxu1 %v5874_v42 }
 0x841   :  { %5877 = vmatpush3.bf16.msra.mxu1 %v5874_v42 }
 0x842   :  { %5888 = vmatprep.subr.msk.bf16.mxu1 %vm6431_vm5, %v6441_v21 }
 0x844   :  { %5370 = vmatmul.mubr.msk.f32.vlgmr.msra.gmra.mrb[8].mxu1 %vm413_vm4, %v1497_v61 }
 0x845   :  { %5372 = vmatprep.mubr.msk.f32.mxu1 %vm413_vm4, %v1498_v12 }
 0x848   :  { %5373 = vmatmul.mubr.msk.f32.gmra.mrb[10].mxu1 %vm413_vm4, %v1499_v14 }
 0x849   :  { %5397 = vmatprep.mubr.msk.f32.mxu1 %vm413_vm4, %v1765_v23  ;;  %v6734_v23 = vsub.s32 4, %v6399_v46 }
 0x84a   :  { %5891 = vmatpush3.bf16.xpose.msk.msra.mxu1 %vm6431_vm5, %v6441_v21  ;;  %v1780_v21 = vadd.f32 %v6612_v10, %v1697_v1 }
 0x84b   :  { %5894 = vmatprep.subr.msk.bf16.mxu1 %vm6431_vm5, %v6454_v22 }
 0x852   :  { %5897 = vmatpush3.bf16.xpose.msk.msra.mxu1 %vm6431_vm5, %v6454_v22 }
 0x853   :  { %5907 = vmatprep.subr.bf16.mxu1 %v6616_v15 }
 0x859   :  { %5398 = vmatmul.mubr.msk.f32.vlgmr.msra.gmra.mrb[20].mxu1 %vm413_vm4, %v1770_v9  ;;  %v399_v9 = vrot.slane %v6471_v26, %v6734_v23 }
 0x85a   :  { %5400 = vmatprep.mubr.msk.f32.mxu1 %vm413_vm4, %v1775_v24  ;;  %5909 = vmatpush3.bf16.msra.mxu1 %v6616_v15 }
 0x85b   :  { %5911 = vmatprep.subr.bf16.mxu1 %v6618_v0 }
 0x85d   :  { %5401 = vmatmul.mubr.msk.f32.gmra.mrb[22].mxu1 %vm413_vm4, %v1780_v21 }
 0x85e   :  { %5913 = vmatpush3.bf16.msra.mxu1 %v6618_v0 }
 0x92c   :  { %v5399_v22 = vpop.f32.mrb[20].mxu1 }
 0x92d   :  { %v1867_v25 = vadd.f32 %v5399_v22, %v6529_v37  ;;  %v1861_v6 = vpop.f32.mrb[21].mxu1 }
 0x92e   :  { %v1862_v11 = vadd.f32 %v1861_v6, %v6531_v38 }
 0x92f   :  { %v1883_v27 = vsel %vm413_vm4, %v1867_v25, -inf }
 0x930   :  { %1884 = vmax.xlane.f32.xlu0 %v1883_v27  ;;  %v5402_v28 = vpop.f32.mrb[22].mxu1  ;;  %v1880_v15 = vsel %vm413_vm4, %v1862_v11, -inf }
 0x931   :  { %v1877_v10 = vadd.f32 %v5402_v28, %v6545_v49  ;;  %v1871_v29 = vpop.f32.mrb[23].mxu1  ;;  %1881 = vmax.xlane.f32.xlu1 %v1880_v15 }
 0x932   :  { %v1872_v30 = vadd.f32 %v1871_v29, %v6539_v43 }
 0x933   :  { %v1889_v0 = vsel %vm413_vm4, %v1877_v10, -inf }
 0x934   :  { %1890 = vmax.xlane.f32.xlu0 %v1889_v0  ;;  %v1886_v32 = vsel %vm413_vm4, %v1872_v30, -inf }
 0x935   :  { %1887 = vmax.xlane.f32.xlu1 %v1886_v32 }
 0x9bd   :  { %v1885_v33 = vpop.xlane.xlu0 %1884 }
 0x9be   :  { %v1893_v36 = vsub.f32 %v1867_v25, %v1885_v33  ;;  %v1882_v39 = vpop.xlane.xlu1 %1881 }
 0x9bf   :  { %v1892_v41 = vsub.f32 %v1862_v11, %v1882_v39 }
 0x9c0   :  { %v1898_v44 = vmul.f32 1.442695, %v1893_v36 }
 0x9c1   :  { %v1896_v31 = vmul.f32 1.442695, %v1892_v41  ;;  %v1891_v62 = vpop.xlane.xlu0 %1890 }
 0x9c2   :  { %6208 = vpow2.f32 %v1898_v44  ;;  %v1895_v45 = vsub.f32 %v1877_v10, %v1891_v62  ;;  %v1888_v34 = vpop.xlane.xlu1 %1887 }
 0x9c3   :  { %6210 = vpow2.f32 %v1896_v31  ;;  %v1894_v35 = vsub.f32 %v1872_v30, %v1888_v34 }
 0x9c4   :  { %v1902_v56 = vmul.f32 1.442695, %v1895_v45 }
 0x9c5   :  { %v1900_v47 = vmul.f32 1.442695, %v1894_v35 }
 0x9c6   :  { %6212 = vpow2.f32 %v1902_v56 }
 0x9c7   :  { %6214 = vpow2.f32 %v1900_v47 }
 0x9cc   :  { %v6209_v2 = vpop.eup %6208 }
 0x9cd   :  { %v6211_v50 = vpop.eup %6210  ;;  %v1907_v53 = vsel %vm413_vm4, %v6209_v2, 0.0 }
 0x9ce   :  { %1908 = vadd.xlane.f32.xlu0 %v1907_v53  ;;  %v1904_v54 = vsel %vm413_vm4, %v6211_v50, 0.0 }
 0x9cf   :  { %1905 = vadd.xlane.f32.xlu1 %v1904_v54 }
 0x9d0   :  { %v6213_v59 = vpop.eup %6212 }
 0x9d1   :  { %v6215_v55 = vpop.eup %6214  ;;  %v1913_v4 = vsel %vm413_vm4, %v6213_v59, 0.0 }
 0x9d2   :  { %1914 = vadd.xlane.f32.xlu0 %v1913_v4  ;;  %v1910_v58 = vsel %vm413_vm4, %v6215_v55, 0.0  ;;  %v2184_v4 = vld [vmem:[#allocation2 + $0x1d0] sm:$0xff] }
 0x9d3   :  { %1911 = vadd.xlane.f32.xlu1 %v1910_v58 }
 0xa5b   :  { %v1909_v63 = vpop.xlane.xlu0 %1908 }
 0xa5c   :  { %6216 = vrcp.f32 %v1909_v63  ;;  %v1906_v5 = vpop.xlane.xlu1 %1905  ;;  %v2185_v63 = vld [vmem:[#allocation2 + $0x1d8] sm:$0xff] }
 0xa5d   :  { %6218 = vrcp.f32 %v1906_v5  ;;  %v2186_v5 = vld [vmem:[#allocation2 + $0x1e0] sm:$0xff] }
 0xa5f   :  { %v1915_v57 = vpop.xlane.xlu0 %1914 }
 0xa60   :  { %6220 = vrcp.f32 %v1915_v57  ;;  %v1912_v40 = vpop.xlane.xlu1 %1911  ;;  %v5918_v57 = vpack.c.bf16 %v2186_v5, %v2185_v63 }
 0xa61   :  { %6222 = vrcp.f32 %v1912_v40  ;;  %v2187_v40 = vld [vmem:[#allocation2 + $0x1e8] sm:$0xff] }
 0xa66   :  { %v6217_v42 = vpop.eup %6216 }
 0xa67   :  { %v6219_v3 = vpop.eup %6218  ;;  %v1921_v61 = vmul.f32 %v6217_v42, %v6209_v2  ;;  %v2188_v42 = vld [vmem:[#allocation2 + $0x1f0] sm:$0xff] }
 0xa68   :  { %v1920_v60 = vmul.f32 %v6219_v3, %v6211_v50  ;;  %v5922_v3 = vpack.c.bf16 %v2188_v42, %v2187_v40 }
 0xa6a   :  { %v6221_v52 = vpop.eup %6220  ;;  %5425 = vmatprep.mubr.msk.f32.mxu1 %vm413_vm4, %v1920_v60 }
 0xa6b   :  { %v6223_v1 = vpop.eup %6222  ;;  %5426 = vmatmul.mubr.msk.f32.vlgmr.msra.gmra.mrb[8].mxu1 %vm413_vm4, %v1921_v61  ;;  %v1923_v14 = vmul.f32 %v6221_v52, %v6213_v59 }
 0xa6c   :  { %v1922_v12 = vmul.f32 %v6223_v1, %v6215_v55  ;;  %v2183_v55 = vld [vmem:[#allocation2 + $0x1c8] sm:$0xff] }
 0xa6d   :  { %v5914_v58 = vpack.c.bf16 %v2184_v4, %v2183_v55 }
 0xa6e   :  { %5428 = vmatprep.mubr.msk.f32.mxu1 %vm413_vm4, %v1922_v12 }
 0xa6f   :  { %5429 = vmatmul.mubr.msk.f32.gmra.mrb[10].mxu1 %vm413_vm4, %v1923_v14  ;;  %5915 = vmatprep.subr.bf16.mxu0 %v5914_v58 }
 0xa70   :  { %5917 = vmatpush3.bf16.msra.mxu0 %v5914_v58 }
 0xa71   :  { %5919 = vmatprep.subr.bf16.mxu0 %v5918_v57 }
 0xa74   :  { %5921 = vmatpush3.bf16.msra.mxu0 %v5918_v57 }
 0xa75   :  { %5923 = vmatprep.subr.bf16.mxu0 %v5922_v3 }
 0xb3e   :  { %v5427_v24 = vpop.f32.mrb[8].mxu1 }
 0xb3f   :  { %v6114_v21 = vadd.f32 %v5427_v24, %v399_v9  ;;  %v2087_v22 = vpop.f32.mrb[9].mxu1 }
 0xb40   :  { %v6115_v25 = vadd.f32 %v2087_v22, %v399_v9 }
 0xb41   :  { %v2111_v6 = vadd.f32 %v6114_v21, %v6421_v13 }
 0xb42   :  { %v5430_v11 = vpop.f32.mrb[10].mxu1  ;;  %v2110_v27 = vadd.f32 %v6115_v25, %v6425_v17 }
 0xb43   :  { %v6116_v28 = vadd.f32 %v5430_v11, %v399_v9  ;;  %v2097_v15 = vpop.f32.mrb[11].mxu1  ;;  %v2117_v10 = vsel %vm413_vm4, %v2111_v6, 0.0  ;;  %v6751_v11 = vsub.s32 5, %v6399_v46 }
 0xb44   :  { %v6117_v29 = vadd.f32 %v2097_v15, %v399_v9  ;;  %2118 = vadd.xlane.f32.xlu0 %v2117_v10  ;;  %v2114_v30 = vsel %vm413_vm4, %v2110_v27, 0.0 }
 0xb45   :  { %2115 = vadd.xlane.f32.xlu1 %v2114_v30  ;;  %v2113_v26 = vadd.f32 %v6116_v28, %v6423_v16  ;;  %v6328_v28 = vld [vmem:[#allocation2 + $0x8] sm:$0xff] }
 0xb46   :  { %v2112_v0 = vadd.f32 %v6117_v29, %v6427_v18  ;;  %v2170_v15 = vrot.slane %v6328_v28, %v6751_v11 }
 0xb47   :  { %v2123_v32 = vsel %vm413_vm4, %v2113_v26, 0.0 }
 0xb48   :  { %2124 = vadd.xlane.f32.xlu0 %v2123_v32  ;;  %v2120_v13 = vsel %vm413_vm4, %v2112_v0, 0.0 }
 0xb49   :  { %2121 = vadd.xlane.f32.xlu1 %v2120_v13 }
 0xbd1   :  { %v2119_v17 = vpop.xlane.xlu0 %2118 }
 0xbd2   :  { %v2128_v33 = vmul.f32 0.03125, %v2119_v17  ;;  %v2116_v36 = vpop.xlane.xlu1 %2115 }
 0xbd3   :  { %v2127_v39 = vmul.f32 0.03125, %v2116_v36  ;;  %v2190_v36 = vld [vmem:[#allocation2 + $0x200] sm:$0xff] }
 0xbd4   :  { %v2132_v41 = vsub.f32 %v2111_v6, %v2128_v33  ;;  %v2189_v33 = vld [vmem:[#allocation2 + $0x1f8] sm:$0xff] }
 0xbd5   :  { %v2131_v44 = vsub.f32 %v2110_v27, %v2127_v39  ;;  %v2125_v31 = vpop.xlane.xlu0 %2124  ;;  %v6754_v27 = vsub.s32 6, %v6399_v46 }
 0xbd6   :  { %v2130_v62 = vmul.f32 0.03125, %v2125_v31  ;;  %v2122_v45 = vpop.xlane.xlu1 %2121  ;;  %v2136_v34 = vmul.f32 %v2132_v41, %v2132_v41 }
 0xbd7   :  { %v2129_v35 = vmul.f32 0.03125, %v2122_v45  ;;  %v2135_v16 = vmul.f32 %v2131_v44, %v2131_v44 }
 0xbd8   :  { %v2134_v56 = vsub.f32 %v2113_v26, %v2130_v62  ;;  %v2142_v18 = vsel %vm413_vm4, %v2136_v34, 0.0 }
 0xbd9   :  { %v2133_v47 = vsub.f32 %v2112_v0, %v2129_v35  ;;  %2143 = vadd.xlane.f32.xlu0 %v2142_v18  ;;  %v2139_v2 = vsel %vm413_vm4, %v2135_v16, 0.0  ;;  %v2178_v0 = vrot.slane %v6328_v28, %v6754_v27  ;;  %v5926_v16 = vpack.c.bf16 %v2190_v36, %v2189_v33 }
 0xbda   :  { %2140 = vadd.xlane.f32.xlu1 %v2139_v2  ;;  %v2138_v50 = vmul.f32 %v2134_v56, %v2134_v56  ;;  %v2191_v2 = vld [vmem:[#allocation2 + $0x208] sm:$0xff] }
 0xbdb   :  { %v2137_v53 = vmul.f32 %v2133_v47, %v2133_v47 }
 0xbdc   :  { %v2148_v54 = vsel %vm413_vm4, %v2138_v50, 0.0 }
 0xbdd   :  { %2149 = vadd.xlane.f32.xlu0 %v2148_v54  ;;  %v2145_v59 = vsel %vm413_vm4, %v2137_v53, 0.0 }
 0xbde   :  { %2146 = vadd.xlane.f32.xlu1 %v2145_v59  ;;  %v2197_v59 = vsub.s32 7, %v6399_v46 }
 0xbe0   :  { %v2198_v55 = vrot.slane %v6328_v28, %v2197_v59 }
 0xc66   :  { %v2144_v60 = vpop.xlane.xlu0 %2143 }
 0xc67   :  { %v2152_v61 = vmul.f32 0.03125, %v2144_v60  ;;  %v2141_v52 = vpop.xlane.xlu1 %2140 }
 0xc68   :  { %v2151_v1 = vmul.f32 0.03125, %v2141_v52 }
 0xc69   :  { %v2156_v12 = vadd.f32 1e-05, %v2152_v61 }
 0xc6a   :  { %v2155_v14 = vadd.f32 1e-05, %v2151_v1  ;;  %v2150_v9 = vpop.xlane.xlu0 %2149 }
 0xc6b   :  { %6224 = vrsqrt.f32 %v2156_v12  ;;  %v2154_v24 = vmul.f32 0.03125, %v2150_v9  ;;  %v2147_v21 = vpop.xlane.xlu1 %2146  ;;  %v6769_v12 = vld [vmem:[#allocation2 + $0x10] sm:$0xff] }
 0xc6c   :  { %6226 = vrsqrt.f32 %v2155_v14  ;;  %v2153_v22 = vmul.f32 0.03125, %v2147_v21  ;;  %v2303_v14 = vrot.slane %v6769_v12, %v6406_v51 }
 0xc6d   :  { %v2158_v25 = vadd.f32 1e-05, %v2154_v24 }
 0xc6e   :  { %v2157_v6 = vadd.f32 1e-05, %v2153_v22 }
 0xc6f   :  { %6228 = vrsqrt.f32 %v2158_v25 }
 0xc70   :  { %6230 = vrsqrt.f32 %v2157_v6 }
 0xc75   :  { %v6225_v10 = vpop.eup %6224 }
 0xc76   :  { %v6227_v29 = vpop.eup %6226  ;;  %v2164_v30 = vmul.f32 %v6225_v10, %v2132_v41  ;;  %v2192_v41 = vld [vmem:[#allocation2 + $0x210] sm:$0xff] }
 0xc77   :  { %v2163_v26 = vmul.f32 %v6227_v29, %v2131_v44  ;;  %v5930_v53 = vpack.c.bf16 %v2192_v41, %v2191_v2 }
 0xc78   :  { %v2172_v32 = vmul.f32 %v2170_v15, %v2164_v30 }
 0xc79   :  { %v6229_v13 = vpop.eup %6228  ;;  %v2171_v17 = vmul.f32 %v2170_v15, %v2163_v26 }
 0xc7a   :  { %v6231_v39 = vpop.eup %6230  ;;  %v2166_v31 = vmul.f32 %v6229_v13, %v2134_v56  ;;  %v2180_v34 = vadd.f32 %v2178_v0, %v2172_v32  ;;  %v2193_v56 = vld [vmem:[#allocation2 + $0x218] sm:$0xff] }
 0xc7b   :  { %v2179_v62 = vadd.f32 %v2178_v0, %v2171_v17  ;;  %v2165_v45 = vmul.f32 %v6231_v39, %v2133_v47  ;;  %v2194_v47 = vld [vmem:[#allocation2 + $0x220] sm:$0xff] }
 0xc7c   :  { %v2174_v35 = vmul.f32 %v2170_v15, %v2166_v31  ;;  %v5934_v54 = vpack.c.bf16 %v2194_v47, %v2193_v56 }
 0xc7d   :  { %5439 = vmatprep.mubr.msk.f32.mxu0 %vm413_vm4, %v2179_v62  ;;  %v2173_v18 = vmul.f32 %v2170_v15, %v2165_v45 }
 0xc7e   :  { %5440 = vmatmul.mubr.msk.f32.vlgmr.msra.gmra.mrb[34].mxu0 %vm413_vm4, %v2180_v34  ;;  %v2182_v50 = vadd.f32 %v2178_v0, %v2174_v35 }
 0xc7f   :  { %v2181_v44 = vadd.f32 %v2178_v0, %v2173_v18  ;;  %5925 = vmatpush3.bf16.msra.mxu0 %v5922_v3 }
 0xc80   :  { %5927 = vmatprep.subr.bf16.mxu0 %v5926_v16 }
 0xc81   :  { %5442 = vmatprep.mubr.msk.f32.mxu0 %vm413_vm4, %v2181_v44 }
 0xc82   :  { %5443 = vmatmul.mubr.msk.f32.gmra.mrb[36].mxu0 %vm413_vm4, %v2182_v50 }
 0xc83   :  { %5929 = vmatpush3.bf16.msra.mxu0 %v5926_v16 }
 0xc84   :  { %5931 = vmatprep.subr.bf16.mxu0 %v5930_v53 }
 0xc87   :  { %5933 = vmatpush3.bf16.msra.mxu0 %v5930_v53 }
 0xc88   :  { %5935 = vmatprep.subr.bf16.mxu0 %v5934_v54 }
 0xc8b   :  { %5937 = vmatpush3.bf16.msra.mxu0 %v5934_v54 }
 0xd51   :  { %v5441_v4 = vpop.f32.mrb[34].mxu0 }
 0xd52   :  { %v2283_v58 = vadd.f32 %v5441_v4, %v2198_v55  ;;  %v2277_v63 = vpop.f32.mrb[35].mxu0 }
 0xd53   :  { %v2278_v5 = vadd.f32 %v2277_v63, %v2198_v55  ;;  %v2479_v63 = vld [vmem:[#allocation2 + $0x230] sm:$0xff] }
 0xd54   :  { %v2297_v42 = vmax.f32 %v2283_v58, 0.0  ;;  %v2478_v58 = vld [vmem:[#allocation2 + $0x228] sm:$0xff] }
 0xd55   :  { %v2296_v57 = vmax.f32 %v2278_v5, 0.0  ;;  %v5444_v40 = vpop.f32.mrb[36].mxu0  ;;  %v5938_v5 = vpack.c.bf16 %v2479_v63, %v2478_v58 }
 0xd56   :  { %v2293_v3 = vadd.f32 %v5444_v40, %v2198_v55  ;;  %v2287_v60 = vpop.f32.mrb[37].mxu0  ;;  %v2481_v40 = vld [vmem:[#allocation2 + $0x240] sm:$0xff] }
 0xd57   :  { %v2288_v61 = vadd.f32 %v2287_v60, %v2198_v55  ;;  %5461 = vmatprep.mubr.msk.f32.mxu0 %vm174_vm3, %v2296_v57  ;;  %5939 = vmatprep.subr.bf16.mxu1 %v5938_v5  ;;  %v2480_v57 = vld [vmem:[#allocation2 + $0x238] sm:$0xff]  ;;  %v2483_v60 = vld [vmem:[#allocation2 + $0x2b0] sm:$0xff] }
 0xd58   :  { %5462 = vmatmul.mubr.msk.f32.vlgmr.msra.gmra.mrb[38].mxu0 %vm174_vm3, %v2297_v42  ;;  %v2299_v1 = vmax.f32 %v2293_v3, 0.0  ;;  %5941 = vmatpush3.bf16.msra.mxu1 %v5938_v5  ;;  %v2482_v42 = vld [vmem:[#allocation2 + $0x2a8] sm:$0xff]  ;;  %v5942_v3 = vpack.c.bf16 %v2481_v40, %v2480_v57  ;;  %v2916_v5 = vld [vmem:[#allocation2 + $0x258] sm:$0xff]  ;;  %v2917_v57 = vld [vmem:[#allocation2 + $0x260] sm:$0xff] }
 0xd59   :  { %v2298_v52 = vmax.f32 %v2288_v61, 0.0  ;;  %v5958_v61 = vpack.c.bf16 %v2483_v60, %v2482_v42 }
 0xd5a   :  { %5943 = vmatprep.subr.bf16.mxu1 %v5942_v3 }
 0xd5b   :  { %5464 = vmatprep.mubr.msk.f32.mxu0 %vm174_vm3, %v2298_v52  ;;  %5959 = vmatprep.subr.bf16.mxu0 %v5958_v61  ;;  %v2484_v52 = vld [vmem:[#allocation2 + $0x2b8] sm:$0xff] }
 0xd5c   :  { %5465 = vmatmul.mubr.msk.f32.gmra.mrb[40].mxu0 %vm174_vm3, %v2299_v1  ;;  %5945 = vmatpush3.bf16.msra.mxu1 %v5942_v3  ;;  %v2485_v1 = vld [vmem:[#allocation2 + $0x2c0] sm:$0xff] }
 0xd5d   :  { %5961 = vmatpush3.bf16.msra.mxu0 %v5958_v61 }
 0xe2b   :  { %v5463_v9 = vpop.f32.mrb[38].mxu0 }
 0xe2c   :  { %v2388_v24 = vadd.f32 %v5463_v9, %v2303_v14  ;;  %v2382_v21 = vpop.f32.mrb[39].mxu0 }
 0xe2d   :  { %v2383_v22 = vadd.f32 %v2382_v21, %v2303_v14 }
 0xe2e   :  { %v2402_v25 = vadd.f32 %v2388_v24, %v2180_v34 }
 0xe2f   :  { %v5466_v6 = vpop.f32.mrb[40].mxu0  ;;  %v2401_v28 = vadd.f32 %v2383_v22, %v2179_v62 }
 0xe30   :  { %v2398_v15 = vadd.f32 %v5466_v6, %v2303_v14  ;;  %v2392_v10 = vpop.f32.mrb[41].mxu0  ;;  %v2408_v29 = vsel %vm413_vm4, %v2402_v25, 0.0 }
 0xe31   :  { %v2393_v30 = vadd.f32 %v2392_v10, %v2303_v14  ;;  %2409 = vadd.xlane.f32.xlu0 %v2408_v29  ;;  %v2405_v26 = vsel %vm413_vm4, %v2401_v28, 0.0  ;;  %v5962_v14 = vpack.c.bf16 %v2485_v1, %v2484_v52  ;;  %v5978_v52 = vpack.c.bf16 %v2917_v57, %v2916_v5 }
 0xe32   :  { %2406 = vadd.xlane.f32.xlu1 %v2405_v26  ;;  %v2404_v0 = vadd.f32 %v2398_v15, %v2182_v50 }
 0xe33   :  { %v2403_v32 = vadd.f32 %v2393_v30, %v2181_v44  ;;  %5963 = vmatprep.subr.bf16.mxu0 %v5962_v14 }
 0xe34   :  { %v2414_v13 = vsel %vm413_vm4, %v2404_v0, 0.0  ;;  %5965 = vmatpush3.bf16.msra.mxu0 %v5962_v14 }
 0xe35   :  { %2415 = vadd.xlane.f32.xlu0 %v2414_v13  ;;  %v2411_v17 = vsel %vm413_vm4, %v2403_v32, 0.0 }
 0xe36   :  { %2412 = vadd.xlane.f32.xlu1 %v2411_v17  ;;  %v2468_v17 = vrot.slane %v6769_v12, %v6414_v7 }
 0xebe   :  { %v2410_v33 = vpop.xlane.xlu0 %2409 }
 0xebf   :  { %v2418_v36 = vmul.f32 0.03125, %v2410_v33  ;;  %v2407_v39 = vpop.xlane.xlu1 %2406 }
 0xec0   :  { %v2417_v31 = vmul.f32 0.03125, %v2407_v39 }
 0xec1   :  { %v2422_v62 = vsub.f32 %v2402_v25, %v2418_v36 }
 0xec2   :  { %v2421_v45 = vsub.f32 %v2401_v28, %v2417_v31  ;;  %v2416_v34 = vpop.xlane.xlu0 %2415 }
 0xec3   :  { %v2420_v35 = vmul.f32 0.03125, %v2416_v34  ;;  %v2413_v16 = vpop.xlane.xlu1 %2412  ;;  %v2426_v18 = vmul.f32 %v2422_v62, %v2422_v62 }
 0xec4   :  { %v2419_v2 = vmul.f32 0.03125, %v2413_v16  ;;  %v2425_v41 = vmul.f32 %v2421_v45, %v2421_v45 }
 0xec5   :  { %v2424_v50 = vsub.f32 %v2404_v0, %v2420_v35  ;;  %v2432_v44 = vsel %vm413_vm4, %v2426_v18, 0.0  ;;  %v2460_v0 = vrot.slane %v6769_v12, %v6402_v48 }
 0xec6   :  { %v2423_v53 = vsub.f32 %v2403_v32, %v2419_v2  ;;  %2433 = vadd.xlane.f32.xlu0 %v2432_v44  ;;  %v2429_v56 = vsel %vm413_vm4, %v2425_v41, 0.0 }
 0xec7   :  { %2430 = vadd.xlane.f32.xlu1 %v2429_v56  ;;  %v2428_v47 = vmul.f32 %v2424_v50, %v2424_v50 }
 0xec8   :  { %v2427_v54 = vmul.f32 %v2423_v53, %v2423_v53 }
 0xec9   :  { %v2438_v55 = vsel %vm413_vm4, %v2428_v47, 0.0  ;;  %v2914_v47 = vld [vmem:[#allocation2 + $0x248] sm:$0xff] }
 0xeca   :  { %2439 = vadd.xlane.f32.xlu0 %v2438_v55  ;;  %v2435_v4 = vsel %vm413_vm4, %v2427_v54, 0.0  ;;  %v2915_v54 = vld [vmem:[#allocation2 + $0x250] sm:$0xff] }
 0xecb   :  { %2436 = vadd.xlane.f32.xlu1 %v2435_v4  ;;  %v5974_v55 = vpack.c.bf16 %v2915_v54, %v2914_v47  ;;  %v2489_v4 = vrot.slane %v6769_v12, %v6734_v23 }
 0xf53   :  { %v2434_v9 = vpop.xlane.xlu0 %2433 }
 0xf54   :  { %v2442_v24 = vmul.f32 0.03125, %v2434_v9  ;;  %v2431_v21 = vpop.xlane.xlu1 %2430  ;;  %v2918_v9 = vld [vmem:[#allocation2 + $0x2c8] sm:$0xff] }
 0xf55   :  { %v2441_v22 = vmul.f32 0.03125, %v2431_v21 }
 0xf56   :  { %v2446_v25 = vadd.f32 1e-05, %v2442_v24  ;;  %v2919_v24 = vld [vmem:[#allocation2 + $0x2d0] sm:$0xff] }
 0xf57   :  { %v2445_v6 = vadd.f32 1e-05, %v2441_v22  ;;  %v2440_v28 = vpop.xlane.xlu0 %2439 }
 0xf58   :  { %6232 = vrsqrt.f32 %v2446_v25  ;;  %v2444_v15 = vmul.f32 0.03125, %v2440_v28  ;;  %v2437_v10 = vpop.xlane.xlu1 %2436 }
 0xf59   :  { %6234 = vrsqrt.f32 %v2445_v6  ;;  %v2443_v29 = vmul.f32 0.03125, %v2437_v10  ;;  %v2920_v10 = vld [vmem:[#allocation2 + $0x2d8] sm:$0xff] }
 0xf5a   :  { %v2448_v30 = vadd.f32 1e-05, %v2444_v15  ;;  %v5994_v15 = vpack.c.bf16 %v2919_v24, %v2918_v9  ;;  %v3349_v9 = vrot.slane %v6769_v12, %v6754_v27 }
 0xf5b   :  { %v2447_v26 = vadd.f32 1e-05, %v2443_v29  ;;  %v2921_v29 = vld [vmem:[#allocation2 + $0x2e0] sm:$0xff] }
 0xf5c   :  { %6236 = vrsqrt.f32 %v2448_v30  ;;  %v5998_v30 = vpack.c.bf16 %v2921_v29, %v2920_v10  ;;  %v3766_v29 = vld [vmem:[#allocation2 + $0x308] sm:$0xff] }
 0xf5d   :  { %6238 = vrsqrt.f32 %v2447_v26  ;;  %v3338_v26 = vld [vmem:[#allocation2 + $0x268] sm:$0xff] }
 0xf62   :  { %v6233_v32 = vpop.eup %6232 }
 0xf63   :  { %v6235_v13 = vpop.eup %6234  ;;  %v2454_v33 = vmul.f32 %v6233_v32, %v2422_v62 }
 0xf64   :  { %v2453_v36 = vmul.f32 %v6235_v13, %v2421_v45  ;;  %v3340_v13 = vld [vmem:[#allocation2 + $0x278] sm:$0xff] }
 0xf65   :  { %v2462_v39 = vmul.f32 %v2460_v0, %v2454_v33 }
 0xf66   :  { %v6237_v31 = vpop.eup %6236  ;;  %v2461_v34 = vmul.f32 %v2460_v0, %v2453_v36  ;;  %v3762_v36 = vld [vmem:[#allocation2 + $0x288] sm:$0xff] }
 0xf67   :  { %v6239_v35 = vpop.eup %6238  ;;  %v6785_v16 = vadd.f32 %v2468_v17, %v2462_v39  ;;  %v2456_v18 = vmul.f32 %v6237_v31, %v2424_v50  ;;  %v3763_v39 = vld [vmem:[#allocation2 + $0x290] sm:$0xff] }
 0xf68   :  { %v6787_v2 = vadd.f32 %v2468_v17, %v2461_v34  ;;  %v2455_v41 = vmul.f32 %v6239_v35, %v2423_v53  ;;  %v6046_v31 = vpack.c.bf16 %v3763_v39, %v3762_v36 }
 0xf69   :  { %v2464_v44 = vmul.f32 %v2460_v0, %v2456_v18 }
 0xf6a   :  { %v2463_v56 = vmul.f32 %v2460_v0, %v2455_v41  ;;  %5475 = vmatprep.mubr.msk.f32.mxu1 %vm413_vm4, %v6787_v2  ;;  %5503 = vmatprep.mubr.msk.f32.mxu0 %vm413_vm4, %v6787_v2  ;;  %v6795_v62 = vpack.c.bf16 %v6785_v16, %v6787_v2  ;;  %v3339_v0 = vld [vmem:[#allocation2 + $0x270] sm:$0xff] }
 0xf6b   :  { %v6797_v45 = vadd.f32 %v2468_v17, %v2464_v44  ;;  %5476 = vmatmul.mubr.msk.f32.vlgmr.msra.gmra.mrb[24].mxu1 %vm413_vm4, %v6785_v16  ;;  %5504 = vmatmul.mubr.msk.f32.vlgmr.msra.gmra.mrb[42].mxu0 %vm413_vm4, %v6785_v16  ;;  %v6010_v32 = vpack.c.bf16 %v3339_v0, %v3338_v26 }
 0xf6c   :  { %v6803_v50 = vadd.f32 %v2468_v17, %v2463_v56  ;;  %5948 = vmatprep.subr.msk.bf16.mxu1 %vm6431_vm5, %v6795_v62  ;;  %v3341_v17 = vld [vmem:[#allocation2 + $0x280] sm:$0xff] }
 0xf6d   :  { %5951 = vmatpush3.bf16.xpose.msk.msra.mxu1 %vm6431_vm5, %v6795_v62  ;;  %v6014_v33 = vpack.c.bf16 %v3341_v17, %v3340_v13  ;;  %v3768_v17 = vld [vmem:[#allocation2 + $0x318] sm:$0xff] }
 0xf6e   :  { %5478 = vmatprep.mubr.msk.f32.mxu1 %vm413_vm4, %v6803_v50  ;;  %5506 = vmatprep.mubr.msk.f32.mxu0 %vm413_vm4, %v6803_v50  ;;  %v6817_v53 = vpack.c.bf16 %v6797_v45, %v6803_v50 }
 0xf6f   :  { %5479 = vmatmul.mubr.msk.f32.gmra.mrb[26].mxu1 %vm413_vm4, %v6797_v45  ;;  %5507 = vmatmul.mubr.msk.f32.gmra.mrb[44].mxu0 %vm413_vm4, %v6797_v45 }
 0xf70   :  { %5954 = vmatprep.subr.msk.bf16.mxu1 %vm6431_vm5, %v6817_v53 }
 0xf75   :  { %5957 = vmatpush3.bf16.xpose.msk.msra.mxu1 %vm6431_vm5, %v6817_v53 }
 0xf76   :  { %5975 = vmatprep.subr.bf16.mxu1 %v5974_v55 }
0x103e   :  { %v5477_v58 = vpop.f32.mrb[24].mxu1  ;;  %v5505_v63 = vpop.f32.mrb[42].mxu0 }
0x103f   :  { %v2568_v40 = vpop.f32.mrb[25].mxu1  ;;  %v2794_v42 = vpop.f32.mrb[43].mxu0  ;;  %v2574_v61 = vadd.f32 %v5477_v58, %v2489_v4 }
0x1040   :  { %v2569_v3 = vadd.f32 %v2568_v40, %v2489_v4  ;;  %v5966_v60 = vpack.c.bf16 %v5505_v63, %v2794_v42 }
0x1042   :  { %v5480_v1 = vpop.f32.mrb[26].mxu1  ;;  %5489 = vmatprep.mubr.msk.f32.mxu1 %vm413_vm4, %v2569_v3  ;;  %v5508_v14 = vpop.f32.mrb[44].mxu0  ;;  %5967 = vmatprep.subr.bf16.mxu0 %v5966_v60 }
0x1043   :  { %v2578_v21 = vpop.f32.mrb[27].mxu1  ;;  %5490 = vmatmul.mubr.msk.f32.vlgmr.msra.gmra.mrb[28].mxu1 %vm413_vm4, %v2574_v61  ;;  %v2804_v22 = vpop.f32.mrb[45].mxu0  ;;  %5969 = vmatpush3.bf16.msra.mxu0 %v5966_v60  ;;  %v2584_v28 = vadd.f32 %v5480_v1, %v2489_v4 }
0x1044   :  { %v2579_v25 = vadd.f32 %v2578_v21, %v2489_v4  ;;  %v5970_v6 = vpack.c.bf16 %v5508_v14, %v2804_v22  ;;  %5977 = vmatpush3.bf16.msra.mxu1 %v5974_v55  ;;  %v3764_v21 = vld [vmem:[#allocation2 + $0x298] sm:$0xff]  ;;  %v3765_v22 = vld [vmem:[#allocation2 + $0x2a0] sm:$0xff] }
0x1045   :  { %5979 = vmatprep.subr.bf16.mxu1 %v5978_v52 }
0x1046   :  { %5492 = vmatprep.mubr.msk.f32.mxu1 %vm413_vm4, %v2579_v25  ;;  %5971 = vmatprep.subr.bf16.mxu0 %v5970_v6 }
0x1047   :  { %5493 = vmatmul.mubr.msk.f32.gmra.mrb[30].mxu1 %vm413_vm4, %v2584_v28  ;;  %5973 = vmatpush3.bf16.msra.mxu0 %v5970_v6 }
0x1048   :  { %5981 = vmatpush3.bf16.msra.mxu1 %v5978_v52  ;;  %5531 = vmatprep.mubr.msk.f32.mxu1 %vm413_vm4, %v6787_v2 }
0x1049   :  { %5984 = vmatprep.subr.msk.bf16.mxu0 %vm6431_vm5, %v6795_v62  ;;  %5995 = vmatprep.subr.bf16.mxu1 %v5994_v15 }
0x104b   :  { %5532 = vmatmul.mubr.msk.f32.vlgmr.msra.gmra.mrb[32].mxu1 %vm413_vm4, %v6785_v16 }
0x104c   :  { %5997 = vmatpush3.bf16.msra.mxu1 %v5994_v15  ;;  %5534 = vmatprep.mubr.msk.f32.mxu1 %vm413_vm4, %v6803_v50  ;;  %v6050_v15 = vpack.c.bf16 %v3765_v22, %v3764_v21 }
0x104d   :  { %5999 = vmatprep.subr.bf16.mxu1 %v5998_v30 }
0x104f   :  { %5535 = vmatmul.mubr.msk.f32.gmra.mrb[34].mxu1 %vm413_vm4, %v6797_v45 }
0x1050   :  { %6001 = vmatpush3.bf16.msra.mxu1 %v5998_v30  ;;  %5559 = vmatprep.mubr.msk.f32.mxu1 %vm413_vm4, %v6787_v2  ;;  %v3767_v30 = vld [vmem:[#allocation2 + $0x310] sm:$0xff] }
0x1051   :  { %6011 = vmatprep.subr.bf16.mxu1 %v6010_v32  ;;  %v6066_v13 = vpack.c.bf16 %v3767_v30, %v3766_v29 }
0x1053   :  { %5560 = vmatmul.mubr.msk.f32.vlgmr.msra.gmra.mrb[36].mxu1 %vm413_vm4, %v6785_v16 }
0x1054   :  { %6013 = vmatpush3.bf16.msra.mxu1 %v6010_v32  ;;  %5562 = vmatprep.mubr.msk.f32.mxu1 %vm413_vm4, %v6803_v50 }
0x1055   :  { %6015 = vmatprep.subr.bf16.mxu1 %v6014_v33 }
0x1057   :  { %5563 = vmatmul.mubr.msk.f32.gmra.mrb[38].mxu1 %vm413_vm4, %v6797_v45 }
0x1058   :  { %6017 = vmatpush3.bf16.msra.mxu1 %v6014_v33  ;;  %5587 = vmatprep.mubr.msk.f32.mxu1 %vm413_vm4, %v6787_v2  ;;  %v3769_v33 = vld [vmem:[#allocation2 + $0x320] sm:$0xff] }
0x1059   :  { %6020 = vmatprep.subr.msk.bf16.mxu1 %vm6431_vm5, %v6795_v62  ;;  %v6070_v36 = vpack.c.bf16 %v3769_v33, %v3768_v17 }
0x105b   :  { %5588 = vmatmul.mubr.msk.f32.vlgmr.msra.gmra.mrb[40].mxu1 %vm413_vm4, %v6785_v16 }
0x105c   :  { %5590 = vmatprep.mubr.msk.f32.mxu1 %vm413_vm4, %v6803_v50 }
0x105f   :  { %5591 = vmatmul.mubr.msk.f32.gmra.mrb[42].mxu1 %vm413_vm4, %v6797_v45 }
0x1061   :  { %6023 = vmatpush3.bf16.xpose.msk.msra.mxu1 %vm6431_vm5, %v6795_v62 }
0x1062   :  { %6026 = vmatprep.subr.msk.bf16.mxu1 %vm6431_vm5, %v6817_v53 }
0x1069   :  { %6029 = vmatpush3.bf16.xpose.msk.msra.mxu1 %vm6431_vm5, %v6817_v53 }
0x106a   :  { %6047 = vmatprep.subr.bf16.mxu1 %v6046_v31 }
0x1116   :  { %v5491_v34 = vpop.f32.mrb[28].mxu1 }
0x1117   :  { %v6875_v35 = vadd.f32 %v5491_v34, %v6529_v37  ;;  %v2665_v18 = vpop.f32.mrb[29].mxu1 }
0x1118   :  { %v6878_v41 = vadd.f32 %v2665_v18, %v6531_v38 }
0x1119   :  { %v2687_v44 = vsel %vm413_vm4, %v6875_v35, -inf }
0x111a   :  { %2688 = vmax.xlane.f32.xlu0 %v2687_v44  ;;  %v5494_v56 = vpop.f32.mrb[30].mxu1  ;;  %v2684_v47 = vsel %vm413_vm4, %v6878_v41, -inf }
0x111b   :  { %v6885_v54 = vadd.f32 %v5494_v56, %v6545_v49  ;;  %2685 = vmax.xlane.f32.xlu1 %v2684_v47  ;;  %v2675_v55 = vpop.f32.mrb[31].mxu1 }
0x111c   :  { %v6888_v4 = vadd.f32 %v2675_v55, %v6539_v43 }
0x111d   :  { %v2693_v58 = vsel %vm413_vm4, %v6885_v54, -inf }
0x111e   :  { %2694 = vmax.xlane.f32.xlu0 %v2693_v58  ;;  %v6892_v63 = vpop.f32.mrb[32].mxu1  ;;  %v2690_v5 = vsel %vm413_vm4, %v6888_v4, -inf }
0x111f   :  { %v6896_v57 = vpop.f32.mrb[33].mxu1  ;;  %2691 = vmax.xlane.f32.xlu1 %v2690_v5 }
0x1122   :  { %v6898_v40 = vpop.f32.mrb[34].mxu1 }
0x1123   :  { %v6900_v42 = vpop.f32.mrb[35].mxu1 }
0x1126   :  { %v5561_v3 = vpop.f32.mrb[36].mxu1 }
0x1127   :  { %v3218_v60 = vpop.f32.mrb[37].mxu1 }
0x1128   :  { %v6902_v61 = vpack.c.bf16 %v5561_v3, %v3218_v60 }
0x112a   :  { %v5564_v52 = vpop.f32.mrb[38].mxu1 }
0x112b   :  { %v3228_v1 = vpop.f32.mrb[39].mxu1 }
0x112c   :  { %v6904_v14 = vpack.c.bf16 %v5564_v52, %v3228_v1 }
0x112e   :  { %v5589_v24 = vpop.f32.mrb[40].mxu1 }
0x112f   :  { %v3416_v25 = vpop.f32.mrb[41].mxu1  ;;  %v3422_v28 = vadd.f32 %v5589_v24, %v3349_v9 }
0x1130   :  { %v3417_v6 = vadd.f32 %v3416_v25, %v3349_v9 }
0x1132   :  { %v5592_v10 = vpop.f32.mrb[42].mxu1  ;;  %5601 = vmatprep.mubr.msk.f32.mxu1 %vm413_vm4, %v3417_v6 }
0x1133   :  { %v3426_v26 = vpop.f32.mrb[43].mxu1  ;;  %5602 = vmatmul.mubr.msk.f32.vlgmr.msra.gmra.mrb[44].mxu1 %vm413_vm4, %v3422_v28  ;;  %v3432_v32 = vadd.f32 %v5592_v10, %v3349_v9 }
0x1134   :  { %v3427_v0 = vadd.f32 %v3426_v26, %v3349_v9  ;;  %6049 = vmatpush3.bf16.msra.mxu1 %v6046_v31 }
0x1135   :  { %6051 = vmatprep.subr.bf16.mxu1 %v6050_v15 }
0x1136   :  { %5604 = vmatprep.mubr.msk.f32.mxu1 %vm413_vm4, %v3427_v0 }
0x1137   :  { %5605 = vmatmul.mubr.msk.f32.gmra.mrb[46].mxu1 %vm413_vm4, %v3432_v32 }
0x1138   :  { %6053 = vmatpush3.bf16.msra.mxu1 %v6050_v15  ;;  %5643 = vmatprep.mubr.msk.f32.mxu1 %vm413_vm4, %v6787_v2 }
0x1139   :  { %6067 = vmatprep.subr.bf16.mxu1 %v6066_v13 }
0x113b   :  { %5644 = vmatmul.mubr.msk.f32.vlgmr.msra.gmra.mrb[48].mxu1 %vm413_vm4, %v6785_v16 }
0x113c   :  { %5646 = vmatprep.mubr.msk.f32.mxu1 %vm413_vm4, %v6803_v50  ;;  %6069 = vmatpush3.bf16.msra.mxu1 %v6066_v13 }
0x113d   :  { %6071 = vmatprep.subr.bf16.mxu1 %v6070_v36 }
0x113f   :  { %5647 = vmatmul.mubr.msk.f32.gmra.mrb[50].mxu1 %vm413_vm4, %v6797_v45 }
0x1140   :  { %6073 = vmatpush3.bf16.msra.mxu1 %v6070_v36  ;;  %5671 = vmatprep.mubr.msk.f32.mxu1 %vm413_vm4, %v6787_v2 }
0x1143   :  { %5672 = vmatmul.mubr.msk.f32.vlgmr.msra.gmra.mrb[52].mxu1 %vm413_vm4, %v6785_v16 }
0x1144   :  { %5674 = vmatprep.mubr.msk.f32.mxu1 %vm413_vm4, %v6803_v50 }
0x1147   :  { %5675 = vmatmul.mubr.msk.f32.gmra.mrb[54].mxu1 %vm413_vm4, %v6797_v45 }
0x11a7   :  { %v2689_v39 = vpop.xlane.xlu0 %2688 }
0x11a8   :  { %v2697_v31 = vsub.f32 %v6875_v35, %v2689_v39  ;;  %v2686_v34 = vpop.xlane.xlu1 %2685 }
0x11a9   :  { %v2696_v18 = vsub.f32 %v6878_v41, %v2686_v34 }
0x11aa   :  { %v2702_v44 = vmul.f32 1.442695, %v2697_v31 }
0x11ab   :  { %v2700_v56 = vmul.f32 1.442695, %v2696_v18  ;;  %v2695_v47 = vpop.xlane.xlu0 %2694 }
0x11ac   :  { %6240 = vpow2.f32 %v2702_v44  ;;  %v2699_v55 = vsub.f32 %v6885_v54, %v2695_v47  ;;  %v2692_v58 = vpop.xlane.xlu1 %2691 }
0x11ad   :  { %6242 = vpow2.f32 %v2700_v56  ;;  %v2698_v5 = vsub.f32 %v6888_v4, %v2692_v58 }
0x11ae   :  { %v2706_v3 = vmul.f32 1.442695, %v2699_v55  ;;  %v2925_v55 = vrot.slane %v6769_v12, %v6751_v11 }
0x11af   :  { %v2704_v60 = vmul.f32 1.442695, %v2698_v5 }
0x11b0   :  { %6244 = vpow2.f32 %v2706_v3 }
0x11b1   :  { %6246 = vpow2.f32 %v2704_v60  ;;  %v2993_v60 = vadd.f32 %v6896_v57, %v2925_v55  ;;  %v3008_v57 = vadd.f32 %v6898_v40, %v2925_v55 }
0x11b6   :  { %v6241_v52 = vpop.eup %6240 }
0x11b7   :  { %v6243_v1 = vpop.eup %6242  ;;  %v2711_v35 = vsel %vm413_vm4, %v6241_v52, 0.0 }
0x11b8   :  { %2712 = vadd.xlane.f32.xlu0 %v2711_v35  ;;  %v2708_v41 = vsel %vm413_vm4, %v6243_v1, 0.0 }
0x11b9   :  { %2709 = vadd.xlane.f32.xlu1 %v2708_v41 }
0x11ba   :  { %v6245_v9 = vpop.eup %6244 }
0x11bb   :  { %v6247_v24 = vpop.eup %6246  ;;  %v2717_v54 = vsel %vm413_vm4, %v6245_v9, 0.0 }
0x11bc   :  { %2718 = vadd.xlane.f32.xlu0 %v2717_v54  ;;  %v2714_v21 = vsel %vm413_vm4, %v6247_v24, 0.0 }
0x11bd   :  { %2715 = vadd.xlane.f32.xlu1 %v2714_v21 }
0x1206   :  { %v6936_v4 = vpop.f32.mrb[44].mxu1 }
0x1207   :  { %v6938_v22 = vpop.f32.mrb[45].mxu1 }
0x120a   :  { %v6940_v25 = vpop.f32.mrb[46].mxu1 }
0x120b   :  { %v6942_v6 = vpop.f32.mrb[47].mxu1 }
0x120e   :  { %v6944_v28 = vpop.f32.mrb[48].mxu1 }
0x120f   :  { %v6946_v15 = vpop.f32.mrb[49].mxu1 }
0x1212   :  { %v6948_v10 = vpop.f32.mrb[50].mxu1 }
0x1213   :  { %v6950_v29 = vpop.f32.mrb[51].mxu1 }
0x1216   :  { %v5673_v30 = vpop.f32.mrb[52].mxu1 }
0x1217   :  { %v4066_v26 = vpop.f32.mrb[53].mxu1 }
0x1218   :  { %v6952_v0 = vpack.c.bf16 %v5673_v30, %v4066_v26 }
0x121a   :  { %v5676_v32 = vpop.f32.mrb[54].mxu1 }
0x121b   :  { %v4076_v13 = vpop.f32.mrb[55].mxu1 }
0x121c   :  { %v6954_v17 = vpack.c.bf16 %v5676_v32, %v4076_v13 }
0x1245   :  { %v2713_v33 = vpop.xlane.xlu0 %2712 }
0x1246   :  { %6248 = vrcp.f32 %v2713_v33  ;;  %v2710_v36 = vpop.xlane.xlu1 %2709 }
0x1247   :  { %6250 = vrcp.f32 %v2710_v36 }
0x1249   :  { %v2719_v39 = vpop.xlane.xlu0 %2718 }
0x124a   :  { %6252 = vrcp.f32 %v2719_v39  ;;  %v2716_v31 = vpop.xlane.xlu1 %2715 }
0x124b   :  { %6254 = vrcp.f32 %v2716_v31 }
0x1250   :  { %v6249_v34 = vpop.eup %6248 }
0x1251   :  { %v6251_v18 = vpop.eup %6250  ;;  %v2725_v56 = vmul.f32 %v6249_v34, %v6241_v52  ;;  %v2998_v52 = vadd.f32 %v6892_v63, %v2925_v55 }
0x1252   :  { %v2724_v44 = vmul.f32 %v6251_v18, %v6243_v1  ;;  %v3003_v1 = vadd.f32 %v6900_v42, %v2925_v55 }
0x1254   :  { %v6253_v47 = vpop.eup %6252  ;;  %5517 = vmatprep.mubr.msk.f32.mxu0 %vm413_vm4, %v2724_v44 }
0x1255   :  { %v6255_v58 = vpop.eup %6254  ;;  %5518 = vmatmul.mubr.msk.f32.vlgmr.msra.gmra.mrb[46].mxu0 %vm413_vm4, %v2725_v56  ;;  %v2727_v3 = vmul.f32 %v6253_v47, %v6245_v9 }
0x1256   :  { %5987 = vmatpush3.bf16.xpose.msk.msra.mxu0 %vm6431_vm5, %v6795_v62  ;;  %v2726_v5 = vmul.f32 %v6255_v58, %v6247_v24 }
0x1257   :  { %5990 = vmatprep.subr.msk.bf16.mxu0 %vm6431_vm5, %v6817_v53 }
0x1258   :  { %5520 = vmatprep.mubr.msk.f32.mxu0 %vm413_vm4, %v2726_v5 }
0x1259   :  { %5521 = vmatmul.mubr.msk.f32.gmra.mrb[48].mxu0 %vm413_vm4, %v2727_v3 }
0x125a   :  { %5545 = vmatprep.mubr.msk.f32.mxu0 %vm413_vm4, %v2993_v60 }
0x125e   :  { %5993 = vmatpush3.bf16.xpose.msk.msra.mxu0 %vm6431_vm5, %v6817_v53 }
0x125f   :  { %6003 = vmatprep.subr.bf16.mxu0 %v6902_v61 }
0x1265   :  { %5546 = vmatmul.mubr.msk.f32.vlgmr.msra.gmra.mrb[50].mxu0 %vm413_vm4, %v2998_v52 }
0x1266   :  { %5548 = vmatprep.mubr.msk.f32.mxu0 %vm413_vm4, %v3003_v1  ;;  %6005 = vmatpush3.bf16.msra.mxu0 %v6902_v61  ;;  %v3519_v1 = vadd.f32 %v6936_v4, %v6529_v37 }
0x1267   :  { %6007 = vmatprep.subr.bf16.mxu0 %v6904_v14 }
0x1269   :  { %5549 = vmatmul.mubr.msk.f32.gmra.mrb[52].mxu0 %vm413_vm4, %v3008_v57 }
0x126a   :  { %6009 = vmatpush3.bf16.msra.mxu0 %v6904_v14 }
0x1338   :  { %v5547_v35 = vpop.f32.mrb[50].mxu0 }
0x1339   :  { %v3095_v41 = vadd.f32 %v5547_v35, %v6529_v37  ;;  %v3089_v63 = vpop.f32.mrb[51].mxu0  ;;  %v3514_v35 = vadd.f32 %v6938_v22, %v6531_v38 }
0x133a   :  { %v3090_v42 = vadd.f32 %v3089_v63, %v6531_v38  ;;  %v3529_v63 = vadd.f32 %v6940_v25, %v6545_v49 }
0x133b   :  { %v3111_v9 = vsel %vm413_vm4, %v3095_v41, -inf  ;;  %v3532_v4 = vsel %vm413_vm4, %v3514_v35, -inf }
0x133c   :  { %3112 = vmax.xlane.f32.xlu0 %v3111_v9  ;;  %v5550_v24 = vpop.f32.mrb[52].mxu0  ;;  %v3108_v61 = vsel %vm413_vm4, %v3090_v42, -inf  ;;  %v3524_v9 = vadd.f32 %v6942_v6, %v6539_v43 }
0x133d   :  { %v3105_v40 = vadd.f32 %v5550_v24, %v6545_v49  ;;  %v3099_v54 = vpop.f32.mrb[53].mxu0  ;;  %3109 = vmax.xlane.f32.xlu1 %v3108_v61  ;;  %v3541_v24 = vsel %vm413_vm4, %v3529_v63, -inf  ;;  %v3342_v61 = vld [vmem:[#allocation2 + $0x2e8] sm:$0xff] }
0x133e   :  { %v3100_v21 = vadd.f32 %v3099_v54, %v6539_v43  ;;  %v3538_v22 = vsel %vm413_vm4, %v3524_v9, -inf }
0x133f   :  { %v3117_v14 = vsel %vm413_vm4, %v3105_v40, -inf }
0x1340   :  { %3118 = vmax.xlane.f32.xlu0 %v3117_v14  ;;  %v3114_v30 = vsel %vm413_vm4, %v3100_v21, -inf }
0x1341   :  { %3115 = vmax.xlane.f32.xlu1 %v3114_v30 }
0x13c9   :  { %v3113_v26 = vpop.xlane.xlu0 %3112 }
0x13ca   :  { %v3121_v32 = vsub.f32 %v3095_v41, %v3113_v26  ;;  %v3110_v13 = vpop.xlane.xlu1 %3109 }
0x13cb   :  { %v3120_v33 = vsub.f32 %v3090_v42, %v3110_v13  ;;  %v3535_v42 = vsel %vm413_vm4, %v3519_v1, -inf }
0x13cc   :  { %v3126_v36 = vmul.f32 1.442695, %v3121_v32 }
0x13cd   :  { %v3124_v39 = vmul.f32 1.442695, %v3120_v33  ;;  %v3119_v31 = vpop.xlane.xlu0 %3118 }
0x13ce   :  { %6256 = vpow2.f32 %v3126_v36  ;;  %v3123_v34 = vsub.f32 %v3105_v40, %v3119_v31  ;;  %v3116_v18 = vpop.xlane.xlu1 %3115  ;;  %v3343_v40 = vld [vmem:[#allocation2 + $0x2f0] sm:$0xff]  ;;  %v3345_v31 = vld [vmem:[#allocation2 + $0x300] sm:$0xff] }
0x13cf   :  { %6258 = vpow2.f32 %v3124_v39  ;;  %v3122_v44 = vsub.f32 %v3100_v21, %v3116_v18  ;;  %v6030_v54 = vpack.c.bf16 %v3343_v40, %v3342_v61  ;;  %v3344_v39 = vld [vmem:[#allocation2 + $0x2f8] sm:$0xff] }
0x13d0   :  { %v3130_v56 = vmul.f32 1.442695, %v3123_v34 }
0x13d1   :  { %v3128_v47 = vmul.f32 1.442695, %v3122_v44  ;;  %6031 = vmatprep.subr.bf16.mxu0 %v6030_v54 }
0x13d2   :  { %6260 = vpow2.f32 %v3130_v56 }
0x13d3   :  { %6262 = vpow2.f32 %v3128_v47 }
0x13d8   :  { %v6257_v55 = vpop.eup %6256 }
0x13d9   :  { %v6259_v58 = vpop.eup %6258  ;;  %v3135_v5 = vsel %vm413_vm4, %v6257_v55, 0.0 }
0x13da   :  { %3136 = vadd.xlane.f32.xlu0 %v3135_v5  ;;  %v3132_v3 = vsel %vm413_vm4, %v6259_v58, 0.0 }
0x13db   :  { %3133 = vadd.xlane.f32.xlu1 %v3132_v3 }
0x13dc   :  { %v6261_v60 = vpop.eup %6260 }
0x13dd   :  { %v6263_v52 = vpop.eup %6262  ;;  %v3141_v57 = vsel %vm413_vm4, %v6261_v60, 0.0 }
0x13de   :  { %3142 = vadd.xlane.f32.xlu0 %v3141_v57  ;;  %v3138_v41 = vsel %vm413_vm4, %v6263_v52, 0.0 }
0x13df   :  { %3139 = vadd.xlane.f32.xlu1 %v3138_v41  ;;  %v6034_v41 = vpack.c.bf16 %v3345_v31, %v3344_v39 }
0x13e2   :  { %3536 = vmax.xlane.f32.xlu0 %v3535_v42 }
0x13e3   :  { %3533 = vmax.xlane.f32.xlu1 %v3532_v4 }
0x13e6   :  { %3542 = vmax.xlane.f32.xlu0 %v3541_v24 }
0x13e7   :  { %3539 = vmax.xlane.f32.xlu1 %v3538_v22 }
0x1467   :  { %v3137_v25 = vpop.xlane.xlu0 %3136 }
0x1468   :  { %6264 = vrcp.f32 %v3137_v25  ;;  %v3134_v21 = vpop.xlane.xlu1 %3133 }
0x1469   :  { %6266 = vrcp.f32 %v3134_v21 }
0x146b   :  { %v3143_v14 = vpop.xlane.xlu0 %3142 }
0x146c   :  { %6268 = vrcp.f32 %v3143_v14  ;;  %v3140_v6 = vpop.xlane.xlu1 %3139 }
0x146d   :  { %6270 = vrcp.f32 %v3140_v6 }
0x146f   :  { %v3537_v30 = vpop.xlane.xlu0 %3536 }
0x1470   :  { %v3545_v26 = vsub.f32 %v3519_v1, %v3537_v30  ;;  %v3534_v32 = vpop.xlane.xlu1 %3533 }
0x1471   :  { %v3544_v13 = vsub.f32 %v3514_v35, %v3534_v32 }
0x1472   :  { %v6265_v33 = vpop.eup %6264  ;;  %v3550_v36 = vmul.f32 1.442695, %v3545_v26 }
0x1473   :  { %v6267_v34 = vpop.eup %6266  ;;  %v3548_v18 = vmul.f32 1.442695, %v3544_v13  ;;  %v3543_v44 = vpop.xlane.xlu0 %3542  ;;  %v3149_v3 = vmul.f32 %v6265_v33, %v6257_v55 }
0x1474   :  { %6272 = vpow2.f32 %v3550_v36  ;;  %v3547_v56 = vsub.f32 %v3529_v63, %v3543_v44  ;;  %v3540_v47 = vpop.xlane.xlu1 %3539  ;;  %v3148_v5 = vmul.f32 %v6267_v34, %v6259_v58 }
0x1475   :  { %6274 = vpow2.f32 %v3548_v18  ;;  %v3546_v57 = vsub.f32 %v3524_v9, %v3540_v47 }
0x1476   :  { %v6269_v42 = vpop.eup %6268  ;;  %v3554_v4 = vmul.f32 1.442695, %v3547_v56  ;;  %5573 = vmatprep.mubr.msk.f32.mxu0 %vm413_vm4, %v3148_v5  ;;  %v3773_v56 = vrot.slane %v6769_v12, %v2197_v59 }
0x1477   :  { %v6271_v1 = vpop.eup %6270  ;;  %v3552_v35 = vmul.f32 1.442695, %v3546_v57  ;;  %5574 = vmatmul.mubr.msk.f32.vlgmr.msra.gmra.mrb[46].mxu0 %vm413_vm4, %v3149_v3  ;;  %v3151_v63 = vmul.f32 %v6269_v42, %v6261_v60 }
0x1478   :  { %6276 = vpow2.f32 %v3554_v4  ;;  %6033 = vmatpush3.bf16.msra.mxu0 %v6030_v54  ;;  %v3150_v24 = vmul.f32 %v6271_v1, %v6263_v52  ;;  %v3841_v3 = vadd.f32 %v6946_v15, %v3773_v56  ;;  %v3846_v46 = vadd.f32 %v6944_v28, %v3773_v56 }
0x1479   :  { %6278 = vpow2.f32 %v3552_v35  ;;  %6035 = vmatprep.subr.bf16.mxu0 %v6034_v41  ;;  %v3851_v59 = vadd.f32 %v6950_v29, %v3773_v56  ;;  %v3856_v12 = vadd.f32 %v6948_v10, %v3773_v56 }
0x147a   :  { %5576 = vmatprep.mubr.msk.f32.mxu0 %vm413_vm4, %v3150_v24 }
0x147b   :  { %5577 = vmatmul.mubr.msk.f32.gmra.mrb[48].mxu0 %vm413_vm4, %v3151_v63 }
0x147c   :  { %6037 = vmatpush3.bf16.msra.mxu0 %v6034_v41  ;;  %5615 = vmatprep.mubr.msk.f32.mxu0 %vm413_vm4, %v6787_v2 }
0x147e   :  { %v6273_v55 = vpop.eup %6272 }
0x147f   :  { %v6275_v58 = vpop.eup %6274  ;;  %5616 = vmatmul.mubr.msk.f32.vlgmr.msra.gmra.mrb[54].mxu0 %vm413_vm4, %v6785_v16  ;;  %v3559_v9 = vsel %vm413_vm4, %v6273_v55, 0.0 }
0x1480   :  { %3560 = vadd.xlane.f32.xlu0 %v3559_v9  ;;  %5618 = vmatprep.mubr.msk.f32.mxu0 %vm413_vm4, %v6803_v50  ;;  %v3556_v60 = vsel %vm413_vm4, %v6275_v58, 0.0 }
0x1481   :  { %3557 = vadd.xlane.f32.xlu1 %v3556_v60 }
0x1482   :  { %v6277_v52 = vpop.eup %6276 }
0x1483   :  { %v6279_v22 = vpop.eup %6278  ;;  %5619 = vmatmul.mubr.msk.f32.gmra.mrb[56].mxu0 %vm413_vm4, %v6797_v45  ;;  %v3565_v61 = vsel %vm413_vm4, %v6277_v52, 0.0 }
0x1484   :  { %3566 = vadd.xlane.f32.xlu0 %v3565_v61  ;;  %v3562_v40 = vsel %vm413_vm4, %v6279_v22, 0.0 }
0x1485   :  { %3563 = vadd.xlane.f32.xlu1 %v3562_v40 }
0x150d   :  { %v3561_v14 = vpop.xlane.xlu0 %3560 }
0x150e   :  { %v3558_v54 = vpop.xlane.xlu1 %3557 }
0x150f   :  { %6280 = vrcp.f32 %v3558_v54 }
0x1510   :  { %6282 = vrcp.f32 %v3561_v14 }
0x1511   :  { %v3567_v30 = vpop.xlane.xlu0 %3566 }
0x1512   :  { %v3564_v6 = vpop.xlane.xlu1 %3563 }
0x1513   :  { %6284 = vrcp.f32 %v3564_v6 }
0x1514   :  { %6286 = vrcp.f32 %v3567_v30 }
0x1519   :  { %v6281_v25 = vpop.eup %6280 }
0x151a   :  { %v3572_v21 = vmul.f32 %v6281_v25, %v6275_v58  ;;  %v6283_v31 = vpop.eup %6282 }
0x151b   :  { %v3573_v18 = vmul.f32 %v6283_v31, %v6273_v55 }
0x151c   :  { %5629 = vmatprep.mubr.msk.f32.mxu0 %vm413_vm4, %v3572_v21 }
0x151d   :  { %v6285_v34 = vpop.eup %6284 }
0x151e   :  { %v6287_v44 = vpop.eup %6286  ;;  %v3574_v47 = vmul.f32 %v6285_v34, %v6279_v22 }
0x151f   :  { %v3575_v5 = vmul.f32 %v6287_v44, %v6277_v52  ;;  %v7070_v44 = vld [vmem:[#allocation2 + $0x18] sm:$0xff] }
0x1520   :  { %v2476_v56 = vrot.slane %v7070_v44, %v6406_v51 }
0x1552   :  { %v5617_v26 = vpop.f32.mrb[54].mxu0 }
0x1553   :  { %v3642_v32 = vpop.f32.mrb[55].mxu0 }
0x1554   :  { %v6038_v13 = vpack.c.bf16 %v5617_v26, %v3642_v32 }
0x1556   :  { %v5620_v33 = vpop.f32.mrb[56].mxu0  ;;  %6039 = vmatprep.subr.bf16.mxu0 %v6038_v13 }
0x1557   :  { %v3652_v36 = vpop.f32.mrb[57].mxu0  ;;  %6041 = vmatpush3.bf16.msra.mxu0 %v6038_v13 }
0x1558   :  { %v6042_v39 = vpack.c.bf16 %v5620_v33, %v3652_v36 }
0x155a   :  { %6043 = vmatprep.subr.bf16.mxu0 %v6042_v39 }
0x155b   :  { %6045 = vmatpush3.bf16.msra.mxu0 %v6042_v39 }
0x155c   :  { %6056 = vmatprep.subr.msk.bf16.mxu0 %vm6431_vm5, %v6795_v62 }
0x155e   :  { %5630 = vmatmul.mubr.msk.f32.vlgmr.msra.gmra.mrb[46].mxu0 %vm413_vm4, %v3573_v18 }
0x155f   :  { %5632 = vmatprep.mubr.msk.f32.mxu0 %vm413_vm4, %v3574_v47 }
0x1562   :  { %5633 = vmatmul.mubr.msk.f32.gmra.mrb[48].mxu0 %vm413_vm4, %v3575_v5 }
0x1563   :  { %5657 = vmatprep.mubr.msk.f32.mxu0 %vm413_vm4, %v3841_v3 }
0x1564   :  { %6059 = vmatpush3.bf16.xpose.msk.msra.mxu0 %vm6431_vm5, %v6795_v62 }
0x1565   :  { %6062 = vmatprep.subr.msk.bf16.mxu0 %vm6431_vm5, %v6817_v53 }
0x156c   :  { %6065 = vmatpush3.bf16.xpose.msk.msra.mxu0 %vm6431_vm5, %v6817_v53  ;;  %vm4608_vm5 = vcmp.lt.s32.totalorder %v6395_v19, 12 }
0x156d   :  { %6075 = vmatprep.subr.bf16.mxu0 %v6952_v0 }
0x1573   :  { %5658 = vmatmul.mubr.msk.f32.vlgmr.msra.gmra.mrb[58].mxu0 %vm413_vm4, %v3846_v46 }
0x1574   :  { %5660 = vmatprep.mubr.msk.f32.mxu0 %vm413_vm4, %v3851_v59  ;;  %6077 = vmatpush3.bf16.msra.mxu0 %v6952_v0 }
0x1575   :  { %6079 = vmatprep.subr.bf16.mxu0 %v6954_v17 }
0x1577   :  { %5661 = vmatmul.mubr.msk.f32.gmra.mrb[60].mxu0 %vm413_vm4, %v3856_v12 }
0x1578   :  { %6081 = vmatpush3.bf16.msra.mxu0 %v6954_v17 }
0x1646   :  { %v5659_v20 = vpop.f32.mrb[58].mxu0 }
0x1647   :  { %v3943_v62 = vadd.f32 %v5659_v20, %v6529_v37  ;;  %v3937_v53 = vpop.f32.mrb[59].mxu0 }
0x1648   :  { %v3938_v28 = vadd.f32 %v3937_v53, %v6531_v38 }
0x1649   :  { %v3959_v15 = vsel %vm413_vm4, %v3943_v62, -inf }
0x164a   :  { %3960 = vmax.xlane.f32.xlu0 %v3959_v15  ;;  %v5662_v29 = vpop.f32.mrb[60].mxu0  ;;  %v3956_v0 = vsel %vm413_vm4, %v3938_v28, -inf }
0x164b   :  { %v3947_v57 = vpop.f32.mrb[61].mxu0  ;;  %3957 = vmax.xlane.f32.xlu1 %v3956_v0  ;;  %v3953_v38 = vadd.f32 %v5662_v29, %v6545_v49 }
0x164c   :  { %v3948_v63 = vadd.f32 %v3947_v57, %v6539_v43 }
0x164d   :  { %v3965_v58 = vsel %vm413_vm4, %v3953_v38, -inf }
0x164e   :  { %v3962_v9 = vsel %vm413_vm4, %v3948_v63, -inf }
0x16d7   :  { %v3961_v10 = vpop.xlane.xlu0 %3960 }
0x16d8   :  { %v3969_v41 = vsub.f32 %v3943_v62, %v3961_v10  ;;  %v3958_v42 = vpop.xlane.xlu1 %3957 }
0x16d9   :  { %v3968_v4 = vsub.f32 %v3938_v28, %v3958_v42 }
0x16da   :  { %v3974_v1 = vmul.f32 1.442695, %v3969_v41 }
0x16db   :  { %v3972_v17 = vmul.f32 1.442695, %v3968_v4 }
0x16dc   :  { %6288 = vpow2.f32 %v3974_v1 }
0x16dd   :  { %6290 = vpow2.f32 %v3972_v17 }
0x16e6   :  { %v6289_v37 = vpop.eup %6288 }
0x16e7   :  { %v6291_v35 = vpop.eup %6290  ;;  %v3983_v24 = vsel %vm413_vm4, %v6289_v37, 0.0 }
0x16e8   :  { %3984 = vadd.xlane.f32.xlu0 %v3983_v24  ;;  %v3980_v55 = vsel %vm413_vm4, %v6291_v35, 0.0  ;;  %v4258_v24 = vld [vmem:[#allocation2 + $0x328] sm:$0xff] }
0x16e9   :  { %3981 = vadd.xlane.f32.xlu1 %v3980_v55 }
0x16ec   :  { %3966 = vmax.xlane.f32.xlu0 %v3965_v58  ;;  %v4260_v58 = vld [vmem:[#allocation2 + $0x338] sm:$0xff] }
0x16ed   :  { %3963 = vmax.xlane.f32.xlu1 %v3962_v9  ;;  %v4261_v9 = vld [vmem:[#allocation2 + $0x340] sm:$0xff] }
0x1775   :  { %v3985_v60 = vpop.xlane.xlu0 %3984 }
0x1776   :  { %6292 = vrcp.f32 %v3985_v60  ;;  %v3982_v52 = vpop.xlane.xlu1 %3981  ;;  %v6086_v60 = vpack.c.bf16 %v4261_v9, %v4260_v58 }
0x1777   :  { %6294 = vrcp.f32 %v3982_v52 }
0x1779   :  { %v3967_v22 = vpop.xlane.xlu0 %3966 }
0x177a   :  { %v3971_v49 = vsub.f32 %v3953_v38, %v3967_v22  ;;  %v3964_v61 = vpop.xlane.xlu1 %3963 }
0x177b   :  { %v3970_v40 = vsub.f32 %v3948_v63, %v3964_v61  ;;  %v4259_v63 = vld [vmem:[#allocation2 + $0x330] sm:$0xff] }
0x177c   :  { %v3978_v54 = vmul.f32 1.442695, %v3971_v49  ;;  %v6082_v55 = vpack.c.bf16 %v4259_v63, %v4258_v24  ;;  %v4273_v24 = vrot.slane %v7070_v44, %v6417_v8  ;;  %v4378_v8 = vrot.slane %v7070_v44, %v6734_v23 }
0x177d   :  { %v3976_v43 = vmul.f32 1.442695, %v3970_v40 }
0x177e   :  { %6296 = vpow2.f32 %v3978_v54  ;;  %6083 = vmatprep.subr.bf16.mxu1 %v6082_v55  ;;  %v4245_v54 = vrot.slane %v7070_v44, %v6402_v48 }
0x177f   :  { %6298 = vpow2.f32 %v3976_v43  ;;  %6085 = vmatpush3.bf16.msra.mxu1 %v6082_v55 }
0x1780   :  { %v6293_v25 = vpop.eup %6292  ;;  %6087 = vmatprep.subr.bf16.mxu1 %v6086_v60 }
0x1781   :  { %v6295_v21 = vpop.eup %6294  ;;  %v3997_v6 = vmul.f32 %v6293_v25, %v6289_v37 }
0x1782   :  { %v3996_v14 = vmul.f32 %v6295_v21, %v6291_v35 }
0x1783   :  { %6089 = vmatpush3.bf16.msra.mxu1 %v6086_v60 }
0x1784   :  { %5685 = vmatprep.mubr.msk.f32.mxu0 %vm413_vm4, %v3996_v14 }
0x1785   :  { %5686 = vmatmul.mubr.msk.f32.vlgmr.msra.gmra.mrb[46].mxu0 %vm413_vm4, %v3997_v6 }
0x1788   :  { %v6297_v30 = vpop.eup %6296 }
0x1789   :  { %v6299_v26 = vpop.eup %6298  ;;  %v3989_v32 = vsel %vm413_vm4, %v6297_v30, 0.0 }
0x178a   :  { %3990 = vadd.xlane.f32.xlu0 %v3989_v32  ;;  %v3986_v13 = vsel %vm413_vm4, %v6299_v26, 0.0 }
0x178b   :  { %3987 = vadd.xlane.f32.xlu1 %v3986_v13 }
0x1817   :  { %v3991_v33 = vpop.xlane.xlu0 %3990 }
0x1818   :  { %6300 = vrcp.f32 %v3991_v33  ;;  %v3988_v36 = vpop.xlane.xlu1 %3987  ;;  %v4253_v33 = vrot.slane %v7070_v44, %v6414_v7  ;;  %v4262_v7 = vld [vmem:[#allocation2 + $0x348] sm:$0xff] }
0x1819   :  { %6302 = vrcp.f32 %v3988_v36 }
0x1822   :  { %v6301_v39 = vpop.eup %6300 }
0x1823   :  { %v6303_v31 = vpop.eup %6302  ;;  %v3999_v18 = vmul.f32 %v6301_v39, %v6297_v30 }
0x1824   :  { %v3998_v34 = vmul.f32 %v6303_v31, %v6299_v26 }
0x1826   :  { %5688 = vmatprep.mubr.msk.f32.mxu0 %vm413_vm4, %v3998_v34 }
0x1827   :  { %5689 = vmatmul.mubr.msk.f32.gmra.mrb[48].mxu0 %vm413_vm4, %v3999_v18 }
0x1858   :  { %v5687_v47 = vpop.f32.mrb[46].mxu0 }
0x1859   :  { %v6118_v5 = vadd.f32 %v5687_v47, %v2476_v56  ;;  %v4163_v3 = vpop.f32.mrb[47].mxu0 }
0x185a   :  { %v6119_v46 = vadd.f32 %v4163_v3, %v2476_v56  ;;  %v4264_v3 = vld [vmem:[#allocation2 + $0x358] sm:$0xff] }
0x185b   :  { %v4187_v59 = vadd.f32 %v6118_v5, %v6785_v16  ;;  %v4263_v5 = vld [vmem:[#allocation2 + $0x350] sm:$0xff] }
0x185c   :  { %v4186_v12 = vadd.f32 %v6119_v46, %v6787_v2  ;;  %v6090_v46 = vpack.c.bf16 %v4263_v5, %v4262_v7  ;;  %v4514_v5 = vld [vmem:[#allocation2 + $0xa8] sm:$0xff] }
0x185d   :  { %v4193_v20 = vsel %vm413_vm4, %v4187_v59, 0.0 }
0x185e   :  { %4194 = vadd.xlane.f32.xlu0 %v4193_v20  ;;  %v4190_v62 = vsel %vm413_vm4, %v4186_v12, 0.0  ;;  %v4266_v20 = vld [vmem:[#allocation2 + $0x368] sm:$0xff]  ;;  %6091 = vmatprep.subr.bf16.mxu1 %v6090_v46 }
0x185f   :  { %4191 = vadd.xlane.f32.xlu1 %v4190_v62  ;;  %v4267_v62 = vld [vmem:[#allocation2 + $0x370] sm:$0xff] }
0x18eb   :  { %v4195_v53 = vpop.xlane.xlu0 %4194 }
0x18ec   :  { %v4203_v28 = vmul.f32 0.03125, %v4195_v53  ;;  %v4192_v15 = vpop.xlane.xlu1 %4191  ;;  %v6098_v53 = vpack.c.bf16 %v4267_v62, %v4266_v20 }
0x18ed   :  { %v4202_v29 = vmul.f32 0.03125, %v4192_v15  ;;  %v4269_v15 = vld [vmem:[#allocation2 + $0x380] sm:$0xff] }
0x18ee   :  { %v4207_v0 = vsub.f32 %v4187_v59, %v4203_v28  ;;  %v4265_v59 = vld [vmem:[#allocation2 + $0x360] sm:$0xff]  ;;  %v4268_v28 = vld [vmem:[#allocation2 + $0x378] sm:$0xff] }
0x18ef   :  { %v4206_v51 = vsub.f32 %v4186_v12, %v4202_v29  ;;  %v6094_v12 = vpack.c.bf16 %v4265_v59, %v4264_v3  ;;  %v6102_v29 = vpack.c.bf16 %v4269_v15, %v4268_v28  ;;  %v4515_v3 = vld [vmem:[#allocation2 + $0xb0] sm:$0xff]  ;;  %v4516_v59 = vld [vmem:[#allocation2 + $0xb8] sm:$0xff] }
0x18f0   :  { %v4211_v57 = vmul.f32 %v4207_v0, %v4207_v0 }
0x18f1   :  { %v4210_v10 = vmul.f32 %v4206_v51, %v4206_v51 }
0x18f2   :  { %v4217_v41 = vsel %vm413_vm4, %v4211_v57, 0.0 }
0x18f3   :  { %4218 = vadd.xlane.f32.xlu0 %v4217_v41  ;;  %v4214_v16 = vsel %vm413_vm4, %v4210_v10, 0.0 }
0x18f4   :  { %4215 = vadd.xlane.f32.xlu1 %v4214_v16 }
0x18fa   :  { %v5690_v2 = vpop.f32.mrb[48].mxu0 }
0x18fb   :  { %v6120_v42 = vadd.f32 %v5690_v2, %v2476_v56  ;;  %v4173_v4 = vpop.f32.mrb[49].mxu0 }
0x18fc   :  { %v6121_v1 = vadd.f32 %v4173_v4, %v2476_v56 }
0x18fd   :  { %v4189_v17 = vadd.f32 %v6120_v42, %v6797_v45 }
0x18fe   :  { %v4188_v37 = vadd.f32 %v6121_v1, %v6803_v50 }
0x18ff   :  { %v4199_v35 = vsel %vm413_vm4, %v4189_v17, 0.0 }
0x1900   :  { %4200 = vadd.xlane.f32.xlu0 %v4199_v35  ;;  %v4196_v38 = vsel %vm413_vm4, %v4188_v37, 0.0 }
0x1901   :  { %4197 = vadd.xlane.f32.xlu1 %v4196_v38 }
0x1980   :  { %v4219_v52 = vpop.xlane.xlu0 %4218 }
0x1981   :  { %v4227_v45 = vmul.f32 0.03125, %v4219_v52  ;;  %v4216_v22 = vpop.xlane.xlu1 %4215 }
0x1982   :  { %v4226_v50 = vmul.f32 0.03125, %v4216_v22 }
0x1983   :  { %v4231_v49 = vadd.f32 1e-05, %v4227_v45 }
0x1984   :  { %v4230_v61 = vadd.f32 1e-05, %v4226_v50 }
0x1985   :  { %6304 = vrsqrt.f32 %v4231_v49 }
0x1986   :  { %6306 = vrsqrt.f32 %v4230_v61 }
0x198d   :  { %v4201_v40 = vpop.xlane.xlu0 %4200 }
0x198e   :  { %v4205_v43 = vmul.f32 0.03125, %v4201_v40  ;;  %v4198_v25 = vpop.xlane.xlu1 %4197 }
0x198f   :  { %v6305_v21 = vpop.eup %6304  ;;  %v4204_v14 = vmul.f32 0.03125, %v4198_v25 }
0x1990   :  { %v6307_v6 = vpop.eup %6306  ;;  %v4239_v30 = vmul.f32 %v6305_v21, %v4207_v0  ;;  %v4209_v26 = vsub.f32 %v4189_v17, %v4205_v43 }
0x1991   :  { %v4208_v32 = vsub.f32 %v4188_v37, %v4204_v14  ;;  %v4238_v13 = vmul.f32 %v6307_v6, %v4206_v51 }
0x1992   :  { %v4247_v36 = vmul.f32 %v4245_v54, %v4239_v30  ;;  %v4213_v39 = vmul.f32 %v4209_v26, %v4209_v26 }
0x1993   :  { %v4212_v31 = vmul.f32 %v4208_v32, %v4208_v32  ;;  %v4246_v34 = vmul.f32 %v4245_v54, %v4238_v13 }
0x1994   :  { %v4223_v18 = vsel %vm413_vm4, %v4213_v39, 0.0  ;;  %v7092_v47 = vadd.f32 %v4253_v33, %v4247_v36 }
0x1995   :  { %4224 = vadd.xlane.f32.xlu0 %v4223_v18  ;;  %v4220_v48 = vsel %vm413_vm4, %v4212_v31, 0.0  ;;  %v7090_v56 = vadd.f32 %v4253_v33, %v4246_v34 }
0x1996   :  { %4221 = vadd.xlane.f32.xlu1 %v4220_v48 }
0x1997   :  { %5699 = vmatprep.mubr.msk.f32.mxu1 %vm413_vm4, %v7090_v56 }
0x1998   :  { %5700 = vmatmul.mubr.msk.f32.vlgmr.msra.gmra.mrb[56].mxu1 %vm413_vm4, %v7092_v47 }
0x1999   :  { %6093 = vmatpush3.bf16.msra.mxu1 %v6090_v46  ;;  %v6106_v46 = vpack.c.bf16 %v4515_v3, %v4514_v5 }
0x199a   :  { %6095 = vmatprep.subr.bf16.mxu1 %v6094_v12 }
0x199b   :  { %6107 = vmatprep.subr.bf16.mxu0 %v6106_v46 }
0x199c   :  { %6109 = vmatpush3.bf16.msra.mxu0 %v6106_v46 }
0x199d   :  { %6097 = vmatpush3.bf16.msra.mxu1 %v6094_v12  ;;  %v4517_v12 = vld [vmem:[#allocation2 + $0xc0] sm:$0xff] }
0x199e   :  { %6099 = vmatprep.subr.bf16.mxu1 %v6098_v53  ;;  %v6110_v20 = vpack.c.bf16 %v4517_v12, %v4516_v59 }
0x19a0   :  { %6111 = vmatprep.subr.bf16.mxu0 %v6110_v20 }
0x19a1   :  { %6101 = vmatpush3.bf16.msra.mxu1 %v6098_v53  ;;  %6113 = vmatpush3.bf16.msra.mxu0 %v6110_v20 }
0x19a2   :  { %6103 = vmatprep.subr.bf16.mxu1 %v6102_v29 }
0x19a5   :  { %6105 = vmatpush3.bf16.msra.mxu1 %v6102_v29 }
0x1a22   :  { %v4225_v0 = vpop.xlane.xlu0 %4224 }
0x1a23   :  { %v4229_v51 = vmul.f32 0.03125, %v4225_v0  ;;  %v4222_v57 = vpop.xlane.xlu1 %4221 }
0x1a24   :  { %v4228_v10 = vmul.f32 0.03125, %v4222_v57 }
0x1a25   :  { %v4233_v41 = vadd.f32 1e-05, %v4229_v51  ;;  %v4505_v51 = vrot.slane %v7070_v44, %v6751_v11 }
0x1a26   :  { %v4232_v16 = vadd.f32 1e-05, %v4228_v10 }
0x1a27   :  { %6308 = vrsqrt.f32 %v4233_v41 }
0x1a28   :  { %6310 = vrsqrt.f32 %v4232_v16 }
0x1a31   :  { %v6309_v2 = vpop.eup %6308 }
0x1a32   :  { %v6311_v42 = vpop.eup %6310  ;;  %v4241_v4 = vmul.f32 %v6309_v2, %v4209_v26  ;;  %v4511_v2 = vrot.slane %v7070_v44, %v6754_v27 }
0x1a33   :  { %v4240_v1 = vmul.f32 %v6311_v42, %v4208_v32 }
0x1a34   :  { %v4249_v17 = vmul.f32 %v4245_v54, %v4241_v4 }
0x1a35   :  { %v4248_v37 = vmul.f32 %v4245_v54, %v4240_v1 }
0x1a36   :  { %v4257_v38 = vadd.f32 %v4253_v33, %v4249_v17 }
0x1a37   :  { %v4256_v35 = vadd.f32 %v4253_v33, %v4248_v37  ;;  %v6329_v37 = vld [vmem:[#allocation2] sm:$0xff] }
0x1a39   :  { %5702 = vmatprep.mubr.msk.f32.mxu1 %vm413_vm4, %v4256_v35  ;;  %v4521_v35 = vrot.slane %v6329_v37, %v6734_v23 }
0x1a3a   :  { %5703 = vmatmul.mubr.msk.f32.gmra.mrb[58].mxu1 %vm413_vm4, %v4257_v38 }
0x1a6b   :  { %v5701_v63 = vpop.f32.mrb[56].mxu1 }
0x1a6c   :  { %v4358_v55 = vadd.f32 %v5701_v63, %v4273_v24  ;;  %v4352_v58 = vpop.f32.mrb[57].mxu1 }
0x1a6d   :  { %v4353_v9 = vadd.f32 %v4352_v58, %v4273_v24 }
0x1a6e   :  { %v4372_v52 = vmax.f32 %v4358_v55, 0.0 }
0x1a6f   :  { %v4371_v60 = vmax.f32 %v4353_v9, 0.0 }
0x1a71   :  { %5721 = vmatprep.mubr.msk.f32.mxu1 %vm174_vm3, %v4371_v60 }
0x1a72   :  { %5722 = vmatmul.mubr.msk.f32.vlgmr.msra.gmra.mrb[60].mxu1 %vm174_vm3, %v4372_v52 }
0x1b0d   :  { %v5704_v45 = vpop.f32.mrb[58].mxu1 }
0x1b0e   :  { %v4368_v22 = vadd.f32 %v5704_v45, %v4273_v24  ;;  %v4362_v50 = vpop.f32.mrb[59].mxu1 }
0x1b0f   :  { %v4363_v49 = vadd.f32 %v4362_v50, %v4273_v24 }
0x1b10   :  { %v4374_v40 = vmax.f32 %v4368_v22, 0.0 }
0x1b11   :  { %v4373_v61 = vmax.f32 %v4363_v49, 0.0 }
0x1b13   :  { %5724 = vmatprep.mubr.msk.f32.mxu1 %vm174_vm3, %v4373_v61 }
0x1b14   :  { %5725 = vmatmul.mubr.msk.f32.gmra.mrb[62].mxu1 %vm174_vm3, %v4374_v40  ;;  %vm4603_vm3 = vcmp.lt.s32.totalorder %v6395_v19, 4 }
0x1b45   :  { %v5723_v54 = vpop.f32.mrb[60].mxu1 }
0x1b46   :  { %v4463_v43 = vadd.f32 %v5723_v54, %v4378_v8  ;;  %v4457_v25 = vpop.f32.mrb[61].mxu1 }
0x1b47   :  { %v4458_v21 = vadd.f32 %v4457_v25, %v4378_v8 }
0x1b48   :  { %v4475_v14 = vadd.f32 %v4463_v43, %v7092_v47 }
0x1b49   :  { %v4474_v6 = vadd.f32 %v4458_v21, %v7090_v56 }
0x1b4a   :  { %v4479_v30 = vsel %vm413_vm4, %v4475_v14, 0.0 }
0x1b4b   :  { %4480 = vadd.xlane.f32.xlu0 %v4479_v30  ;;  %v4476_v26 = vsel %vm413_vm4, %v4474_v6, 0.0 }
0x1b4c   :  { %4477 = vadd.xlane.f32.xlu1 %v4476_v26 }
0x1bd8   :  { %v4481_v32 = vpop.xlane.xlu0 %4480 }
0x1bd9   :  { %v4483_v13 = vmul.f32 0.03125, %v4481_v32  ;;  %v4478_v33 = vpop.xlane.xlu1 %4477 }
0x1bda   :  { %v4482_v36 = vmul.f32 0.03125, %v4478_v33 }
0x1bdb   :  { %v4485_v39 = vsub.f32 %v4475_v14, %v4483_v13 }
0x1bdc   :  { %v4484_v31 = vsub.f32 %v4474_v6, %v4482_v36 }
0x1bdd   :  { %v4487_v34 = vmul.f32 %v4485_v39, %v4485_v39 }
0x1bde   :  { %v4486_v18 = vmul.f32 %v4484_v31, %v4484_v31 }
0x1bdf   :  { %v4491_v48 = vsel %vm413_vm4, %v4487_v34, 0.0 }
0x1be0   :  { %4492 = vadd.xlane.f32.xlu0 %v4491_v48  ;;  %v4488_v47 = vsel %vm413_vm4, %v4486_v18, 0.0 }
0x1be1   :  { %4489 = vadd.xlane.f32.xlu1 %v4488_v47 }
0x1be7   :  { %v5726_v56 = vpop.f32.mrb[62].mxu1 }
0x1be8   :  { %v4467_v7 = vpop.f32.mrb[63].mxu1 }
0x1c6d   :  { %v4493_v62 = vpop.xlane.xlu0 %4492 }
0x1c6e   :  { %v4495_v53 = vmul.f32 0.03125, %v4493_v62  ;;  %v4490_v28 = vpop.xlane.xlu1 %4489 }
0x1c6f   :  { %v4494_v15 = vmul.f32 0.03125, %v4490_v28 }
0x1c70   :  { %v4497_v29 = vadd.f32 1e-05, %v4495_v53 }
0x1c71   :  { %v4496_v0 = vadd.f32 1e-05, %v4494_v15 }
0x1c72   :  { %6312 = vrsqrt.f32 %v4497_v29 }
0x1c73   :  { %6314 = vrsqrt.f32 %v4496_v0 }
0x1c7c   :  { %v6313_v57 = vpop.eup %6312 }
0x1c7d   :  { %v6315_v10 = vpop.eup %6314  ;;  %v4501_v41 = vmul.f32 %v6313_v57, %v4485_v39 }
0x1c7e   :  { %v4500_v16 = vmul.f32 %v6315_v10, %v4484_v31 }
0x1c7f   :  { %v4507_v42 = vmul.f32 %v4505_v51, %v4501_v41 }
0x1c80   :  { %v4506_v4 = vmul.f32 %v4505_v51, %v4500_v16 }
0x1c81   :  { %v4513_v17 = vadd.f32 %v4511_v2, %v4507_v42 }
0x1c82   :  { %v4512_v1 = vadd.f32 %v4511_v2, %v4506_v4 }
0x1c84   :  { %5735 = vmatprep.mubr.msk.f32.mxu0 %vm413_vm4, %v4512_v1 }
0x1c85   :  { %5736 = vmatmul.mubr.msk.f32.vlgmr.msra.gmra.mrb[62].mxu0 %vm413_vm4, %v4513_v17  ;;  %vm4607_vm4 = vcmp.ge.s32.totalorder %v6395_v19, 8 }
0x1c86   :  { %vm7124_vm6 = vmand %vm4607_vm4, %vm4608_vm5 }
0x1d58   :  { %v5737_v38 = vpop.f32.mrb[62].mxu0 }
0x1d59   :  { %v4600_v11 = vadd.f32 %v5737_v38, %v4521_v35  ;;  %v4594_v24 = vpop.f32.mrb[63].mxu0 }
0x1d5a   :  { %v4595_v63 = vadd.f32 %v4594_v24, %v4521_v35 }
0x1d5b   :  { %v4611_v55 = vsel %vm4603_vm3, %v4600_v11, -1e+30  ;;  %v4631_v49 = vsel %vm7124_vm6, %v4600_v11, 0.0  ;;  %v4637_v26 = vsel %vm4606_vm9, %v4600_v11, 0.0 }
0x1d5c   :  { %4614 = vmax.xlane.f32.xlu0 %v4611_v55  ;;  %v4610_v27 = vsel %vm4603_vm3, %v4595_v63, -1e+30  ;;  %v4634_v61 = vmul.f32 1.442695, %v4631_v49  ;;  %v4630_v40 = vsel %vm7124_vm6, %v4595_v63, 0.0  ;;  %v4636_v13 = vsel %vm4606_vm9, %v4595_v63, 0.0 }
0x1d5d   :  { %4612 = vmax.xlane.f32.xlu1 %v4610_v27  ;;  %v4632_v8 = vmul.f32 1.442695, %v4630_v40 }
0x1de9   :  { %v4615_v44 = vpop.xlane.xlu0 %4614 }
0x1dea   :  { %v4617_v58 = vsub.f32 %v4611_v55, %v4615_v44  ;;  %v4613_v9 = vpop.xlane.xlu1 %4612 }
0x1deb   :  { %v4616_v60 = vsub.f32 %v4610_v27, %v4613_v9 }
0x1dec   :  { %v4620_v52 = vmul.f32 1.442695, %v4617_v58 }
0x1ded   :  { %v4618_v45 = vmul.f32 1.442695, %v4616_v60 }
0x1dee   :  { %6316 = vpow2.f32 %v4620_v52 }
0x1def   :  { %6318 = vpow2.f32 %v4618_v45 }
0x1df0   :  { %6320 = vpow2.f32 %v4634_v61 }
0x1df8   :  { %v6317_v22 = vpop.eup %6316 }
0x1df9   :  { %v6319_v23 = vpop.eup %6318  ;;  %4624 = vadd.xlane.f32.xlu0 %v6317_v22 }
0x1dfa   :  { %4622 = vadd.xlane.f32.xlu1 %v6319_v23  ;;  %v6321_v25 = vpop.eup %6320 }
0x1dfb   :  { %v4641_v36 = vsel %vm7124_vm6, %v6321_v25, 0.0 }
0x1e86   :  { %v4625_v54 = vpop.xlane.xlu0 %4624 }
0x1e87   :  { %6322 = vrcp.f32 %v4625_v54  ;;  %v4623_v43 = vpop.xlane.xlu1 %4622 }
0x1e88   :  { %6324 = vrcp.f32 %v4623_v43 }
0x1e89   :  { %6326 = vpow2.f32 %v4632_v8 }
0x1e91   :  { %v6323_v21 = vpop.eup %6322 }
0x1e92   :  { %v6325_v14 = vpop.eup %6324  ;;  %v4629_v6 = vmul.f32 %v6323_v21, %v6317_v22 }
0x1e93   :  { %v6327_v30 = vpop.eup %6326  ;;  %v4628_v32 = vmul.f32 %v6325_v14, %v6319_v23 }
0x1e94   :  { %v4639_v33 = vadd.f32 %v4637_v26, %v4629_v6  ;;  %v4640_v34 = vsel %vm7124_vm6, %v6327_v30, 0.0 }
0x1e95   :  { %v4638_v39 = vadd.f32 %v4636_v13, %v4628_v32 }
0x1e96   :  { %v4643_v31 = vadd.f32 %v4641_v36, %v4639_v33 }
0x1e97   :  { %v4642_v18 = vadd.f32 %v4640_v34, %v4638_v39 }
0x1e98   :  { %4645 = vst [vmem:[%s7146_s2 + $0x8] sm:$0xff] %v4643_v31 }
0x1e99   :  { %4644 = vst [vmem:[%s7146_s2] sm:$0xff] %v4642_v18 }
0x1e9a   :  { %4650 = vsyncpa [#allocation3], 1 }

</bundles_post_ra>
